<compile_context>
chip_gen: v7x
topology: tpu7x:2x2x1
jax: 0.10.0
libtpu: 0.0.40
codegen_flags: <defaults>
</compile_context>

<pallas_src>
import functools

import numpy as np
import jax
import jax.numpy as jnp
from jax import lax
from jax.experimental import pallas as pl
from jax.experimental.pallas import tpu as pltpu


def _round_up(x, m):
    return ((x + m - 1) // m) * m


def _pick_tile(dim, pref, align):
    """Largest multiple of `align` that is <= pref and divides dim.
    Callers guarantee dim % align == 0 so this always terminates."""
    if dim <= pref:
        return dim
    t = max(align, (pref // align) * align)
    while dim % t != 0:
        t -= align
    return t


# ----------------------------------------------------------------------------
# Per-generation VMEM budgeting
# ----------------------------------------------------------------------------
_VMEM_CAP = None


def _vmem_capacity_bytes():
    global _VMEM_CAP
    if _VMEM_CAP is None:
        cap = None
        try:
            info = pltpu.get_tpu_info()
            cap = getattr(info, "vmem_capacity_bytes", None)
        except Exception:
            cap = None
        _VMEM_CAP = int(cap) if cap else 64 * 1024 * 1024   # conservative (v7x per-TC)
    return _VMEM_CAP


def _vmem_limit_bytes():
    # ~96 MiB on v5e/v6e (128 MiB physical), ~48 MiB on v7x (64 MiB physical).
    return min(int(0.75 * _vmem_capacity_bytes()), 100 * 1024 * 1024)


# ----------------------------------------------------------------------------
# Optional single-buffering of grid-invariant weights (halves their VMEM
# footprint).  Probed once; falls back to default double-buffering.
# ----------------------------------------------------------------------------
_BUFFERED_ONE_OK = None


def _probe_copy_kernel(x_ref, o_ref):
    o_ref[...] = x_ref[...]


def _buffered_one_supported():
    global _BUFFERED_ONE_OK
    if _BUFFERED_ONE_OK is None:
        try:
            out = pl.pallas_call(
                _probe_copy_kernel,
                out_shape=jax.ShapeDtypeStruct((8, 128), jnp.float32),
                grid=(2,),
                in_specs=[pl.BlockSpec((8, 128), lambda i: (0, 0),
                                       pipeline_mode=pl.Buffered(1))],
                out_specs=pl.BlockSpec((8, 128), lambda i: (0, 0)),
            )(jnp.zeros((8, 128), jnp.float32))
            jax.block_until_ready(out)
            _BUFFERED_ONE_OK = True
        except Exception:
            _BUFFERED_ONE_OK = False
    return _BUFFERED_ONE_OK


def _invariant_spec(block_shape, index_map):
    if _buffered_one_supported():
        return pl.BlockSpec(block_shape, index_map, pipeline_mode=pl.Buffered(1))
    return pl.BlockSpec(block_shape, index_map)


# ----------------------------------------------------------------------------
# Tiled GEMM + bias (decoder Linear):  (M, K)bf16 @ (K, N)bf16 + (1, N)f32
#   -> (M, N)f32.  Accumulates directly into the resident f32 output block.
#   K, N are multiples of 128 by construction; M is padded UP to the tile.
# ----------------------------------------------------------------------------
def _matmul_bias_kernel(x_ref, w_ref, b_ref, o_ref):
    @pl.when(pl.program_id(2) == 0)
    def _():
        o_ref[...] = jnp.broadcast_to(b_ref[...].astype(jnp.float32), o_ref.shape)

    o_ref[...] += jnp.dot(x_ref[...], w_ref[...],
                          preferred_element_type=jnp.float32)


def matmul_bias(x, w_t, b, *, tm_pref=256, tn_pref=512, tk_pref=512):
    M, K = x.shape
    _, N = w_t.shape
    tn = _pick_tile(N, tn_pref, 128)
    tk = _pick_tile(K, tk_pref, 128)
    tm = tm_pref if M >= tm_pref else _round_up(M, 8)
    M_pad = _round_up(M, tm)
    if M_pad != M:
        x = jnp.pad(x, ((0, M_pad - M), (0, 0)))
    out = pl.pallas_call(
        _matmul_bias_kernel,
        out_shape=jax.ShapeDtypeStruct((M_pad, N), jnp.float32),
        grid_spec=pltpu.PrefetchScalarGridSpec(
            num_scalar_prefetch=0,
            grid=(M_pad // tm, N // tn, K // tk),
            in_specs=[
                pl.BlockSpec((tm, tk), lambda i, j, k: (i, k)),
                pl.BlockSpec((tk, tn), lambda i, j, k: (k, j)),
                pl.BlockSpec((1, tn), lambda i, j, k: (0, j)),
            ],
            out_specs=pl.BlockSpec((tm, tn), lambda i, j, k: (i, j)),
        ),
        compiler_params=pltpu.CompilerParams(
            dimension_semantics=("parallel", "parallel", "arbitrary"),
            vmem_limit_bytes=_vmem_limit_bytes(),
        ),
    )(x, w_t, b)
    return out[:M] if M_pad != M else out


# ----------------------------------------------------------------------------
# Fused LSTM layer kernel.  Grid = (batch chunks ["parallel"], time chunks
# ["arbitrary"]).  Each grid step:
#   1. projects its (tc, bc, d_in) bf16 input slab through W_ih^T per gate
#      into f32 VMEM scratch (no xg HBM round trip),
#   2. runs tc serial time steps: per-gate h@W_hh_g (bf16 MXU, f32 acc) +
#      gate nonlinearity, h/c carried in f32 VMEM scratch,
#   3. writes the bf16 hidden states for the chunk.
# Gate order matches PyTorch nn.LSTM: [i, f, g, o]; bias = b_ih + b_hh.
# ----------------------------------------------------------------------------
def _lstm_fused_kernel(x_ref, wih_ref, b_ref, whh_ref, y_ref,
                       xg0, xg1, xg2, xg3, h_scr, c_scr, *, tc, bc, hidden):
    xg_scr = (xg0, xg1, xg2, xg3)

    @pl.when(pl.program_id(1) == 0)
    def _():
        h_scr[...] = jnp.zeros_like(h_scr)
        c_scr[...] = jnp.zeros_like(c_scr)

    d_in = x_ref.shape[-1]
    x2d = x_ref[...].reshape(tc * bc, d_in)                 # bf16
    for g in range(4):
        col = slice(g * hidden, (g + 1) * hidden)
        pg = jnp.dot(x2d, wih_ref[:, col], preferred_element_type=jnp.float32)
        pg = pg + b_ref[:, col]                             # (tc*bc, H) f32
        xg_scr[g][...] = pg.reshape(tc, bc, hidden)

    def _sig(z):
        # one tanh EUP push instead of exp + reciprocal on the serial path
        return 0.5 * jnp.tanh(0.5 * z) + 0.5

    def step(t, carry):
        h = h_scr[...].astype(jnp.bfloat16)                 # (bc, H) for MXU
        c = c_scr[...]

        def gate(g):
            col = slice(g * hidden, (g + 1) * hidden)
            return xg_scr[g][t] + jnp.dot(h, whh_ref[:, col],
                                          preferred_element_type=jnp.float32)

        i_g = _sig(gate(0))
        f_g = _sig(gate(1))
        g_g = jnp.tanh(gate(2))
        o_g = _sig(gate(3))
        c_new = f_g * c + i_g * g_g
        h_new = o_g * jnp.tanh(c_new)
        c_scr[...] = c_new
        h_scr[...] = h_new
        y_ref[t] = h_new.astype(y_ref.dtype)
        return carry

    lax.fori_loop(0, tc, step, 0, unroll=True)


def lstm_layer(x, w_ih_t, w_hh_t, bias, *, tc, bc):
    """x: (T, B, d_in) bf16 -> (T, B, H) bf16 hidden states."""
    T, B, d_in = x.shape
    H4 = w_hh_t.shape[1]
    H = H4 // 4
    assert T % tc == 0 and B % bc == 0
    kernel = functools.partial(_lstm_fused_kernel, tc=tc, bc=bc, hidden=H)
    return pl.pallas_call(
        kernel,
        out_shape=jax.ShapeDtypeStruct((T, B, H), jnp.bfloat16),
        grid_spec=pltpu.PrefetchScalarGridSpec(
            num_scalar_prefetch=0,
            grid=(B // bc, T // tc),
            in_specs=[
                pl.BlockSpec((tc, bc, d_in), lambda b, t: (t, b, 0)),
                _invariant_spec((d_in, H4), lambda b, t: (0, 0)),   # W_ih^T resident
                _invariant_spec((1, H4), lambda b, t: (0, 0)),      # b_ih + b_hh
                _invariant_spec((H, H4), lambda b, t: (0, 0)),      # W_hh^T resident
            ],
            out_specs=pl.BlockSpec((tc, bc, H), lambda b, t: (t, b, 0)),
            scratch_shapes=[pltpu.VMEM((tc, bc, H), jnp.float32)] * 4   # per-gate xg
                         + [pltpu.VMEM((bc, H), jnp.float32),           # h
                            pltpu.VMEM((bc, H), jnp.float32)],          # c
        ),
        compiler_params=pltpu.CompilerParams(
            dimension_semantics=("parallel", "arbitrary"),
            vmem_limit_bytes=_vmem_limit_bytes(),
        ),
    )(x, w_ih_t, bias, w_hh_t)


# ----------------------------------------------------------------------------
# Chunk-size selection (per-generation VMEM / TensorCore aware)
# ----------------------------------------------------------------------------
def _choose_bc(b_pad8, bc_pref=256):
    if b_pad8 < 256:
        return b_pad8                              # single chunk (small batch / v5e)
    if b_pad8 < 2 * bc_pref:
        return _round_up((b_pad8 + 1) // 2, 8)     # 2 chunks -> both v7x cores busy
    return bc_pref                                 # 256-row chunks fill 256-wide MXU


def _choose_tc(tc_pref, T, bc, d_in, H):
    budget = int(0.7 * _vmem_limit_bytes())
    w_bufs = 1 if _buffered_one_supported() else 2
    tc = max(1, min(tc_pref, T))

    def fits(tc):
        xg = 4 * tc * bc * H * 4                                   # f32 gate scratch
        xio = 2 * tc * bc * d_in * 2 + 2 * tc * bc * H * 2         # dbl-buffered bf16 i/o
        w = w_bufs * ((d_in + H) * 4 * H * 2 + 4 * H * 4)          # W_ih, W_hh, bias
        state = 2 * bc * H * 4                                     # h, c
        return xg + xio + w + state <= budget

    while tc > 1 and not fits(tc):
        tc = max(1, tc // 2)
    return tc


# ----------------------------------------------------------------------------
# Parameter init (mirrors the PyTorch module's shapes/init, "raw" f32 layout)
# ----------------------------------------------------------------------------
def init_params(key, num_labels, num_embeds, num_hidden, num_layers):
    initrange = 0.1
    keys = jax.random.split(key, 2 + 4 * num_layers)
    params = {}
    params["emb"] = jax.random.uniform(
        keys[0], (num_labels, num_embeds), jnp.float32, -initrange, initrange)
    params["dec_w"] = jax.random.uniform(
        keys[1], (num_labels, num_hidden), jnp.float32, -initrange, initrange)
    params["dec_b"] = jnp.zeros((num_labels,), jnp.float32)

    std = 1.0 / np.sqrt(num_hidden)   # PyTorch default LSTM init range
    lstm = []
    for l in range(num_layers):
        d_in = num_embeds if l == 0 else num_hidden
        k = keys[2 + 4 * l: 2 + 4 * (l + 1)]
        w_ih = jax.random.uniform(k[0], (4 * num_hidden, d_in), jnp.float32, -std, std)
        w_hh = jax.random.uniform(k[1], (4 * num_hidden, num_hidden), jnp.float32, -std, std)
        b_ih = jax.random.uniform(k[2], (4 * num_hidden,), jnp.float32, -std, std)
        b_hh = jax.random.uniform(k[3], (4 * num_hidden,), jnp.float32, -std, std)
        lstm.append((w_ih, w_hh, b_ih, b_hh))
    params["lstm"] = lstm
    return params


# ----------------------------------------------------------------------------
# One-time parameter preparation: transpose, pad to (8, 128)-aligned / per-gate
# lane-aligned layout, and cast weights/activ. inputs to bf16 (biases stay f32).
# Zero padding keeps the math exact (padded hidden lanes stay identically 0).
# ----------------------------------------------------------------------------
def _pad_gate_cols(w, h, h_pad):
    """(..., 4h) -> (..., 4*h_pad): zero-pad each [i|f|g|o] gate block."""
    if h_pad == h:
        return w
    parts = []
    for g in range(4):
        blk = w[..., g * h:(g + 1) * h]
        pad = [(0, 0)] * (blk.ndim - 1) + [(0, h_pad - h)]
        parts.append(jnp.pad(blk, pad))
    return jnp.concatenate(parts, axis=-1)


def prepare_params(params):
    emb = params["emb"]
    L, E = emb.shape
    H = params["lstm"][0][1].shape[1]          # w_hh: (4H, H)
    E_pad = _round_up(E, 128)
    H_pad = _round_up(H, 128)
    L_pad = _round_up(L, 128)

    prep = {"dims": dict(L=L, E=E, H=H, L_pad=L_pad, E_pad=E_pad, H_pad=H_pad)}
    prep["emb"] = jnp.pad(emb, ((0, 0), (0, E_pad - E))).astype(jnp.bfloat16)

    layers = []
    for l, (w_ih, w_hh, b_ih, b_hh) in enumerate(params["lstm"]):
        d_in = w_ih.shape[1]
        d_in_pad = E_pad if l == 0 else H_pad
        w_ih_t = jnp.pad(w_ih.T, ((0, d_in_pad - d_in), (0, 0)))        # (d_in_pad, 4H)
        w_ih_t = _pad_gate_cols(w_ih_t, H, H_pad).astype(jnp.bfloat16)  # (d_in_pad, 4H_pad)
        w_hh_t = jnp.pad(w_hh.T, ((0, H_pad - H), (0, 0)))              # (H_pad, 4H)
        w_hh_t = _pad_gate_cols(w_hh_t, H, H_pad).astype(jnp.bfloat16)  # (H_pad, 4H_pad)
        bias = _pad_gate_cols((b_ih + b_hh)[None, :], H, H_pad)         # (1, 4H_pad) f32
        layers.append((w_ih_t, w_hh_t, bias))
    prep["lstm"] = layers

    prep["dec_w_t"] = jnp.pad(params["dec_w"].T,
                              ((0, H_pad - H), (0, L_pad - L))).astype(jnp.bfloat16)
    prep["dec_b"] = jnp.pad(params["dec_b"], (0, L_pad - L))[None, :]   # (1, L_pad) f32
    return prep


# ----------------------------------------------------------------------------
# Forward pass (glue in JAX, heavy compute in Pallas kernels)
# ----------------------------------------------------------------------------
# TODO(synk): drop1/drop2/inter-layer dropout are identity (eval mode); a
# training-mode version would use pltpu.prng_seed + pltpu.stateful_bernoulli.
def lstmlm_forward(prep, tokens, *, tc_pref=32, bc_pref=256):
    T, B = tokens.shape
    d = prep["dims"]
    E_pad, H_pad, L_pad, L = d["E_pad"], d["H_pad"], d["L_pad"], d["L"]

    b_pad8 = _round_up(B, 8)
    bc = _choose_bc(b_pad8, bc_pref)
    b_pad = _round_up(b_pad8, bc)
    tc = _choose_tc(tc_pref, T, bc, max(E_pad, H_pad), H_pad)
    t_pad = _round_up(T, tc)

    tok = jnp.pad(tokens, ((0, t_pad - T), (0, b_pad - B)))   # pad with token 0
    # Embedding lookup (gather) stays in JAX glue; result is bf16.
    x = prep["emb"][tok]                                      # (t_pad, b_pad, E_pad)

    for (w_ih_t, w_hh_t, bias) in prep["lstm"]:
        x = lstm_layer(x, w_ih_t, w_hh_t, bias, tc=tc, bc=bc)  # bf16 hidden states

    flat_y = matmul_bias(x.reshape(t_pad * b_pad, H_pad),
                         prep["dec_w_t"], prep["dec_b"])      # (t_pad*b_pad, L_pad) f32
    y = flat_y.reshape(t_pad, b_pad, L_pad)
    return y[:T, :B, :L]


# ----------------------------------------------------------------------------
# Pure JAX f32 reference (for correctness check), raw PyTorch-layout params.
# ----------------------------------------------------------------------------
def lstmlm_reference(params, tokens):
    T, B = tokens.shape
    x = params["emb"][tokens]
    for (w_ih, w_hh, b_ih, b_hh) in params["lstm"]:
        H = w_hh.shape[1]
        h = jnp.zeros((B, H), jnp.float32)
        c = jnp.zeros((B, H), jnp.float32)
        outs = []
        for t in range(T):
            gates = x[t] @ w_ih.T + b_ih + h @ w_hh.T + b_hh
            i = jax.nn.sigmoid(gates[:, 0 * H:1 * H])
            f = jax.nn.sigmoid(gates[:, 1 * H:2 * H])
            g = jnp.tanh(gates[:, 2 * H:3 * H])
            o = jax.nn.sigmoid(gates[:, 3 * H:4 * H])
            c = f * c + i * g
            h = o * jnp.tanh(c)
            outs.append(h)
        x = jnp.stack(outs, axis=0)
    flat = x.reshape(T * B, -1)
    y = flat @ params["dec_w"].T + params["dec_b"]
    return y.reshape(T, B, -1)


if __name__ == "__main__":
    num_labels, num_embeds, num_hidden, num_layers = 50, 32, 32, 2
    T, B = 8, 4

    key = jax.random.PRNGKey(0)
    k_tok, k_par = jax.random.split(key)
    tokens = jax.random.randint(k_tok, (T, B), 0, num_labels, dtype=jnp.int32)
    params = init_params(k_par, num_labels, num_embeds, num_hidden, num_layers)
    prep = prepare_params(params)   # one-time transpose/pad/bf16 cast, outside forward

    y = lstmlm_forward(prep, tokens)
    y = jax.block_until_ready(y)

    y_ref = lstmlm_reference(params, tokens)
    assert y.shape == (T, B, num_labels)
    # bf16 MXU path with f32 accumulation: loosened parity tolerance.
    np.testing.assert_allclose(np.asarray(y), np.asarray(y_ref), rtol=2e-2, atol=2e-2)

    print("KERNEL_OK")
</pallas_src>

<mosaic_0001>
module attributes {stable_mosaic.version = 11 : i64} {
  func.func @_probe_copy_kernel(%arg0: i32, %arg1: memref<8x128xf32, #tpu.memory_space<vmem>>, %arg2: memref<8x128xf32, #tpu.memory_space<vmem>>) attributes {dimension_semantics = [#tpu.dimension_semantics<arbitrary>], iteration_bounds = array<i64: 2>, scalar_prefetch = 0 : i64, scratch_operands = 0 : i64, tpu.core_type = #tpu.core_type<tc>, window_params = [{pipeline_mode = #tpu.pipeline_mode<synchronous>, transform_indices = @transform_0, window_bounds = array<i64: 8, 128>}, {pipeline_mode = #tpu.pipeline_mode<synchronous>, transform_indices = @transform_1, window_bounds = array<i64: 8, 128>}]} {
    %c0 = arith.constant 0 : index
    %c0_0 = arith.constant 0 : index
    %0 = vector.load %arg1[%c0, %c0_0] : memref<8x128xf32, #tpu.memory_space<vmem>>, vector<8x128xf32>
    %c0_1 = arith.constant 0 : index
    %c0_2 = arith.constant 0 : index
    %1 = vector.load %arg2[%c0_1, %c0_2] : memref<8x128xf32, #tpu.memory_space<vmem>>, vector<8x128xf32>
    tpu.vector_store %arg2[%c0_1, %c0_2], %0 {strides = array<i32>} : memref<8x128xf32, #tpu.memory_space<vmem>>, vector<8x128xf32>,
    return
  }
  func.func @transform_0(%arg0: i32) -> (i32, i32) {
    %c0_i32 = arith.constant 0 : i32
    %c0_i32_0 = arith.constant 0 : i32
    %c0_i32_1 = arith.constant 0 : i32
    return %c0_i32, %c0_i32_0 : i32, i32
  }
  func.func @transform_1(%arg0: i32) -> (i32, i32) {
    %c0_i32 = arith.constant 0 : i32
    %c0_i32_0 = arith.constant 0 : i32
    %c0_i32_1 = arith.constant 0 : i32
    return %c0_i32, %c0_i32_0 : i32, i32
  }
}

module attributes {stable_mosaic.version = 11 : i64} {
  func.func @_lstm_fused_kernel(%arg0: i32, %arg1: i32, %arg2: memref<8x8x128xbf16, #tpu.memory_space<vmem>>, %arg3: memref<128x512xbf16, #tpu.memory_space<vmem>>, %arg4: memref<1x512xf32, #tpu.memory_space<vmem>>, %arg5: memref<128x512xbf16, #tpu.memory_space<vmem>>, %arg6: memref<8x8x128xbf16, #tpu.memory_space<vmem>>, %arg7: memref<8x8x128xf32, #tpu.memory_space<vmem>>, %arg8: memref<8x8x128xf32, #tpu.memory_space<vmem>>, %arg9: memref<8x8x128xf32, #tpu.memory_space<vmem>>, %arg10: memref<8x8x128xf32, #tpu.memory_space<vmem>>, %arg11: memref<8x128xf32, #tpu.memory_space<vmem>>, %arg12: memref<8x128xf32, #tpu.memory_space<vmem>>) attributes {dimension_semantics = [#tpu.dimension_semantics<parallel>, #tpu.dimension_semantics<arbitrary>], iteration_bounds = array<i64: 1, 1>, scalar_prefetch = 0 : i64, scratch_operands = 6 : i64, tpu.core_type = #tpu.core_type<tc>, window_params = [{transform_indices = @transform_0, window_bounds = array<i64: 8, 8, 128>}, {pipeline_mode = #tpu.pipeline_mode<synchronous>, transform_indices = @transform_1, window_bounds = array<i64: 128, 512>}, {pipeline_mode = #tpu.pipeline_mode<synchronous>, transform_indices = @transform_2, window_bounds = array<i64: 1, 512>}, {pipeline_mode = #tpu.pipeline_mode<synchronous>, transform_indices = @transform_3, window_bounds = array<i64: 128, 512>}, {transform_indices = @transform_4, window_bounds = array<i64: 8, 8, 128>}]} {
    %c0_i32 = arith.constant 0 : i32
    %0 = arith.cmpi eq, %arg1, %c0_i32 : i32
    %1 = arith.extui %0 : i1 to i32
    %c0_i32_0 = arith.constant 0 : i32
    %2 = arith.cmpi ne, %1, %c0_i32_0 : i32
    scf.if %2 {
      %cst_344 = arith.constant 0.000000e+00 : f32
      %521 = vector.broadcast %cst_344 : f32 to vector<8x128xf32>
      %c0_345 = arith.constant 0 : index
      %c0_346 = arith.constant 0 : index
      %522 = vector.load %arg11[%c0_345, %c0_346] : memref<8x128xf32, #tpu.memory_space<vmem>>, vector<8x128xf32>
      tpu.vector_store %arg11[%c0_345, %c0_346], %521 {strides = array<i32>} : memref<8x128xf32, #tpu.memory_space<vmem>>, vector<8x128xf32>,
      %cst_347 = arith.constant 0.000000e+00 : f32
      %523 = vector.broadcast %cst_347 : f32 to vector<8x128xf32>
      %c0_348 = arith.constant 0 : index
      %c0_349 = arith.constant 0 : index
      %524 = vector.load %arg12[%c0_348, %c0_349] : memref<8x128xf32, #tpu.memory_space<vmem>>, vector<8x128xf32>
      tpu.vector_store %arg12[%c0_348, %c0_349], %523 {strides = array<i32>} : memref<8x128xf32, #tpu.memory_space<vmem>>, vector<8x128xf32>,
    } else {
    }
    %c0 = arith.constant 0 : index
    %c0_1 = arith.constant 0 : index
    %c0_2 = arith.constant 0 : index
    %3 = vector.load %arg2[%c0, %c0_1, %c0_2] : memref<8x8x128xbf16, #tpu.memory_space<vmem>>, vector<8x8x128xbf16>
    %4 = vector.shape_cast %3 : vector<8x8x128xbf16> to vector<64x128xbf16>
    %c0_3 = arith.constant 0 : index
    %c0_4 = arith.constant 0 : index
    %5 = vector.load %arg3[%c0_3, %c0_4] : memref<128x512xbf16, #tpu.memory_space<vmem>>, vector<128x128xbf16>
    %cst = arith.constant dense<0.000000e+00> : vector<64x128xf32>
    %6 = tpu.matmul %4, %5, %cst {dimension_numbers = #tpu.dot_dimension_numbers<[1], [0], [0], [1], [0, 0, 1, 1], [], []>} : vector<64x128xbf16>, vector<128x128xbf16>, vector<64x128xf32> -> vector<64x128xf32>
    %c0_5 = arith.constant 0 : index
    %c0_6 = arith.constant 0 : index
    %7 = vector.load %arg4[%c0_5, %c0_6] : memref<1x512xf32, #tpu.memory_space<vmem>>, vector<1x128xf32>
    %8 = vector.broadcast %7 : vector<1x128xf32> to vector<64x128xf32>
    %9 = arith.addf %6, %8 : vector<64x128xf32>
    %10 = vector.shape_cast %9 : vector<64x128xf32> to vector<8x8x128xf32>
    %c0_7 = arith.constant 0 : index
    %c0_8 = arith.constant 0 : index
    %c0_9 = arith.constant 0 : index
    %11 = vector.load %arg7[%c0_7, %c0_8, %c0_9] : memref<8x8x128xf32, #tpu.memory_space<vmem>>, vector<8x8x128xf32>
    tpu.vector_store %arg7[%c0_7, %c0_8, %c0_9], %10 {strides = array<i32>} : memref<8x8x128xf32, #tpu.memory_space<vmem>>, vector<8x8x128xf32>,
    %c0_10 = arith.constant 0 : index
    %c128 = arith.constant 128 : index
    %12 = vector.load %arg3[%c0_10, %c128] : memref<128x512xbf16, #tpu.memory_space<vmem>>, vector<128x128xbf16>
    %cst_11 = arith.constant dense<0.000000e+00> : vector<64x128xf32>
    %13 = tpu.matmul %4, %12, %cst_11 {dimension_numbers = #tpu.dot_dimension_numbers<[1], [0], [0], [1], [0, 0, 1, 1], [], []>} : vector<64x128xbf16>, vector<128x128xbf16>, vector<64x128xf32> -> vector<64x128xf32>
    %c0_12 = arith.constant 0 : index
    %c128_13 = arith.constant 128 : index
    %14 = vector.load %arg4[%c0_12, %c128_13] : memref<1x512xf32, #tpu.memory_space<vmem>>, vector<1x128xf32>
    %15 = vector.broadcast %14 : vector<1x128xf32> to vector<64x128xf32>
    %16 = arith.addf %13, %15 : vector<64x128xf32>
    %17 = vector.shape_cast %16 : vector<64x128xf32> to vector<8x8x128xf32>
    %c0_14 = arith.constant 0 : index
    %c0_15 = arith.constant 0 : index
    %c0_16 = arith.constant 0 : index
    %18 = vector.load %arg8[%c0_14, %c0_15, %c0_16] : memref<8x8x128xf32, #tpu.memory_space<vmem>>, vector<8x8x128xf32>
    tpu.vector_store %arg8[%c0_14, %c0_15, %c0_16], %17 {strides = array<i32>} : memref<8x8x128xf32, #tpu.memory_space<vmem>>, vector<8x8x128xf32>,
    %c0_17 = arith.constant 0 : index
    %c256 = arith.constant 256 : index
    %19 = vector.load %arg3[%c0_17, %c256] : memref<128x512xbf16, #tpu.memory_space<vmem>>, vector<128x128xbf16>
    %cst_18 = arith.constant dense<0.000000e+00> : vector<64x128xf32>
    %20 = tpu.matmul %4, %19, %cst_18 {dimension_numbers = #tpu.dot_dimension_numbers<[1], [0], [0], [1], [0, 0, 1, 1], [], []>} : vector<64x128xbf16>, vector<128x128xbf16>, vector<64x128xf32> -> vector<64x128xf32>
    %c0_19 = arith.constant 0 : index
    %c256_20 = arith.constant 256 : index
    %21 = vector.load %arg4[%c0_19, %c256_20] : memref<1x512xf32, #tpu.memory_space<vmem>>, vector<1x128xf32>
    %22 = vector.broadcast %21 : vector<1x128xf32> to vector<64x128xf32>
    %23 = arith.addf %20, %22 : vector<64x128xf32>
    %24 = vector.shape_cast %23 : vector<64x128xf32> to vector<8x8x128xf32>
    %c0_21 = arith.constant 0 : index
    %c0_22 = arith.constant 0 : index
    %c0_23 = arith.constant 0 : index
    %25 = vector.load %arg9[%c0_21, %c0_22, %c0_23] : memref<8x8x128xf32, #tpu.memory_space<vmem>>, vector<8x8x128xf32>
    tpu.vector_store %arg9[%c0_21, %c0_22, %c0_23], %24 {strides = array<i32>} : memref<8x8x128xf32, #tpu.memory_space<vmem>>, vector<8x8x128xf32>,
    %c0_24 = arith.constant 0 : index
    %c384 = arith.constant 384 : index
    %26 = vector.load %arg3[%c0_24, %c384] : memref<128x512xbf16, #tpu.memory_space<vmem>>, vector<128x128xbf16>
    %cst_25 = arith.constant dense<0.000000e+00> : vector<64x128xf32>
    %27 = tpu.matmul %4, %26, %cst_25 {dimension_numbers = #tpu.dot_dimension_numbers<[1], [0], [0], [1], [0, 0, 1, 1], [], []>} : vector<64x128xbf16>, vector<128x128xbf16>, vector<64x128xf32> -> vector<64x128xf32>
    %c0_26 = arith.constant 0 : index
    %c384_27 = arith.constant 384 : index
    %28 = vector.load %arg4[%c0_26, %c384_27] : memref<1x512xf32, #tpu.memory_space<vmem>>, vector<1x128xf32>
    %29 = vector.broadcast %28 : vector<1x128xf32> to vector<64x128xf32>
    %30 = arith.addf %27, %29 : vector<64x128xf32>
    %31 = vector.shape_cast %30 : vector<64x128xf32> to vector<8x8x128xf32>
    %c0_28 = arith.constant 0 : index
    %c0_29 = arith.constant 0 : index
    %c0_30 = arith.constant 0 : index
    %32 = vector.load %arg10[%c0_28, %c0_29, %c0_30] : memref<8x8x128xf32, #tpu.memory_space<vmem>>, vector<8x8x128xf32>
    tpu.vector_store %arg10[%c0_28, %c0_29, %c0_30], %31 {strides = array<i32>} : memref<8x8x128xf32, #tpu.memory_space<vmem>>, vector<8x8x128xf32>,
    %c0_i32_31 = arith.constant 0 : i32
    %c0_32 = arith.constant 0 : index
    %c0_33 = arith.constant 0 : index
    %33 = vector.load %arg11[%c0_32, %c0_33] : memref<8x128xf32, #tpu.memory_space<vmem>>, vector<8x128xf32>
    %34 = arith.truncf %33 : vector<8x128xf32> to vector<8x128xbf16>
    %c0_34 = arith.constant 0 : index
    %c0_35 = arith.constant 0 : index
    %35 = vector.load %arg12[%c0_34, %c0_35] : memref<8x128xf32, #tpu.memory_space<vmem>>, vector<8x128xf32>
    %36 = arith.index_cast %c0_i32_31 : i32 to index
    %c0_36 = arith.constant 0 : index
    %c0_37 = arith.constant 0 : index
    %37 = vector.load %arg7[%36, %c0_36, %c0_37] : memref<8x8x128xf32, #tpu.memory_space<vmem>>, vector<1x8x128xf32>
    %38 = vector.shape_cast %37 : vector<1x8x128xf32> to vector<8x128xf32>
    %c0_38 = arith.constant 0 : index
    %c0_39 = arith.constant 0 : index
    %39 = vector.load %arg5[%c0_38, %c0_39] : memref<128x512xbf16, #tpu.memory_space<vmem>>, vector<128x128xbf16>
    %cst_40 = arith.constant dense<0.000000e+00> : vector<8x128xf32>
    %40 = tpu.matmul %34, %39, %cst_40 {dimension_numbers = #tpu.dot_dimension_numbers<[1], [0], [0], [1], [0, 0, 1, 1], [], []>} : vector<8x128xbf16>, vector<128x128xbf16>, vector<8x128xf32> -> vector<8x128xf32>
    %41 = arith.addf %38, %40 : vector<8x128xf32>
    %cst_41 = arith.constant 5.000000e-01 : f32
    %42 = vector.broadcast %cst_41 : f32 to vector<8x128xf32>
    %43 = arith.mulf %42, %41 : vector<8x128xf32>
    %44 = math.tanh %43 : vector<8x128xf32>
    %cst_42 = arith.constant 5.000000e-01 : f32
    %45 = vector.broadcast %cst_42 : f32 to vector<8x128xf32>
    %46 = arith.mulf %45, %44 : vector<8x128xf32>
    %cst_43 = arith.constant 5.000000e-01 : f32
    %47 = vector.broadcast %cst_43 : f32 to vector<8x128xf32>
    %48 = arith.addf %46, %47 : vector<8x128xf32>
    %49 = arith.index_cast %c0_i32_31 : i32 to index
    %c0_44 = arith.constant 0 : index
    %c0_45 = arith.constant 0 : index
    %50 = vector.load %arg8[%49, %c0_44, %c0_45] : memref<8x8x128xf32, #tpu.memory_space<vmem>>, vector<1x8x128xf32>
    %51 = vector.shape_cast %50 : vector<1x8x128xf32> to vector<8x128xf32>
    %c0_46 = arith.constant 0 : index
    %c128_47 = arith.constant 128 : index
    %52 = vector.load %arg5[%c0_46, %c128_47] : memref<128x512xbf16, #tpu.memory_space<vmem>>, vector<128x128xbf16>
    %cst_48 = arith.constant dense<0.000000e+00> : vector<8x128xf32>
    %53 = tpu.matmul %34, %52, %cst_48 {dimension_numbers = #tpu.dot_dimension_numbers<[1], [0], [0], [1], [0, 0, 1, 1], [], []>} : vector<8x128xbf16>, vector<128x128xbf16>, vector<8x128xf32> -> vector<8x128xf32>
    %54 = arith.addf %51, %53 : vector<8x128xf32>
    %cst_49 = arith.constant 5.000000e-01 : f32
    %55 = vector.broadcast %cst_49 : f32 to vector<8x128xf32>
    %56 = arith.mulf %55, %54 : vector<8x128xf32>
    %57 = math.tanh %56 : vector<8x128xf32>
    %cst_50 = arith.constant 5.000000e-01 : f32
    %58 = vector.broadcast %cst_50 : f32 to vector<8x128xf32>
    %59 = arith.mulf %58, %57 : vector<8x128xf32>
    %cst_51 = arith.constant 5.000000e-01 : f32
    %60 = vector.broadcast %cst_51 : f32 to vector<8x128xf32>
    %61 = arith.addf %59, %60 : vector<8x128xf32>
    %62 = arith.index_cast %c0_i32_31 : i32 to index
    %c0_52 = arith.constant 0 : index
    %c0_53 = arith.constant 0 : index
    %63 = vector.load %arg9[%62, %c0_52, %c0_53] : memref<8x8x128xf32, #tpu.memory_space<vmem>>, vector<1x8x128xf32>
    %64 = vector.shape_cast %63 : vector<1x8x128xf32> to vector<8x128xf32>
    %c0_54 = arith.constant 0 : index
    %c256_55 = arith.constant 256 : index
    %65 = vector.load %arg5[%c0_54, %c256_55] : memref<128x512xbf16, #tpu.memory_space<vmem>>, vector<128x128xbf16>
    %cst_56 = arith.constant dense<0.000000e+00> : vector<8x128xf32>
    %66 = tpu.matmul %34, %65, %cst_56 {dimension_numbers = #tpu.dot_dimension_numbers<[1], [0], [0], [1], [0, 0, 1, 1], [], []>} : vector<8x128xbf16>, vector<128x128xbf16>, vector<8x128xf32> -> vector<8x128xf32>
    %67 = arith.addf %64, %66 : vector<8x128xf32>
    %68 = math.tanh %67 : vector<8x128xf32>
    %69 = arith.index_cast %c0_i32_31 : i32 to index
    %c0_57 = arith.constant 0 : index
    %c0_58 = arith.constant 0 : index
    %70 = vector.load %arg10[%69, %c0_57, %c0_58] : memref<8x8x128xf32, #tpu.memory_space<vmem>>, vector<1x8x128xf32>
    %71 = vector.shape_cast %70 : vector<1x8x128xf32> to vector<8x128xf32>
    %c0_59 = arith.constant 0 : index
    %c384_60 = arith.constant 384 : index
    %72 = vector.load %arg5[%c0_59, %c384_60] : memref<128x512xbf16, #tpu.memory_space<vmem>>, vector<128x128xbf16>
    %cst_61 = arith.constant dense<0.000000e+00> : vector<8x128xf32>
    %73 = tpu.matmul %34, %72, %cst_61 {dimension_numbers = #tpu.dot_dimension_numbers<[1], [0], [0], [1], [0, 0, 1, 1], [], []>} : vector<8x128xbf16>, vector<128x128xbf16>, vector<8x128xf32> -> vector<8x128xf32>
    %74 = arith.addf %71, %73 : vector<8x128xf32>
    %cst_62 = arith.constant 5.000000e-01 : f32
    %75 = vector.broadcast %cst_62 : f32 to vector<8x128xf32>
    %76 = arith.mulf %75, %74 : vector<8x128xf32>
    %77 = math.tanh %76 : vector<8x128xf32>
    %cst_63 = arith.constant 5.000000e-01 : f32
    %78 = vector.broadcast %cst_63 : f32 to vector<8x128xf32>
    %79 = arith.mulf %78, %77 : vector<8x128xf32>
    %cst_64 = arith.constant 5.000000e-01 : f32
    %80 = vector.broadcast %cst_64 : f32 to vector<8x128xf32>
    %81 = arith.addf %79, %80 : vector<8x128xf32>
    %82 = arith.mulf %61, %35 : vector<8x128xf32>
    %83 = arith.mulf %48, %68 : vector<8x128xf32>
    %84 = arith.addf %82, %83 : vector<8x128xf32>
    %85 = math.tanh %84 : vector<8x128xf32>
    %86 = arith.mulf %81, %85 : vector<8x128xf32>
    %c0_65 = arith.constant 0 : index
    %c0_66 = arith.constant 0 : index
    %87 = vector.load %arg12[%c0_65, %c0_66] : memref<8x128xf32, #tpu.memory_space<vmem>>, vector<8x128xf32>
    tpu.vector_store %arg12[%c0_65, %c0_66], %84 {strides = array<i32>} : memref<8x128xf32, #tpu.memory_space<vmem>>, vector<8x128xf32>,
    %c0_67 = arith.constant 0 : index
    %c0_68 = arith.constant 0 : index
    %88 = vector.load %arg11[%c0_67, %c0_68] : memref<8x128xf32, #tpu.memory_space<vmem>>, vector<8x128xf32>
    tpu.vector_store %arg11[%c0_67, %c0_68], %86 {strides = array<i32>} : memref<8x128xf32, #tpu.memory_space<vmem>>, vector<8x128xf32>,
    %89 = arith.truncf %86 : vector<8x128xf32> to vector<8x128xbf16>
    %90 = arith.index_cast %c0_i32_31 : i32 to index
    %c0_69 = arith.constant 0 : index
    %c0_70 = arith.constant 0 : index
    %91 = vector.load %arg6[%90, %c0_69, %c0_70] : memref<8x8x128xbf16, #tpu.memory_space<vmem>>, vector<1x8x128xbf16>
    %92 = vector.shape_cast %91 : vector<1x8x128xbf16> to vector<8x128xbf16>
    %93 = vector.shape_cast %89 : vector<8x128xbf16> to vector<1x8x128xbf16>
    tpu.vector_store %arg6[%90, %c0_69, %c0_70], %93 {strides = array<i32>} : memref<8x8x128xbf16, #tpu.memory_space<vmem>>, vector<1x8x128xbf16>,
    %c1_i32 = arith.constant 1 : i32
    %c0_71 = arith.constant 0 : index
    %c0_72 = arith.constant 0 : index
    %94 = vector.load %arg11[%c0_71, %c0_72] : memref<8x128xf32, #tpu.memory_space<vmem>>, vector<8x128xf32>
    %95 = arith.truncf %94 : vector<8x128xf32> to vector<8x128xbf16>
    %c0_73 = arith.constant 0 : index
    %c0_74 = arith.constant 0 : index
    %96 = vector.load %arg12[%c0_73, %c0_74] : memref<8x128xf32, #tpu.memory_space<vmem>>, vector<8x128xf32>
    %97 = arith.index_cast %c1_i32 : i32 to index
    %c0_75 = arith.constant 0 : index
    %c0_76 = arith.constant 0 : index
    %98 = vector.load %arg7[%97, %c0_75, %c0_76] : memref<8x8x128xf32, #tpu.memory_space<vmem>>, vector<1x8x128xf32>
    %99 = vector.shape_cast %98 : vector<1x8x128xf32> to vector<8x128xf32>
    %c0_77 = arith.constant 0 : index
    %c0_78 = arith.constant 0 : index
    %100 = vector.load %arg5[%c0_77, %c0_78] : memref<128x512xbf16, #tpu.memory_space<vmem>>, vector<128x128xbf16>
    %cst_79 = arith.constant dense<0.000000e+00> : vector<8x128xf32>
    %101 = tpu.matmul %95, %100, %cst_79 {dimension_numbers = #tpu.dot_dimension_numbers<[1], [0], [0], [1], [0, 0, 1, 1], [], []>} : vector<8x128xbf16>, vector<128x128xbf16>, vector<8x128xf32> -> vector<8x128xf32>
    %102 = arith.addf %99, %101 : vector<8x128xf32>
    %cst_80 = arith.constant 5.000000e-01 : f32
    %103 = vector.broadcast %cst_80 : f32 to vector<8x128xf32>
    %104 = arith.mulf %103, %102 : vector<8x128xf32>
    %105 = math.tanh %104 : vector<8x128xf32>
    %cst_81 = arith.constant 5.000000e-01 : f32
    %106 = vector.broadcast %cst_81 : f32 to vector<8x128xf32>
    %107 = arith.mulf %106, %105 : vector<8x128xf32>
    %cst_82 = arith.constant 5.000000e-01 : f32
    %108 = vector.broadcast %cst_82 : f32 to vector<8x128xf32>
    %109 = arith.addf %107, %108 : vector<8x128xf32>
    %110 = arith.index_cast %c1_i32 : i32 to index
    %c0_83 = arith.constant 0 : index
    %c0_84 = arith.constant 0 : index
    %111 = vector.load %arg8[%110, %c0_83, %c0_84] : memref<8x8x128xf32, #tpu.memory_space<vmem>>, vector<1x8x128xf32>
    %112 = vector.shape_cast %111 : vector<1x8x128xf32> to vector<8x128xf32>
    %c0_85 = arith.constant 0 : index
    %c128_86 = arith.constant 128 : index
    %113 = vector.load %arg5[%c0_85, %c128_86] : memref<128x512xbf16, #tpu.memory_space<vmem>>, vector<128x128xbf16>
    %cst_87 = arith.constant dense<0.000000e+00> : vector<8x128xf32>
    %114 = tpu.matmul %95, %113, %cst_87 {dimension_numbers = #tpu.dot_dimension_numbers<[1], [0], [0], [1], [0, 0, 1, 1], [], []>} : vector<8x128xbf16>, vector<128x128xbf16>, vector<8x128xf32> -> vector<8x128xf32>
    %115 = arith.addf %112, %114 : vector<8x128xf32>
    %cst_88 = arith.constant 5.000000e-01 : f32
    %116 = vector.broadcast %cst_88 : f32 to vector<8x128xf32>
    %117 = arith.mulf %116, %115 : vector<8x128xf32>
    %118 = math.tanh %117 : vector<8x128xf32>
    %cst_89 = arith.constant 5.000000e-01 : f32
    %119 = vector.broadcast %cst_89 : f32 to vector<8x128xf32>
    %120 = arith.mulf %119, %118 : vector<8x128xf32>
    %cst_90 = arith.constant 5.000000e-01 : f32
    %121 = vector.broadcast %cst_90 : f32 to vector<8x128xf32>
    %122 = arith.addf %120, %121 : vector<8x128xf32>
    %123 = arith.index_cast %c1_i32 : i32 to index
    %c0_91 = arith.constant 0 : index
    %c0_92 = arith.constant 0 : index
    %124 = vector.load %arg9[%123, %c0_91, %c0_92] : memref<8x8x128xf32, #tpu.memory_space<vmem>>, vector<1x8x128xf32>
    %125 = vector.shape_cast %124 : vector<1x8x128xf32> to vector<8x128xf32>
    %c0_93 = arith.constant 0 : index
    %c256_94 = arith.constant 256 : index
    %126 = vector.load %arg5[%c0_93, %c256_94] : memref<128x512xbf16, #tpu.memory_space<vmem>>, vector<128x128xbf16>
    %cst_95 = arith.constant dense<0.000000e+00> : vector<8x128xf32>
    %127 = tpu.matmul %95, %126, %cst_95 {dimension_numbers = #tpu.dot_dimension_numbers<[1], [0], [0], [1], [0, 0, 1, 1], [], []>} : vector<8x128xbf16>, vector<128x128xbf16>, vector<8x128xf32> -> vector<8x128xf32>
    %128 = arith.addf %125, %127 : vector<8x128xf32>
    %129 = math.tanh %128 : vector<8x128xf32>
    %130 = arith.index_cast %c1_i32 : i32 to index
    %c0_96 = arith.constant 0 : index
    %c0_97 = arith.constant 0 : index
    %131 = vector.load %arg10[%130, %c0_96, %c0_97] : memref<8x8x128xf32, #tpu.memory_space<vmem>>, vector<1x8x128xf32>
    %132 = vector.shape_cast %131 : vector<1x8x128xf32> to vector<8x128xf32>
    %c0_98 = arith.constant 0 : index
    %c384_99 = arith.constant 384 : index
    %133 = vector.load %arg5[%c0_98, %c384_99] : memref<128x512xbf16, #tpu.memory_space<vmem>>, vector<128x128xbf16>
    %cst_100 = arith.constant dense<0.000000e+00> : vector<8x128xf32>
    %134 = tpu.matmul %95, %133, %cst_100 {dimension_numbers = #tpu.dot_dimension_numbers<[1], [0], [0], [1], [0, 0, 1, 1], [], []>} : vector<8x128xbf16>, vector<128x128xbf16>, vector<8x128xf32> -> vector<8x128xf32>
    %135 = arith.addf %132, %134 : vector<8x128xf32>
    %cst_101 = arith.constant 5.000000e-01 : f32
    %136 = vector.broadcast %cst_101 : f32 to vector<8x128xf32>
    %137 = arith.mulf %136, %135 : vector<8x128xf32>
    %138 = math.tanh %137 : vector<8x128xf32>
    %cst_102 = arith.constant 5.000000e-01 : f32
    %139 = vector.broadcast %cst_102 : f32 to vector<8x128xf32>
    %140 = arith.mulf %139, %138 : vector<8x128xf32>
    %cst_103 = arith.constant 5.000000e-01 : f32
    %141 = vector.broadcast %cst_103 : f32 to vector<8x128xf32>
    %142 = arith.addf %140, %141 : vector<8x128xf32>
    %143 = arith.mulf %122, %96 : vector<8x128xf32>
    %144 = arith.mulf %109, %129 : vector<8x128xf32>
    %145 = arith.addf %143, %144 : vector<8x128xf32>
    %146 = math.tanh %145 : vector<8x128xf32>
    %147 = arith.mulf %142, %146 : vector<8x128xf32>
    %c0_104 = arith.constant 0 : index
    %c0_105 = arith.constant 0 : index
    %148 = vector.load %arg12[%c0_104, %c0_105] : memref<8x128xf32, #tpu.memory_space<vmem>>, vector<8x128xf32>
    tpu.vector_store %arg12[%c0_104, %c0_105], %145 {strides = array<i32>} : memref<8x128xf32, #tpu.memory_space<vmem>>, vector<8x128xf32>,
    %c0_106 = arith.constant 0 : index
    %c0_107 = arith.constant 0 : index
    %149 = vector.load %arg11[%c0_106, %c0_107] : memref<8x128xf32, #tpu.memory_space<vmem>>, vector<8x128xf32>
    tpu.vector_store %arg11[%c0_106, %c0_107], %147 {strides = array<i32>} : memref<8x128xf32, #tpu.memory_space<vmem>>, vector<8x128xf32>,
    %150 = arith.truncf %147 : vector<8x128xf32> to vector<8x128xbf16>
    %151 = arith.index_cast %c1_i32 : i32 to index
    %c0_108 = arith.constant 0 : index
    %c0_109 = arith.constant 0 : index
    %152 = vector.load %arg6[%151, %c0_108, %c0_109] : memref<8x8x128xbf16, #tpu.memory_space<vmem>>, vector<1x8x128xbf16>
    %153 = vector.shape_cast %152 : vector<1x8x128xbf16> to vector<8x128xbf16>
    %154 = vector.shape_cast %150 : vector<8x128xbf16> to vector<1x8x128xbf16>
    tpu.vector_store %arg6[%151, %c0_108, %c0_109], %154 {strides = array<i32>} : memref<8x8x128xbf16, #tpu.memory_space<vmem>>, vector<1x8x128xbf16>,
    %c2_i32 = arith.constant 2 : i32
    %c0_110 = arith.constant 0 : index
    %c0_111 = arith.constant 0 : index
    %155 = vector.load %arg11[%c0_110, %c0_111] : memref<8x128xf32, #tpu.memory_space<vmem>>, vector<8x128xf32>
    %156 = arith.truncf %155 : vector<8x128xf32> to vector<8x128xbf16>
    %c0_112 = arith.constant 0 : index
    %c0_113 = arith.constant 0 : index
    %157 = vector.load %arg12[%c0_112, %c0_113] : memref<8x128xf32, #tpu.memory_space<vmem>>, vector<8x128xf32>
    %158 = arith.index_cast %c2_i32 : i32 to index
    %c0_114 = arith.constant 0 : index
    %c0_115 = arith.constant 0 : index
    %159 = vector.load %arg7[%158, %c0_114, %c0_115] : memref<8x8x128xf32, #tpu.memory_space<vmem>>, vector<1x8x128xf32>
    %160 = vector.shape_cast %159 : vector<1x8x128xf32> to vector<8x128xf32>
    %c0_116 = arith.constant 0 : index
    %c0_117 = arith.constant 0 : index
    %161 = vector.load %arg5[%c0_116, %c0_117] : memref<128x512xbf16, #tpu.memory_space<vmem>>, vector<128x128xbf16>
    %cst_118 = arith.constant dense<0.000000e+00> : vector<8x128xf32>
    %162 = tpu.matmul %156, %161, %cst_118 {dimension_numbers = #tpu.dot_dimension_numbers<[1], [0], [0], [1], [0, 0, 1, 1], [], []>} : vector<8x128xbf16>, vector<128x128xbf16>, vector<8x128xf32> -> vector<8x128xf32>
    %163 = arith.addf %160, %162 : vector<8x128xf32>
    %cst_119 = arith.constant 5.000000e-01 : f32
    %164 = vector.broadcast %cst_119 : f32 to vector<8x128xf32>
    %165 = arith.mulf %164, %163 : vector<8x128xf32>
    %166 = math.tanh %165 : vector<8x128xf32>
    %cst_120 = arith.constant 5.000000e-01 : f32
    %167 = vector.broadcast %cst_120 : f32 to vector<8x128xf32>
    %168 = arith.mulf %167, %166 : vector<8x128xf32>
    %cst_121 = arith.constant 5.000000e-01 : f32
    %169 = vector.broadcast %cst_121 : f32 to vector<8x128xf32>
    %170 = arith.addf %168, %169 : vector<8x128xf32>
    %171 = arith.index_cast %c2_i32 : i32 to index
    %c0_122 = arith.constant 0 : index
    %c0_123 = arith.constant 0 : index
    %172 = vector.load %arg8[%171, %c0_122, %c0_123] : memref<8x8x128xf32, #tpu.memory_space<vmem>>, vector<1x8x128xf32>
    %173 = vector.shape_cast %172 : vector<1x8x128xf32> to vector<8x128xf32>
    %c0_124 = arith.constant 0 : index
    %c128_125 = arith.constant 128 : index
    %174 = vector.load %arg5[%c0_124, %c128_125] : memref<128x512xbf16, #tpu.memory_space<vmem>>, vector<128x128xbf16>
    %cst_126 = arith.constant dense<0.000000e+00> : vector<8x128xf32>
    %175 = tpu.matmul %156, %174, %cst_126 {dimension_numbers = #tpu.dot_dimension_numbers<[1], [0], [0], [1], [0, 0, 1, 1], [], []>} : vector<8x128xbf16>, vector<128x128xbf16>, vector<8x128xf32> -> vector<8x128xf32>
    %176 = arith.addf %173, %175 : vector<8x128xf32>
    %cst_127 = arith.constant 5.000000e-01 : f32
    %177 = vector.broadcast %cst_127 : f32 to vector<8x128xf32>
    %178 = arith.mulf %177, %176 : vector<8x128xf32>
    %179 = math.tanh %178 : vector<8x128xf32>
    %cst_128 = arith.constant 5.000000e-01 : f32
    %180 = vector.broadcast %cst_128 : f32 to vector<8x128xf32>
    %181 = arith.mulf %180, %179 : vector<8x128xf32>
    %cst_129 = arith.constant 5.000000e-01 : f32
    %182 = vector.broadcast %cst_129 : f32 to vector<8x128xf32>
    %183 = arith.addf %181, %182 : vector<8x128xf32>
    %184 = arith.index_cast %c2_i32 : i32 to index
    %c0_130 = arith.constant 0 : index
    %c0_131 = arith.constant 0 : index
    %185 = vector.load %arg9[%184, %c0_130, %c0_131] : memref<8x8x128xf32, #tpu.memory_space<vmem>>, vector<1x8x128xf32>
    %186 = vector.shape_cast %185 : vector<1x8x128xf32> to vector<8x128xf32>
    %c0_132 = arith.constant 0 : index
    %c256_133 = arith.constant 256 : index
    %187 = vector.load %arg5[%c0_132, %c256_133] : memref<128x512xbf16, #tpu.memory_space<vmem>>, vector<128x128xbf16>
    %cst_134 = arith.constant dense<0.000000e+00> : vector<8x128xf32>
    %188 = tpu.matmul %156, %187, %cst_134 {dimension_numbers = #tpu.dot_dimension_numbers<[1], [0], [0], [1], [0, 0, 1, 1], [], []>} : vector<8x128xbf16>, vector<128x128xbf16>, vector<8x128xf32> -> vector<8x128xf32>
    %189 = arith.addf %186, %188 : vector<8x128xf32>
    %190 = math.tanh %189 : vector<8x128xf32>
    %191 = arith.index_cast %c2_i32 : i32 to index
    %c0_135 = arith.constant 0 : index
    %c0_136 = arith.constant 0 : index
    %192 = vector.load %arg10[%191, %c0_135, %c0_136] : memref<8x8x128xf32, #tpu.memory_space<vmem>>, vector<1x8x128xf32>
    %193 = vector.shape_cast %192 : vector<1x8x128xf32> to vector<8x128xf32>
    %c0_137 = arith.constant 0 : index
    %c384_138 = arith.constant 384 : index
    %194 = vector.load %arg5[%c0_137, %c384_138] : memref<128x512xbf16, #tpu.memory_space<vmem>>, vector<128x128xbf16>
    %cst_139 = arith.constant dense<0.000000e+00> : vector<8x128xf32>
    %195 = tpu.matmul %156, %194, %cst_139 {dimension_numbers = #tpu.dot_dimension_numbers<[1], [0], [0], [1], [0, 0, 1, 1], [], []>} : vector<8x128xbf16>, vector<128x128xbf16>, vector<8x128xf32> -> vector<8x128xf32>
    %196 = arith.addf %193, %195 : vector<8x128xf32>
    %cst_140 = arith.constant 5.000000e-01 : f32
    %197 = vector.broadcast %cst_140 : f32 to vector<8x128xf32>
    %198 = arith.mulf %197, %196 : vector<8x128xf32>
    %199 = math.tanh %198 : vector<8x128xf32>
    %cst_141 = arith.constant 5.000000e-01 : f32
    %200 = vector.broadcast %cst_141 : f32 to vector<8x128xf32>
    %201 = arith.mulf %200, %199 : vector<8x128xf32>
    %cst_142 = arith.constant 5.000000e-01 : f32
    %202 = vector.broadcast %cst_142 : f32 to vector<8x128xf32>
    %203 = arith.addf %201, %202 : vector<8x128xf32>
    %204 = arith.mulf %183, %157 : vector<8x128xf32>
    %205 = arith.mulf %170, %190 : vector<8x128xf32>
    %206 = arith.addf %204, %205 : vector<8x128xf32>
    %207 = math.tanh %206 : vector<8x128xf32>
    %208 = arith.mulf %203, %207 : vector<8x128xf32>
    %c0_143 = arith.constant 0 : index
    %c0_144 = arith.constant 0 : index
    %209 = vector.load %arg12[%c0_143, %c0_144] : memref<8x128xf32, #tpu.memory_space<vmem>>, vector<8x128xf32>
    tpu.vector_store %arg12[%c0_143, %c0_144], %206 {strides = array<i32>} : memref<8x128xf32, #tpu.memory_space<vmem>>, vector<8x128xf32>,
    %c0_145 = arith.constant 0 : index
    %c0_146 = arith.constant 0 : index
    %210 = vector.load %arg11[%c0_145, %c0_146] : memref<8x128xf32, #tpu.memory_space<vmem>>, vector<8x128xf32>
    tpu.vector_store %arg11[%c0_145, %c0_146], %208 {strides = array<i32>} : memref<8x128xf32, #tpu.memory_space<vmem>>, vector<8x128xf32>,
    %211 = arith.truncf %208 : vector<8x128xf32> to vector<8x128xbf16>
    %212 = arith.index_cast %c2_i32 : i32 to index
    %c0_147 = arith.constant 0 : index
    %c0_148 = arith.constant 0 : index
    %213 = vector.load %arg6[%212, %c0_147, %c0_148] : memref<8x8x128xbf16, #tpu.memory_space<vmem>>, vector<1x8x128xbf16>
    %214 = vector.shape_cast %213 : vector<1x8x128xbf16> to vector<8x128xbf16>
    %215 = vector.shape_cast %211 : vector<8x128xbf16> to vector<1x8x128xbf16>
    tpu.vector_store %arg6[%212, %c0_147, %c0_148], %215 {strides = array<i32>} : memref<8x8x128xbf16, #tpu.memory_space<vmem>>, vector<1x8x128xbf16>,
    %c3_i32 = arith.constant 3 : i32
    %c0_149 = arith.constant 0 : index
    %c0_150 = arith.constant 0 : index
    %216 = vector.load %arg11[%c0_149, %c0_150] : memref<8x128xf32, #tpu.memory_space<vmem>>, vector<8x128xf32>
    %217 = arith.truncf %216 : vector<8x128xf32> to vector<8x128xbf16>
    %c0_151 = arith.constant 0 : index
    %c0_152 = arith.constant 0 : index
    %218 = vector.load %arg12[%c0_151, %c0_152] : memref<8x128xf32, #tpu.memory_space<vmem>>, vector<8x128xf32>
    %219 = arith.index_cast %c3_i32 : i32 to index
    %c0_153 = arith.constant 0 : index
    %c0_154 = arith.constant 0 : index
    %220 = vector.load %arg7[%219, %c0_153, %c0_154] : memref<8x8x128xf32, #tpu.memory_space<vmem>>, vector<1x8x128xf32>
    %221 = vector.shape_cast %220 : vector<1x8x128xf32> to vector<8x128xf32>
    %c0_155 = arith.constant 0 : index
    %c0_156 = arith.constant 0 : index
    %222 = vector.load %arg5[%c0_155, %c0_156] : memref<128x512xbf16, #tpu.memory_space<vmem>>, vector<128x128xbf16>
    %cst_157 = arith.constant dense<0.000000e+00> : vector<8x128xf32>
    %223 = tpu.matmul %217, %222, %cst_157 {dimension_numbers = #tpu.dot_dimension_numbers<[1], [0], [0], [1], [0, 0, 1, 1], [], []>} : vector<8x128xbf16>, vector<128x128xbf16>, vector<8x128xf32> -> vector<8x128xf32>
    %224 = arith.addf %221, %223 : vector<8x128xf32>
    %cst_158 = arith.constant 5.000000e-01 : f32
    %225 = vector.broadcast %cst_158 : f32 to vector<8x128xf32>
    %226 = arith.mulf %225, %224 : vector<8x128xf32>
    %227 = math.tanh %226 : vector<8x128xf32>
    %cst_159 = arith.constant 5.000000e-01 : f32
    %228 = vector.broadcast %cst_159 : f32 to vector<8x128xf32>
    %229 = arith.mulf %228, %227 : vector<8x128xf32>
    %cst_160 = arith.constant 5.000000e-01 : f32
    %230 = vector.broadcast %cst_160 : f32 to vector<8x128xf32>
    %231 = arith.addf %229, %230 : vector<8x128xf32>
    %232 = arith.index_cast %c3_i32 : i32 to index
    %c0_161 = arith.constant 0 : index
    %c0_162 = arith.constant 0 : index
    %233 = vector.load %arg8[%232, %c0_161, %c0_162] : memref<8x8x128xf32, #tpu.memory_space<vmem>>, vector<1x8x128xf32>
    %234 = vector.shape_cast %233 : vector<1x8x128xf32> to vector<8x128xf32>
    %c0_163 = arith.constant 0 : index
    %c128_164 = arith.constant 128 : index
    %235 = vector.load %arg5[%c0_163, %c128_164] : memref<128x512xbf16, #tpu.memory_space<vmem>>, vector<128x128xbf16>
    %cst_165 = arith.constant dense<0.000000e+00> : vector<8x128xf32>
    %236 = tpu.matmul %217, %235, %cst_165 {dimension_numbers = #tpu.dot_dimension_numbers<[1], [0], [0], [1], [0, 0, 1, 1], [], []>} : vector<8x128xbf16>, vector<128x128xbf16>, vector<8x128xf32> -> vector<8x128xf32>
    %237 = arith.addf %234, %236 : vector<8x128xf32>
    %cst_166 = arith.constant 5.000000e-01 : f32
    %238 = vector.broadcast %cst_166 : f32 to vector<8x128xf32>
    %239 = arith.mulf %238, %237 : vector<8x128xf32>
    %240 = math.tanh %239 : vector<8x128xf32>
    %cst_167 = arith.constant 5.000000e-01 : f32
    %241 = vector.broadcast %cst_167 : f32 to vector<8x128xf32>
    %242 = arith.mulf %241, %240 : vector<8x128xf32>
    %cst_168 = arith.constant 5.000000e-01 : f32
    %243 = vector.broadcast %cst_168 : f32 to vector<8x128xf32>
    %244 = arith.addf %242, %243 : vector<8x128xf32>
    %245 = arith.index_cast %c3_i32 : i32 to index
    %c0_169 = arith.constant 0 : index
    %c0_170 = arith.constant 0 : index
    %246 = vector.load %arg9[%245, %c0_169, %c0_170] : memref<8x8x128xf32, #tpu.memory_space<vmem>>, vector<1x8x128xf32>
    %247 = vector.shape_cast %246 : vector<1x8x128xf32> to vector<8x128xf32>
    %c0_171 = arith.constant 0 : index
    %c256_172 = arith.constant 256 : index
    %248 = vector.load %arg5[%c0_171, %c256_172] : memref<128x512xbf16, #tpu.memory_space<vmem>>, vector<128x128xbf16>
    %cst_173 = arith.constant dense<0.000000e+00> : vector<8x128xf32>
    %249 = tpu.matmul %217, %248, %cst_173 {dimension_numbers = #tpu.dot_dimension_numbers<[1], [0], [0], [1], [0, 0, 1, 1], [], []>} : vector<8x128xbf16>, vector<128x128xbf16>, vector<8x128xf32> -> vector<8x128xf32>
    %250 = arith.addf %247, %249 : vector<8x128xf32>
    %251 = math.tanh %250 : vector<8x128xf32>
    %252 = arith.index_cast %c3_i32 : i32 to index
    %c0_174 = arith.constant 0 : index
    %c0_175 = arith.constant 0 : index
    %253 = vector.load %arg10[%252, %c0_174, %c0_175] : memref<8x8x128xf32, #tpu.memory_space<vmem>>, vector<1x8x128xf32>
    %254 = vector.shape_cast %253 : vector<1x8x128xf32> to vector<8x128xf32>
    %c0_176 = arith.constant 0 : index
    %c384_177 = arith.constant 384 : index
    %255 = vector.load %arg5[%c0_176, %c384_177] : memref<128x512xbf16, #tpu.memory_space<vmem>>, vector<128x128xbf16>
    %cst_178 = arith.constant dense<0.000000e+00> : vector<8x128xf32>
    %256 = tpu.matmul %217, %255, %cst_178 {dimension_numbers = #tpu.dot_dimension_numbers<[1], [0], [0], [1], [0, 0, 1, 1], [], []>} : vector<8x128xbf16>, vector<128x128xbf16>, vector<8x128xf32> -> vector<8x128xf32>
    %257 = arith.addf %254, %256 : vector<8x128xf32>
    %cst_179 = arith.constant 5.000000e-01 : f32
    %258 = vector.broadcast %cst_179 : f32 to vector<8x128xf32>
    %259 = arith.mulf %258, %257 : vector<8x128xf32>
    %260 = math.tanh %259 : vector<8x128xf32>
    %cst_180 = arith.constant 5.000000e-01 : f32
    %261 = vector.broadcast %cst_180 : f32 to vector<8x128xf32>
    %262 = arith.mulf %261, %260 : vector<8x128xf32>
    %cst_181 = arith.constant 5.000000e-01 : f32
    %263 = vector.broadcast %cst_181 : f32 to vector<8x128xf32>
    %264 = arith.addf %262, %263 : vector<8x128xf32>
    %265 = arith.mulf %244, %218 : vector<8x128xf32>
    %266 = arith.mulf %231, %251 : vector<8x128xf32>
    %267 = arith.addf %265, %266 : vector<8x128xf32>
    %268 = math.tanh %267 : vector<8x128xf32>
    %269 = arith.mulf %264, %268 : vector<8x128xf32>
    %c0_182 = arith.constant 0 : index
    %c0_183 = arith.constant 0 : index
    %270 = vector.load %arg12[%c0_182, %c0_183] : memref<8x128xf32, #tpu.memory_space<vmem>>, vector<8x128xf32>
    tpu.vector_store %arg12[%c0_182, %c0_183], %267 {strides = array<i32>} : memref<8x128xf32, #tpu.memory_space<vmem>>, vector<8x128xf32>,
    %c0_184 = arith.constant 0 : index
    %c0_185 = arith.constant 0 : index
    %271 = vector.load %arg11[%c0_184, %c0_185] : memref<8x128xf32, #tpu.memory_space<vmem>>, vector<8x128xf32>
    tpu.vector_store %arg11[%c0_184, %c0_185], %269 {strides = array<i32>} : memref<8x128xf32, #tpu.memory_space<vmem>>, vector<8x128xf32>,
    %272 = arith.truncf %269 : vector<8x128xf32> to vector<8x128xbf16>
    %273 = arith.index_cast %c3_i32 : i32 to index
    %c0_186 = arith.constant 0 : index
    %c0_187 = arith.constant 0 : index
    %274 = vector.load %arg6[%273, %c0_186, %c0_187] : memref<8x8x128xbf16, #tpu.memory_space<vmem>>, vector<1x8x128xbf16>
    %275 = vector.shape_cast %274 : vector<1x8x128xbf16> to vector<8x128xbf16>
    %276 = vector.shape_cast %272 : vector<8x128xbf16> to vector<1x8x128xbf16>
    tpu.vector_store %arg6[%273, %c0_186, %c0_187], %276 {strides = array<i32>} : memref<8x8x128xbf16, #tpu.memory_space<vmem>>, vector<1x8x128xbf16>,
    %c4_i32 = arith.constant 4 : i32
    %c0_188 = arith.constant 0 : index
    %c0_189 = arith.constant 0 : index
    %277 = vector.load %arg11[%c0_188, %c0_189] : memref<8x128xf32, #tpu.memory_space<vmem>>, vector<8x128xf32>
    %278 = arith.truncf %277 : vector<8x128xf32> to vector<8x128xbf16>
    %c0_190 = arith.constant 0 : index
    %c0_191 = arith.constant 0 : index
    %279 = vector.load %arg12[%c0_190, %c0_191] : memref<8x128xf32, #tpu.memory_space<vmem>>, vector<8x128xf32>
    %280 = arith.index_cast %c4_i32 : i32 to index
    %c0_192 = arith.constant 0 : index
    %c0_193 = arith.constant 0 : index
    %281 = vector.load %arg7[%280, %c0_192, %c0_193] : memref<8x8x128xf32, #tpu.memory_space<vmem>>, vector<1x8x128xf32>
    %282 = vector.shape_cast %281 : vector<1x8x128xf32> to vector<8x128xf32>
    %c0_194 = arith.constant 0 : index
    %c0_195 = arith.constant 0 : index
    %283 = vector.load %arg5[%c0_194, %c0_195] : memref<128x512xbf16, #tpu.memory_space<vmem>>, vector<128x128xbf16>
    %cst_196 = arith.constant dense<0.000000e+00> : vector<8x128xf32>
    %284 = tpu.matmul %278, %283, %cst_196 {dimension_numbers = #tpu.dot_dimension_numbers<[1], [0], [0], [1], [0, 0, 1, 1], [], []>} : vector<8x128xbf16>, vector<128x128xbf16>, vector<8x128xf32> -> vector<8x128xf32>
    %285 = arith.addf %282, %284 : vector<8x128xf32>
    %cst_197 = arith.constant 5.000000e-01 : f32
    %286 = vector.broadcast %cst_197 : f32 to vector<8x128xf32>
    %287 = arith.mulf %286, %285 : vector<8x128xf32>
    %288 = math.tanh %287 : vector<8x128xf32>
    %cst_198 = arith.constant 5.000000e-01 : f32
    %289 = vector.broadcast %cst_198 : f32 to vector<8x128xf32>
    %290 = arith.mulf %289, %288 : vector<8x128xf32>
    %cst_199 = arith.constant 5.000000e-01 : f32
    %291 = vector.broadcast %cst_199 : f32 to vector<8x128xf32>
    %292 = arith.addf %290, %291 : vector<8x128xf32>
    %293 = arith.index_cast %c4_i32 : i32 to index
    %c0_200 = arith.constant 0 : index
    %c0_201 = arith.constant 0 : index
    %294 = vector.load %arg8[%293, %c0_200, %c0_201] : memref<8x8x128xf32, #tpu.memory_space<vmem>>, vector<1x8x128xf32>
    %295 = vector.shape_cast %294 : vector<1x8x128xf32> to vector<8x128xf32>
    %c0_202 = arith.constant 0 : index
    %c128_203 = arith.constant 128 : index
    %296 = vector.load %arg5[%c0_202, %c128_203] : memref<128x512xbf16, #tpu.memory_space<vmem>>, vector<128x128xbf16>
    %cst_204 = arith.constant dense<0.000000e+00> : vector<8x128xf32>
    %297 = tpu.matmul %278, %296, %cst_204 {dimension_numbers = #tpu.dot_dimension_numbers<[1], [0], [0], [1], [0, 0, 1, 1], [], []>} : vector<8x128xbf16>, vector<128x128xbf16>, vector<8x128xf32> -> vector<8x128xf32>
    %298 = arith.addf %295, %297 : vector<8x128xf32>
    %cst_205 = arith.constant 5.000000e-01 : f32
    %299 = vector.broadcast %cst_205 : f32 to vector<8x128xf32>
    %300 = arith.mulf %299, %298 : vector<8x128xf32>
    %301 = math.tanh %300 : vector<8x128xf32>
    %cst_206 = arith.constant 5.000000e-01 : f32
    %302 = vector.broadcast %cst_206 : f32 to vector<8x128xf32>
    %303 = arith.mulf %302, %301 : vector<8x128xf32>
    %cst_207 = arith.constant 5.000000e-01 : f32
    %304 = vector.broadcast %cst_207 : f32 to vector<8x128xf32>
    %305 = arith.addf %303, %304 : vector<8x128xf32>
    %306 = arith.index_cast %c4_i32 : i32 to index
    %c0_208 = arith.constant 0 : index
    %c0_209 = arith.constant 0 : index
    %307 = vector.load %arg9[%306, %c0_208, %c0_209] : memref<8x8x128xf32, #tpu.memory_space<vmem>>, vector<1x8x128xf32>
    %308 = vector.shape_cast %307 : vector<1x8x128xf32> to vector<8x128xf32>
    %c0_210 = arith.constant 0 : index
    %c256_211 = arith.constant 256 : index
    %309 = vector.load %arg5[%c0_210, %c256_211] : memref<128x512xbf16, #tpu.memory_space<vmem>>, vector<128x128xbf16>
    %cst_212 = arith.constant dense<0.000000e+00> : vector<8x128xf32>
    %310 = tpu.matmul %278, %309, %cst_212 {dimension_numbers = #tpu.dot_dimension_numbers<[1], [0], [0], [1], [0, 0, 1, 1], [], []>} : vector<8x128xbf16>, vector<128x128xbf16>, vector<8x128xf32> -> vector<8x128xf32>
    %311 = arith.addf %308, %310 : vector<8x128xf32>
    %312 = math.tanh %311 : vector<8x128xf32>
    %313 = arith.index_cast %c4_i32 : i32 to index
    %c0_213 = arith.constant 0 : index
    %c0_214 = arith.constant 0 : index
    %314 = vector.load %arg10[%313, %c0_213, %c0_214] : memref<8x8x128xf32, #tpu.memory_space<vmem>>, vector<1x8x128xf32>
    %315 = vector.shape_cast %314 : vector<1x8x128xf32> to vector<8x128xf32>
    %c0_215 = arith.constant 0 : index
    %c384_216 = arith.constant 384 : index
    %316 = vector.load %arg5[%c0_215, %c384_216] : memref<128x512xbf16, #tpu.memory_space<vmem>>, vector<128x128xbf16>
    %cst_217 = arith.constant dense<0.000000e+00> : vector<8x128xf32>
    %317 = tpu.matmul %278, %316, %cst_217 {dimension_numbers = #tpu.dot_dimension_numbers<[1], [0], [0], [1], [0, 0, 1, 1], [], []>} : vector<8x128xbf16>, vector<128x128xbf16>, vector<8x128xf32> -> vector<8x128xf32>
    %318 = arith.addf %315, %317 : vector<8x128xf32>
    %cst_218 = arith.constant 5.000000e-01 : f32
    %319 = vector.broadcast %cst_218 : f32 to vector<8x128xf32>
    %320 = arith.mulf %319, %318 : vector<8x128xf32>
    %321 = math.tanh %320 : vector<8x128xf32>
    %cst_219 = arith.constant 5.000000e-01 : f32
    %322 = vector.broadcast %cst_219 : f32 to vector<8x128xf32>
    %323 = arith.mulf %322, %321 : vector<8x128xf32>
    %cst_220 = arith.constant 5.000000e-01 : f32
    %324 = vector.broadcast %cst_220 : f32 to vector<8x128xf32>
    %325 = arith.addf %323, %324 : vector<8x128xf32>
    %326 = arith.mulf %305, %279 : vector<8x128xf32>
    %327 = arith.mulf %292, %312 : vector<8x128xf32>
    %328 = arith.addf %326, %327 : vector<8x128xf32>
    %329 = math.tanh %328 : vector<8x128xf32>
    %330 = arith.mulf %325, %329 : vector<8x128xf32>
    %c0_221 = arith.constant 0 : index
    %c0_222 = arith.constant 0 : index
    %331 = vector.load %arg12[%c0_221, %c0_222] : memref<8x128xf32, #tpu.memory_space<vmem>>, vector<8x128xf32>
    tpu.vector_store %arg12[%c0_221, %c0_222], %328 {strides = array<i32>} : memref<8x128xf32, #tpu.memory_space<vmem>>, vector<8x128xf32>,
    %c0_223 = arith.constant 0 : index
    %c0_224 = arith.constant 0 : index
    %332 = vector.load %arg11[%c0_223, %c0_224] : memref<8x128xf32, #tpu.memory_space<vmem>>, vector<8x128xf32>
    tpu.vector_store %arg11[%c0_223, %c0_224], %330 {strides = array<i32>} : memref<8x128xf32, #tpu.memory_space<vmem>>, vector<8x128xf32>,
    %333 = arith.truncf %330 : vector<8x128xf32> to vector<8x128xbf16>
    %334 = arith.index_cast %c4_i32 : i32 to index
    %c0_225 = arith.constant 0 : index
    %c0_226 = arith.constant 0 : index
    %335 = vector.load %arg6[%334, %c0_225, %c0_226] : memref<8x8x128xbf16, #tpu.memory_space<vmem>>, vector<1x8x128xbf16>
    %336 = vector.shape_cast %335 : vector<1x8x128xbf16> to vector<8x128xbf16>
    %337 = vector.shape_cast %333 : vector<8x128xbf16> to vector<1x8x128xbf16>
    tpu.vector_store %arg6[%334, %c0_225, %c0_226], %337 {strides = array<i32>} : memref<8x8x128xbf16, #tpu.memory_space<vmem>>, vector<1x8x128xbf16>,
    %c5_i32 = arith.constant 5 : i32
    %c0_227 = arith.constant 0 : index
    %c0_228 = arith.constant 0 : index
    %338 = vector.load %arg11[%c0_227, %c0_228] : memref<8x128xf32, #tpu.memory_space<vmem>>, vector<8x128xf32>
    %339 = arith.truncf %338 : vector<8x128xf32> to vector<8x128xbf16>
    %c0_229 = arith.constant 0 : index
    %c0_230 = arith.constant 0 : index
    %340 = vector.load %arg12[%c0_229, %c0_230] : memref<8x128xf32, #tpu.memory_space<vmem>>, vector<8x128xf32>
    %341 = arith.index_cast %c5_i32 : i32 to index
    %c0_231 = arith.constant 0 : index
    %c0_232 = arith.constant 0 : index
    %342 = vector.load %arg7[%341, %c0_231, %c0_232] : memref<8x8x128xf32, #tpu.memory_space<vmem>>, vector<1x8x128xf32>
    %343 = vector.shape_cast %342 : vector<1x8x128xf32> to vector<8x128xf32>
    %c0_233 = arith.constant 0 : index
    %c0_234 = arith.constant 0 : index
    %344 = vector.load %arg5[%c0_233, %c0_234] : memref<128x512xbf16, #tpu.memory_space<vmem>>, vector<128x128xbf16>
    %cst_235 = arith.constant dense<0.000000e+00> : vector<8x128xf32>
    %345 = tpu.matmul %339, %344, %cst_235 {dimension_numbers = #tpu.dot_dimension_numbers<[1], [0], [0], [1], [0, 0, 1, 1], [], []>} : vector<8x128xbf16>, vector<128x128xbf16>, vector<8x128xf32> -> vector<8x128xf32>
    %346 = arith.addf %343, %345 : vector<8x128xf32>
    %cst_236 = arith.constant 5.000000e-01 : f32
    %347 = vector.broadcast %cst_236 : f32 to vector<8x128xf32>
    %348 = arith.mulf %347, %346 : vector<8x128xf32>
    %349 = math.tanh %348 : vector<8x128xf32>
    %cst_237 = arith.constant 5.000000e-01 : f32
    %350 = vector.broadcast %cst_237 : f32 to vector<8x128xf32>
    %351 = arith.mulf %350, %349 : vector<8x128xf32>
    %cst_238 = arith.constant 5.000000e-01 : f32
    %352 = vector.broadcast %cst_238 : f32 to vector<8x128xf32>
    %353 = arith.addf %351, %352 : vector<8x128xf32>
    %354 = arith.index_cast %c5_i32 : i32 to index
    %c0_239 = arith.constant 0 : index
    %c0_240 = arith.constant 0 : index
    %355 = vector.load %arg8[%354, %c0_239, %c0_240] : memref<8x8x128xf32, #tpu.memory_space<vmem>>, vector<1x8x128xf32>
    %356 = vector.shape_cast %355 : vector<1x8x128xf32> to vector<8x128xf32>
    %c0_241 = arith.constant 0 : index
    %c128_242 = arith.constant 128 : index
    %357 = vector.load %arg5[%c0_241, %c128_242] : memref<128x512xbf16, #tpu.memory_space<vmem>>, vector<128x128xbf16>
    %cst_243 = arith.constant dense<0.000000e+00> : vector<8x128xf32>
    %358 = tpu.matmul %339, %357, %cst_243 {dimension_numbers = #tpu.dot_dimension_numbers<[1], [0], [0], [1], [0, 0, 1, 1], [], []>} : vector<8x128xbf16>, vector<128x128xbf16>, vector<8x128xf32> -> vector<8x128xf32>
    %359 = arith.addf %356, %358 : vector<8x128xf32>
    %cst_244 = arith.constant 5.000000e-01 : f32
    %360 = vector.broadcast %cst_244 : f32 to vector<8x128xf32>
    %361 = arith.mulf %360, %359 : vector<8x128xf32>
    %362 = math.tanh %361 : vector<8x128xf32>
    %cst_245 = arith.constant 5.000000e-01 : f32
    %363 = vector.broadcast %cst_245 : f32 to vector<8x128xf32>
    %364 = arith.mulf %363, %362 : vector<8x128xf32>
    %cst_246 = arith.constant 5.000000e-01 : f32
    %365 = vector.broadcast %cst_246 : f32 to vector<8x128xf32>
    %366 = arith.addf %364, %365 : vector<8x128xf32>
    %367 = arith.index_cast %c5_i32 : i32 to index
    %c0_247 = arith.constant 0 : index
    %c0_248 = arith.constant 0 : index
    %368 = vector.load %arg9[%367, %c0_247, %c0_248] : memref<8x8x128xf32, #tpu.memory_space<vmem>>, vector<1x8x128xf32>
    %369 = vector.shape_cast %368 : vector<1x8x128xf32> to vector<8x128xf32>
    %c0_249 = arith.constant 0 : index
    %c256_250 = arith.constant 256 : index
    %370 = vector.load %arg5[%c0_249, %c256_250] : memref<128x512xbf16, #tpu.memory_space<vmem>>, vector<128x128xbf16>
    %cst_251 = arith.constant dense<0.000000e+00> : vector<8x128xf32>
    %371 = tpu.matmul %339, %370, %cst_251 {dimension_numbers = #tpu.dot_dimension_numbers<[1], [0], [0], [1], [0, 0, 1, 1], [], []>} : vector<8x128xbf16>, vector<128x128xbf16>, vector<8x128xf32> -> vector<8x128xf32>
    %372 = arith.addf %369, %371 : vector<8x128xf32>
    %373 = math.tanh %372 : vector<8x128xf32>
    %374 = arith.index_cast %c5_i32 : i32 to index
    %c0_252 = arith.constant 0 : index
    %c0_253 = arith.constant 0 : index
    %375 = vector.load %arg10[%374, %c0_252, %c0_253] : memref<8x8x128xf32, #tpu.memory_space<vmem>>, vector<1x8x128xf32>
    %376 = vector.shape_cast %375 : vector<1x8x128xf32> to vector<8x128xf32>
    %c0_254 = arith.constant 0 : index
    %c384_255 = arith.constant 384 : index
    %377 = vector.load %arg5[%c0_254, %c384_255] : memref<128x512xbf16, #tpu.memory_space<vmem>>, vector<128x128xbf16>
    %cst_256 = arith.constant dense<0.000000e+00> : vector<8x128xf32>
    %378 = tpu.matmul %339, %377, %cst_256 {dimension_numbers = #tpu.dot_dimension_numbers<[1], [0], [0], [1], [0, 0, 1, 1], [], []>} : vector<8x128xbf16>, vector<128x128xbf16>, vector<8x128xf32> -> vector<8x128xf32>
    %379 = arith.addf %376, %378 : vector<8x128xf32>
    %cst_257 = arith.constant 5.000000e-01 : f32
    %380 = vector.broadcast %cst_257 : f32 to vector<8x128xf32>
    %381 = arith.mulf %380, %379 : vector<8x128xf32>
    %382 = math.tanh %381 : vector<8x128xf32>
    %cst_258 = arith.constant 5.000000e-01 : f32
    %383 = vector.broadcast %cst_258 : f32 to vector<8x128xf32>
    %384 = arith.mulf %383, %382 : vector<8x128xf32>
    %cst_259 = arith.constant 5.000000e-01 : f32
    %385 = vector.broadcast %cst_259 : f32 to vector<8x128xf32>
    %386 = arith.addf %384, %385 : vector<8x128xf32>
    %387 = arith.mulf %366, %340 : vector<8x128xf32>
    %388 = arith.mulf %353, %373 : vector<8x128xf32>
    %389 = arith.addf %387, %388 : vector<8x128xf32>
    %390 = math.tanh %389 : vector<8x128xf32>
    %391 = arith.mulf %386, %390 : vector<8x128xf32>
    %c0_260 = arith.constant 0 : index
    %c0_261 = arith.constant 0 : index
    %392 = vector.load %arg12[%c0_260, %c0_261] : memref<8x128xf32, #tpu.memory_space<vmem>>, vector<8x128xf32>
    tpu.vector_store %arg12[%c0_260, %c0_261], %389 {strides = array<i32>} : memref<8x128xf32, #tpu.memory_space<vmem>>, vector<8x128xf32>,
    %c0_262 = arith.constant 0 : index
    %c0_263 = arith.constant 0 : index
    %393 = vector.load %arg11[%c0_262, %c0_263] : memref<8x128xf32, #tpu.memory_space<vmem>>, vector<8x128xf32>
    tpu.vector_store %arg11[%c0_262, %c0_263], %391 {strides = array<i32>} : memref<8x128xf32, #tpu.memory_space<vmem>>, vector<8x128xf32>,
    %394 = arith.truncf %391 : vector<8x128xf32> to vector<8x128xbf16>
    %395 = arith.index_cast %c5_i32 : i32 to index
    %c0_264 = arith.constant 0 : index
    %c0_265 = arith.constant 0 : index
    %396 = vector.load %arg6[%395, %c0_264, %c0_265] : memref<8x8x128xbf16, #tpu.memory_space<vmem>>, vector<1x8x128xbf16>
    %397 = vector.shape_cast %396 : vector<1x8x128xbf16> to vector<8x128xbf16>
    %398 = vector.shape_cast %394 : vector<8x128xbf16> to vector<1x8x128xbf16>
    tpu.vector_store %arg6[%395, %c0_264, %c0_265], %398 {strides = array<i32>} : memref<8x8x128xbf16, #tpu.memory_space<vmem>>, vector<1x8x128xbf16>,
    %c6_i32 = arith.constant 6 : i32
    %c0_266 = arith.constant 0 : index
    %c0_267 = arith.constant 0 : index
    %399 = vector.load %arg11[%c0_266, %c0_267] : memref<8x128xf32, #tpu.memory_space<vmem>>, vector<8x128xf32>
    %400 = arith.truncf %399 : vector<8x128xf32> to vector<8x128xbf16>
    %c0_268 = arith.constant 0 : index
    %c0_269 = arith.constant 0 : index
    %401 = vector.load %arg12[%c0_268, %c0_269] : memref<8x128xf32, #tpu.memory_space<vmem>>, vector<8x128xf32>
    %402 = arith.index_cast %c6_i32 : i32 to index
    %c0_270 = arith.constant 0 : index
    %c0_271 = arith.constant 0 : index
    %403 = vector.load %arg7[%402, %c0_270, %c0_271] : memref<8x8x128xf32, #tpu.memory_space<vmem>>, vector<1x8x128xf32>
    %404 = vector.shape_cast %403 : vector<1x8x128xf32> to vector<8x128xf32>
    %c0_272 = arith.constant 0 : index
    %c0_273 = arith.constant 0 : index
    %405 = vector.load %arg5[%c0_272, %c0_273] : memref<128x512xbf16, #tpu.memory_space<vmem>>, vector<128x128xbf16>
    %cst_274 = arith.constant dense<0.000000e+00> : vector<8x128xf32>
    %406 = tpu.matmul %400, %405, %cst_274 {dimension_numbers = #tpu.dot_dimension_numbers<[1], [0], [0], [1], [0, 0, 1, 1], [], []>} : vector<8x128xbf16>, vector<128x128xbf16>, vector<8x128xf32> -> vector<8x128xf32>
    %407 = arith.addf %404, %406 : vector<8x128xf32>
    %cst_275 = arith.constant 5.000000e-01 : f32
    %408 = vector.broadcast %cst_275 : f32 to vector<8x128xf32>
    %409 = arith.mulf %408, %407 : vector<8x128xf32>
    %410 = math.tanh %409 : vector<8x128xf32>
    %cst_276 = arith.constant 5.000000e-01 : f32
    %411 = vector.broadcast %cst_276 : f32 to vector<8x128xf32>
    %412 = arith.mulf %411, %410 : vector<8x128xf32>
    %cst_277 = arith.constant 5.000000e-01 : f32
    %413 = vector.broadcast %cst_277 : f32 to vector<8x128xf32>
    %414 = arith.addf %412, %413 : vector<8x128xf32>
    %415 = arith.index_cast %c6_i32 : i32 to index
    %c0_278 = arith.constant 0 : index
    %c0_279 = arith.constant 0 : index
    %416 = vector.load %arg8[%415, %c0_278, %c0_279] : memref<8x8x128xf32, #tpu.memory_space<vmem>>, vector<1x8x128xf32>
    %417 = vector.shape_cast %416 : vector<1x8x128xf32> to vector<8x128xf32>
    %c0_280 = arith.constant 0 : index
    %c128_281 = arith.constant 128 : index
    %418 = vector.load %arg5[%c0_280, %c128_281] : memref<128x512xbf16, #tpu.memory_space<vmem>>, vector<128x128xbf16>
    %cst_282 = arith.constant dense<0.000000e+00> : vector<8x128xf32>
    %419 = tpu.matmul %400, %418, %cst_282 {dimension_numbers = #tpu.dot_dimension_numbers<[1], [0], [0], [1], [0, 0, 1, 1], [], []>} : vector<8x128xbf16>, vector<128x128xbf16>, vector<8x128xf32> -> vector<8x128xf32>
    %420 = arith.addf %417, %419 : vector<8x128xf32>
    %cst_283 = arith.constant 5.000000e-01 : f32
    %421 = vector.broadcast %cst_283 : f32 to vector<8x128xf32>
    %422 = arith.mulf %421, %420 : vector<8x128xf32>
    %423 = math.tanh %422 : vector<8x128xf32>
    %cst_284 = arith.constant 5.000000e-01 : f32
    %424 = vector.broadcast %cst_284 : f32 to vector<8x128xf32>
    %425 = arith.mulf %424, %423 : vector<8x128xf32>
    %cst_285 = arith.constant 5.000000e-01 : f32
    %426 = vector.broadcast %cst_285 : f32 to vector<8x128xf32>
    %427 = arith.addf %425, %426 : vector<8x128xf32>
    %428 = arith.index_cast %c6_i32 : i32 to index
    %c0_286 = arith.constant 0 : index
    %c0_287 = arith.constant 0 : index
    %429 = vector.load %arg9[%428, %c0_286, %c0_287] : memref<8x8x128xf32, #tpu.memory_space<vmem>>, vector<1x8x128xf32>
    %430 = vector.shape_cast %429 : vector<1x8x128xf32> to vector<8x128xf32>
    %c0_288 = arith.constant 0 : index
    %c256_289 = arith.constant 256 : index
    %431 = vector.load %arg5[%c0_288, %c256_289] : memref<128x512xbf16, #tpu.memory_space<vmem>>, vector<128x128xbf16>
    %cst_290 = arith.constant dense<0.000000e+00> : vector<8x128xf32>
    %432 = tpu.matmul %400, %431, %cst_290 {dimension_numbers = #tpu.dot_dimension_numbers<[1], [0], [0], [1], [0, 0, 1, 1], [], []>} : vector<8x128xbf16>, vector<128x128xbf16>, vector<8x128xf32> -> vector<8x128xf32>
    %433 = arith.addf %430, %432 : vector<8x128xf32>
    %434 = math.tanh %433 : vector<8x128xf32>
    %435 = arith.index_cast %c6_i32 : i32 to index
    %c0_291 = arith.constant 0 : index
    %c0_292 = arith.constant 0 : index
    %436 = vector.load %arg10[%435, %c0_291, %c0_292] : memref<8x8x128xf32, #tpu.memory_space<vmem>>, vector<1x8x128xf32>
    %437 = vector.shape_cast %436 : vector<1x8x128xf32> to vector<8x128xf32>
    %c0_293 = arith.constant 0 : index
    %c384_294 = arith.constant 384 : index
    %438 = vector.load %arg5[%c0_293, %c384_294] : memref<128x512xbf16, #tpu.memory_space<vmem>>, vector<128x128xbf16>
    %cst_295 = arith.constant dense<0.000000e+00> : vector<8x128xf32>
    %439 = tpu.matmul %400, %438, %cst_295 {dimension_numbers = #tpu.dot_dimension_numbers<[1], [0], [0], [1], [0, 0, 1, 1], [], []>} : vector<8x128xbf16>, vector<128x128xbf16>, vector<8x128xf32> -> vector<8x128xf32>
    %440 = arith.addf %437, %439 : vector<8x128xf32>
    %cst_296 = arith.constant 5.000000e-01 : f32
    %441 = vector.broadcast %cst_296 : f32 to vector<8x128xf32>
    %442 = arith.mulf %441, %440 : vector<8x128xf32>
    %443 = math.tanh %442 : vector<8x128xf32>
    %cst_297 = arith.constant 5.000000e-01 : f32
    %444 = vector.broadcast %cst_297 : f32 to vector<8x128xf32>
    %445 = arith.mulf %444, %443 : vector<8x128xf32>
    %cst_298 = arith.constant 5.000000e-01 : f32
    %446 = vector.broadcast %cst_298 : f32 to vector<8x128xf32>
    %447 = arith.addf %445, %446 : vector<8x128xf32>
    %448 = arith.mulf %427, %401 : vector<8x128xf32>
    %449 = arith.mulf %414, %434 : vector<8x128xf32>
    %450 = arith.addf %448, %449 : vector<8x128xf32>
    %451 = math.tanh %450 : vector<8x128xf32>
    %452 = arith.mulf %447, %451 : vector<8x128xf32>
    %c0_299 = arith.constant 0 : index
    %c0_300 = arith.constant 0 : index
    %453 = vector.load %arg12[%c0_299, %c0_300] : memref<8x128xf32, #tpu.memory_space<vmem>>, vector<8x128xf32>
    tpu.vector_store %arg12[%c0_299, %c0_300], %450 {strides = array<i32>} : memref<8x128xf32, #tpu.memory_space<vmem>>, vector<8x128xf32>,
    %c0_301 = arith.constant 0 : index
    %c0_302 = arith.constant 0 : index
    %454 = vector.load %arg11[%c0_301, %c0_302] : memref<8x128xf32, #tpu.memory_space<vmem>>, vector<8x128xf32>
    tpu.vector_store %arg11[%c0_301, %c0_302], %452 {strides = array<i32>} : memref<8x128xf32, #tpu.memory_space<vmem>>, vector<8x128xf32>,
    %455 = arith.truncf %452 : vector<8x128xf32> to vector<8x128xbf16>
    %456 = arith.index_cast %c6_i32 : i32 to index
    %c0_303 = arith.constant 0 : index
    %c0_304 = arith.constant 0 : index
    %457 = vector.load %arg6[%456, %c0_303, %c0_304] : memref<8x8x128xbf16, #tpu.memory_space<vmem>>, vector<1x8x128xbf16>
    %458 = vector.shape_cast %457 : vector<1x8x128xbf16> to vector<8x128xbf16>
    %459 = vector.shape_cast %455 : vector<8x128xbf16> to vector<1x8x128xbf16>
    tpu.vector_store %arg6[%456, %c0_303, %c0_304], %459 {strides = array<i32>} : memref<8x8x128xbf16, #tpu.memory_space<vmem>>, vector<1x8x128xbf16>,
    %c7_i32 = arith.constant 7 : i32
    %c0_305 = arith.constant 0 : index
    %c0_306 = arith.constant 0 : index
    %460 = vector.load %arg11[%c0_305, %c0_306] : memref<8x128xf32, #tpu.memory_space<vmem>>, vector<8x128xf32>
    %461 = arith.truncf %460 : vector<8x128xf32> to vector<8x128xbf16>
    %c0_307 = arith.constant 0 : index
    %c0_308 = arith.constant 0 : index
    %462 = vector.load %arg12[%c0_307, %c0_308] : memref<8x128xf32, #tpu.memory_space<vmem>>, vector<8x128xf32>
    %463 = arith.index_cast %c7_i32 : i32 to index
    %c0_309 = arith.constant 0 : index
    %c0_310 = arith.constant 0 : index
    %464 = vector.load %arg7[%463, %c0_309, %c0_310] : memref<8x8x128xf32, #tpu.memory_space<vmem>>, vector<1x8x128xf32>
    %465 = vector.shape_cast %464 : vector<1x8x128xf32> to vector<8x128xf32>
    %c0_311 = arith.constant 0 : index
    %c0_312 = arith.constant 0 : index
    %466 = vector.load %arg5[%c0_311, %c0_312] : memref<128x512xbf16, #tpu.memory_space<vmem>>, vector<128x128xbf16>
    %cst_313 = arith.constant dense<0.000000e+00> : vector<8x128xf32>
    %467 = tpu.matmul %461, %466, %cst_313 {dimension_numbers = #tpu.dot_dimension_numbers<[1], [0], [0], [1], [0, 0, 1, 1], [], []>} : vector<8x128xbf16>, vector<128x128xbf16>, vector<8x128xf32> -> vector<8x128xf32>
    %468 = arith.addf %465, %467 : vector<8x128xf32>
    %cst_314 = arith.constant 5.000000e-01 : f32
    %469 = vector.broadcast %cst_314 : f32 to vector<8x128xf32>
    %470 = arith.mulf %469, %468 : vector<8x128xf32>
    %471 = math.tanh %470 : vector<8x128xf32>
    %cst_315 = arith.constant 5.000000e-01 : f32
    %472 = vector.broadcast %cst_315 : f32 to vector<8x128xf32>
    %473 = arith.mulf %472, %471 : vector<8x128xf32>
    %cst_316 = arith.constant 5.000000e-01 : f32
    %474 = vector.broadcast %cst_316 : f32 to vector<8x128xf32>
    %475 = arith.addf %473, %474 : vector<8x128xf32>
    %476 = arith.index_cast %c7_i32 : i32 to index
    %c0_317 = arith.constant 0 : index
    %c0_318 = arith.constant 0 : index
    %477 = vector.load %arg8[%476, %c0_317, %c0_318] : memref<8x8x128xf32, #tpu.memory_space<vmem>>, vector<1x8x128xf32>
    %478 = vector.shape_cast %477 : vector<1x8x128xf32> to vector<8x128xf32>
    %c0_319 = arith.constant 0 : index
    %c128_320 = arith.constant 128 : index
    %479 = vector.load %arg5[%c0_319, %c128_320] : memref<128x512xbf16, #tpu.memory_space<vmem>>, vector<128x128xbf16>
    %cst_321 = arith.constant dense<0.000000e+00> : vector<8x128xf32>
    %480 = tpu.matmul %461, %479, %cst_321 {dimension_numbers = #tpu.dot_dimension_numbers<[1], [0], [0], [1], [0, 0, 1, 1], [], []>} : vector<8x128xbf16>, vector<128x128xbf16>, vector<8x128xf32> -> vector<8x128xf32>
    %481 = arith.addf %478, %480 : vector<8x128xf32>
    %cst_322 = arith.constant 5.000000e-01 : f32
    %482 = vector.broadcast %cst_322 : f32 to vector<8x128xf32>
    %483 = arith.mulf %482, %481 : vector<8x128xf32>
    %484 = math.tanh %483 : vector<8x128xf32>
    %cst_323 = arith.constant 5.000000e-01 : f32
    %485 = vector.broadcast %cst_323 : f32 to vector<8x128xf32>
    %486 = arith.mulf %485, %484 : vector<8x128xf32>
    %cst_324 = arith.constant 5.000000e-01 : f32
    %487 = vector.broadcast %cst_324 : f32 to vector<8x128xf32>
    %488 = arith.addf %486, %487 : vector<8x128xf32>
    %489 = arith.index_cast %c7_i32 : i32 to index
    %c0_325 = arith.constant 0 : index
    %c0_326 = arith.constant 0 : index
    %490 = vector.load %arg9[%489, %c0_325, %c0_326] : memref<8x8x128xf32, #tpu.memory_space<vmem>>, vector<1x8x128xf32>
    %491 = vector.shape_cast %490 : vector<1x8x128xf32> to vector<8x128xf32>
    %c0_327 = arith.constant 0 : index
    %c256_328 = arith.constant 256 : index
    %492 = vector.load %arg5[%c0_327, %c256_328] : memref<128x512xbf16, #tpu.memory_space<vmem>>, vector<128x128xbf16>
    %cst_329 = arith.constant dense<0.000000e+00> : vector<8x128xf32>
    %493 = tpu.matmul %461, %492, %cst_329 {dimension_numbers = #tpu.dot_dimension_numbers<[1], [0], [0], [1], [0, 0, 1, 1], [], []>} : vector<8x128xbf16>, vector<128x128xbf16>, vector<8x128xf32> -> vector<8x128xf32>
    %494 = arith.addf %491, %493 : vector<8x128xf32>
    %495 = math.tanh %494 : vector<8x128xf32>
    %496 = arith.index_cast %c7_i32 : i32 to index
    %c0_330 = arith.constant 0 : index
    %c0_331 = arith.constant 0 : index
    %497 = vector.load %arg10[%496, %c0_330, %c0_331] : memref<8x8x128xf32, #tpu.memory_space<vmem>>, vector<1x8x128xf32>
    %498 = vector.shape_cast %497 : vector<1x8x128xf32> to vector<8x128xf32>
    %c0_332 = arith.constant 0 : index
    %c384_333 = arith.constant 384 : index
    %499 = vector.load %arg5[%c0_332, %c384_333] : memref<128x512xbf16, #tpu.memory_space<vmem>>, vector<128x128xbf16>
    %cst_334 = arith.constant dense<0.000000e+00> : vector<8x128xf32>
    %500 = tpu.matmul %461, %499, %cst_334 {dimension_numbers = #tpu.dot_dimension_numbers<[1], [0], [0], [1], [0, 0, 1, 1], [], []>} : vector<8x128xbf16>, vector<128x128xbf16>, vector<8x128xf32> -> vector<8x128xf32>
    %501 = arith.addf %498, %500 : vector<8x128xf32>
    %cst_335 = arith.constant 5.000000e-01 : f32
    %502 = vector.broadcast %cst_335 : f32 to vector<8x128xf32>
    %503 = arith.mulf %502, %501 : vector<8x128xf32>
    %504 = math.tanh %503 : vector<8x128xf32>
    %cst_336 = arith.constant 5.000000e-01 : f32
    %505 = vector.broadcast %cst_336 : f32 to vector<8x128xf32>
    %506 = arith.mulf %505, %504 : vector<8x128xf32>
    %cst_337 = arith.constant 5.000000e-01 : f32
    %507 = vector.broadcast %cst_337 : f32 to vector<8x128xf32>
    %508 = arith.addf %506, %507 : vector<8x128xf32>
    %509 = arith.mulf %488, %462 : vector<8x128xf32>
    %510 = arith.mulf %475, %495 : vector<8x128xf32>
    %511 = arith.addf %509, %510 : vector<8x128xf32>
    %512 = math.tanh %511 : vector<8x128xf32>
    %513 = arith.mulf %508, %512 : vector<8x128xf32>
    %c0_338 = arith.constant 0 : index
    %c0_339 = arith.constant 0 : index
    %514 = vector.load %arg12[%c0_338, %c0_339] : memref<8x128xf32, #tpu.memory_space<vmem>>, vector<8x128xf32>
    tpu.vector_store %arg12[%c0_338, %c0_339], %511 {strides = array<i32>} : memref<8x128xf32, #tpu.memory_space<vmem>>, vector<8x128xf32>,
    %c0_340 = arith.constant 0 : index
    %c0_341 = arith.constant 0 : index
    %515 = vector.load %arg11[%c0_340, %c0_341] : memref<8x128xf32, #tpu.memory_space<vmem>>, vector<8x128xf32>
    tpu.vector_store %arg11[%c0_340, %c0_341], %513 {strides = array<i32>} : memref<8x128xf32, #tpu.memory_space<vmem>>, vector<8x128xf32>,
    %516 = arith.truncf %513 : vector<8x128xf32> to vector<8x128xbf16>
    %517 = arith.index_cast %c7_i32 : i32 to index
    %c0_342 = arith.constant 0 : index
    %c0_343 = arith.constant 0 : index
    %518 = vector.load %arg6[%517, %c0_342, %c0_343] : memref<8x8x128xbf16, #tpu.memory_space<vmem>>, vector<1x8x128xbf16>
    %519 = vector.shape_cast %518 : vector<1x8x128xbf16> to vector<8x128xbf16>
    %520 = vector.shape_cast %516 : vector<8x128xbf16> to vector<1x8x128xbf16>
    tpu.vector_store %arg6[%517, %c0_342, %c0_343], %520 {strides = array<i32>} : memref<8x8x128xbf16, #tpu.memory_space<vmem>>, vector<1x8x128xbf16>,
    %c8_i32 = arith.constant 8 : i32
    return
  }
  func.func @transform_0(%arg0: i32, %arg1: i32) -> (i32, i32, i32) {
    %c0_i32 = arith.constant 0 : i32
    %c0_i32_0 = arith.constant 0 : i32
    return %arg1, %arg0, %c0_i32 : i32, i32, i32
  }
  func.func @transform_1(%arg0: i32, %arg1: i32) -> (i32, i32) {
    %c0_i32 = arith.constant 0 : i32
    %c0_i32_0 = arith.constant 0 : i32
    %c0_i32_1 = arith.constant 0 : i32
    return %c0_i32, %c0_i32_0 : i32, i32
  }
  func.func @transform_2(%arg0: i32, %arg1: i32) -> (i32, i32) {
    %c0_i32 = arith.constant 0 : i32
    %c0_i32_0 = arith.constant 0 : i32
    %c0_i32_1 = arith.constant 0 : i32
    return %c0_i32, %c0_i32_0 : i32, i32
  }
  func.func @transform_3(%arg0: i32, %arg1: i32) -> (i32, i32) {
    %c0_i32 = arith.constant 0 : i32
    %c0_i32_0 = arith.constant 0 : i32
    %c0_i32_1 = arith.constant 0 : i32
    return %c0_i32, %c0_i32_0 : i32, i32
  }
  func.func @transform_4(%arg0: i32, %arg1: i32) -> (i32, i32, i32) {
    %c0_i32 = arith.constant 0 : i32
    %c0_i32_0 = arith.constant 0 : i32
    return %arg1, %arg0, %c0_i32 : i32, i32, i32
  }
}

</mosaic_0001>

<bundles_post_ra>
// kernel: tpu_custom_call.1
= control target key start
LH: loop header
LB: loop body
LE: loop exit
PB: predicated region body
PF: predicated region fallthrough
CT: control target
= control target key end

     0   :  { %6 = vsyncpa [#allocation3], 0  ;;  %s340_s0 = inlined_call_operand.hbm [shape: f32[8,128], index: 0, kind: input, shape index: {}]   ;;  %s341_s1 = inlined_call_operand.hbm [shape: f32[8,128], index: 1, kind: output, shape index: {}]  }
   0x1   :  { %7 = vsyncpa [#allocation4], 0  ;;  %s261_s6 = smov 0  }
   0x2 LB: > { %s144_s7 = sadd.s32 4294967295, %s247_s6   ;;  %p145_p0 = scmp.ge.s32.totalorder %s247_s6, 1  ;;  %s247_s6 = sphi %s261_s6, %s13_s6  }
   0x3   : > { %p60_p1 = scmp.lt.s32.totalorder %s247_s6, 3  ;;  %p275_p3 = scmp.eq.s32.totalorder %s144_s7, 0 }
   0x4   : > { %s249_s10 = smov [#allocation2]   ;;  %s179_s15 = scalar_lea.hbm %s340_s0, 128 }
   0x5   : > { %p269_p2 = pnand %p145_p0, %p60_p1  ;;  %s73_s11 = sshll.u32 %s249_s10, 4  ;;  %s74_s11 = int_to_ptr.vmem [resolvable:$true] %s73_s11 }
   0x6   : > { %s346_s9 = scalar_select %p275_p3, 1, 0 }
   0x7   : > { %s345_s8 = scalar_select %p269_p2, 1, 0 }
   0x8   : > { %p161_p4 = pneg %p269_p2  ;;  %p180_p6 = scmp.ne.s32.totalorder %s340_s0, %s179_s15 }
   0x9   : > { %p186_p10 = scmp.lt.u32.totalorder %s179_s15, %s340_s0 }
   0xa   : > { %p283_p5 = pnand %p275_p3, %p161_p4 }
   0xc   : > { %p181_p7 = pneg %p283_p5 }
   0xe   : > { %p182_p8 = pnand %p181_p7, %p180_p6 }
  0x10   : > { %p183_p9 = pneg %p182_p8 }
  0x12   : > { %p188_p11 = pnand %p186_p10, %p183_p9 }
  0x14   : > { %191 = shalt.err (!%p188_p11)
}
  0x15   : > { %s192_s20 = scalar_lea.vmem %s74_s11, 128  ;;  %p200_p1 = scmp.lt.s32.totalorder %s74_s11, %s74_s11 }
  0x16   : > { %p193_p12 = scmp.ne.s32.totalorder %s74_s11, %s192_s20  ;;  %p201_p4 = scmp.lt.s32.totalorder %s192_s20, %s192_s20 }
  0x18   : > { %p195_p13 = pnand %p193_p12, %p181_p7  ;;  %p202_p3 = por %p201_p4, %p200_p1 }
  0x1a   : > { %p196_p0 = pneg %p195_p13 }
  0x1c   : > { %p203_p2 = pnand %p202_p3, %p196_p0 }
  0x1e   : > { %206 = shalt.err (!%p203_p2)
}
  0x1f   : > { %164 = dma.hbm_to_vmem [thread:$0]  (!%p283_p5), %s340_s0, 128, %s74_s11, [#allocation3]  }
  0x20   : > { %p348_p6 = scmp.ne.s32.totalorder %s345_s8, 0 }
  0x21   : > { %p349_p8 = scmp.ne.s32.totalorder (!%p348_p6), %s346_s9, 0 }
  0x22   : > { %86 = sbr.rel (%p348_p6) target bundleno = 67 (0x43), region = 24 }
  0x29   : > { %238 = dma.done.wait (%p349_p8), [#allocation3], 128  }
  0x2a   : > { %240 = vsyncadd (%p349_p8), [#allocation3], 4294967168  ;;  %s250_s23 = smov [#allocation5]   ;;  %p311_p2 = scmp.eq.s32.totalorder %s144_s7, 1  ;;  %v96_v0 = vld [vmem:[#allocation2] sm:$0xff] }
  0x2b   : > { %s105_s24 = sshll.u32 %s250_s23, 4  ;;  %97 = vst [vmem:[#allocation5] sm:$0xff] %v96_v0  ;;  %s106_s24 = int_to_ptr.vmem [resolvable:$true] %s105_s24 }
  0x2c   : > { %s207_s26 = scalar_lea.vmem %s106_s24, 128  ;;  %p214_p9 = scmp.lt.s32.totalorder %s106_s24, %s106_s24 }
  0x2d   : > { %p208_p3 = scmp.ne.s32.totalorder %s106_s24, %s207_s26  ;;  %p215_p10 = scmp.lt.s32.totalorder %s207_s26, %s207_s26 }
  0x2f   : > { %p209_p5 = pnand %p208_p3, %p311_p2  ;;  %p216_p11 = por %p215_p10, %p214_p9 }
  0x31   : > { %p210_p7 = pneg %p209_p5 }
  0x33   : > { %p217_p12 = pnand %p216_p11, %p210_p7 }
  0x35   : > { %220 = shalt.err (!%p217_p12)
}
  0x36   : > { %s221_s29 = scalar_lea.hbm %s341_s1, 128 }
  0x37   : > { %p222_p13 = scmp.ne.s32.totalorder %s341_s1, %s221_s29  ;;  %p227_p4 = scmp.lt.u32.totalorder %s221_s29, %s341_s1 }
  0x39   : > { %p223_p0 = pnand %p222_p13, %p311_p2 }
  0x3b   : > { %p224_p1 = pneg %p223_p0 }
  0x3d   : > { %p229_p6 = pnand %p227_p4, %p224_p1 }
  0x3f   : > { %232 = shalt.err (!%p229_p6)
}
  0x40   : > { %158 = dma.vmem_to_hbm [thread:$0]  (%p311_p2), %s106_s24, 128, %s341_s1, [#allocation4]  }
  0x41   : > { %242 = dma.done.wait (%p311_p2), [#allocation4], 128  }
  0x42   : > { %244 = vsyncadd (%p311_p2), [#allocation4], 4294967168 }
  0x43 PF: > { %s13_s6 = sadd.s32 1, %s247_s6  }
  0x44   : > { %p10_p8 = scmp.ge.s32.totalorder %s13_s6, 4  }
  0x46   :  { %12 = sbr.rel (!%p10_p8) target bundleno = 2 (0x2), region = 53 }
  0x4d   :  { %118 = vsyncpa [#allocation3], 1 }
  0x4e   :  { %120 = vsyncpa [#allocation3 + $0x1], 1 }
  0x4f   :  { %121 = vsyncpa [#allocation4], 1 }
  0x50   :  { %123 = vsyncpa [#allocation4 + $0x1], 1 }

// kernel: tpu_custom_call.1
= control target key start
LH: loop header
LB: loop body
LE: loop exit
PB: predicated region body
PF: predicated region fallthrough
CT: control target
= control target key end

     0   :  { %9 = vsyncpa [#allocation9], 0  ;;  %s6742_s0 = inlined_call_operand.hbm [shape: bf16[8,8,128], index: 0, kind: input, shape index: {}]   ;;  %s6743_s1 = inlined_call_operand.hbm [shape: bf16[128,512], index: 1, kind: input, shape index: {}]   ;;  %s6744_s2 = inlined_call_operand.vmem [shape: f32[1,512], index: 2, kind: input, shape index: {}]   ;;  %s6745_s3 = inlined_call_operand.hbm [shape: bf16[128,512], index: 3, kind: input, shape index: {}]   ;;  %s6746_s4 = inlined_call_operand.hbm [shape: bf16[8,8,128], index: 4, kind: output, shape index: {}]  }
   0x1   :  { %10 = vsyncpa [#allocation12], 0 }
   0x2   :  { %11 = vsyncpa [#allocation10], 0  ;;  %s6164_s15 = smov [#allocation11]   ;;  %s6070_s19 = scalar_lea.hbm %s6743_s1, 4096 }
   0x3   :  { %s29_s16 = sshll.u32 %s6164_s15, 4  ;;  %p6071_p0 = scmp.ne.s32.totalorder %s6743_s1, %s6070_s19  ;;  %s30_s16 = int_to_ptr.vmem [resolvable:$true] %s29_s16 }
   0x4   :  { %p6074_p1 = scmp.lt.u32.totalorder %s6070_s19, %s6743_s1 }
   0x6   :  { %p6076_p2 = pnand %p6074_p1, %p6071_p0 }
   0x8   :  { %6079 = shalt.err (!%p6076_p2)
}
   0x9   :  { %s6080_s24 = scalar_lea.vmem %s30_s16, 4096  ;;  %p6085_p4 = scmp.lt.s32.totalorder %s30_s16, %s30_s16 }
   0xa   :  { %p6081_p3 = scmp.ne.s32.totalorder %s30_s16, %s6080_s24  ;;  %p6086_p5 = scmp.lt.s32.totalorder %s6080_s24, %s6080_s24 }
   0xc   :  { %p6087_p6 = por %p6086_p5, %p6085_p4 }
   0xe   :  { %p6088_p7 = pnand %p6087_p6, %p6081_p3 }
  0x10   :  { %6091 = shalt.err (!%p6088_p7)
}
  0x11   :  { %s6165_s25 = smov 256   ;;  %s6166_s26 = smov 16  }
  0x12   :  { %35 = dma.hbm_to_vmem [thread:$0]  %s6743_s1, 4096, %s30_s16, [#allocation12], %s6165_s25, %s6165_s25, %s6166_s26  }
  0x13   :  { %s6167_s29 = smov [#allocation8]   ;;  %s6092_s7 = scalar_lea.hbm %s6742_s0, 512 }
  0x14   :  { %s17_s30 = sshll.u32 %s6167_s29, 4  ;;  %p6093_p8 = scmp.ne.s32.totalorder %s6742_s0, %s6092_s7  ;;  %s18_s30 = int_to_ptr.vmem [resolvable:$true] %s17_s30 }
  0x15   :  { %p6096_p9 = scmp.lt.u32.totalorder %s6092_s7, %s6742_s0 }
  0x17   :  { %p6098_p10 = pnand %p6096_p9, %p6093_p8 }
  0x19   :  { %6101 = shalt.err (!%p6098_p10)
}
  0x1a   :  { %s6102_s12 = scalar_lea.vmem %s18_s30, 512  ;;  %p6107_p12 = scmp.lt.s32.totalorder %s18_s30, %s18_s30 }
  0x1b   :  { %p6103_p11 = scmp.ne.s32.totalorder %s18_s30, %s6102_s12  ;;  %p6108_p13 = scmp.lt.s32.totalorder %s6102_s12, %s6102_s12 }
  0x1d   :  { %p6109_p0 = por %p6108_p13, %p6107_p12 }
  0x1f   :  { %p6110_p1 = pnand %p6109_p0, %p6103_p11 }
  0x21   :  { %6113 = shalt.err (!%p6110_p1)
}
  0x22   :  { %s6168_s1 = smov 64   ;;  %s6169_s13 = smov 4  }
  0x23   :  { %23 = dma.hbm_to_vmem [thread:$0]  %s6742_s0, 512, %s18_s30, [#allocation9], %s6168_s1, %s6168_s1, %s6169_s13  }
  0x24   :  { %s6170_s16 = smov [#allocation13]   ;;  %s6114_s20 = scalar_lea.hbm %s6745_s3, 4096 }
  0x25   :  { %s43_s17 = sshll.u32 %s6170_s16, 4  ;;  %p6115_p2 = scmp.ne.s32.totalorder %s6745_s3, %s6114_s20  ;;  %s44_s17 = int_to_ptr.vmem [resolvable:$true] %s43_s17 }
  0x26   :  { %p6118_p3 = scmp.lt.u32.totalorder %s6114_s20, %s6745_s3 }
  0x28   :  { %p6120_p4 = pnand %p6118_p3, %p6115_p2 }
  0x2a   :  { %6123 = shalt.err (!%p6120_p4)
}
  0x2b   :  { %s6124_s27 = scalar_lea.vmem %s44_s17, 4096  ;;  %p6129_p6 = scmp.lt.s32.totalorder %s44_s17, %s44_s17 }
  0x2c   :  { %p6125_p5 = scmp.ne.s32.totalorder %s44_s17, %s6124_s27  ;;  %p6130_p7 = scmp.lt.s32.totalorder %s6124_s27, %s6124_s27 }
  0x2e   :  { %p6131_p8 = por %p6130_p7, %p6129_p6 }
  0x30   :  { %p6132_p9 = pnand %p6131_p8, %p6125_p5 }
  0x32   :  { %6135 = shalt.err (!%p6132_p9)
}
  0x33   :  { %49 = dma.hbm_to_vmem [thread:$0]  %s6745_s3, 4096, %s44_s17, [#allocation12], %s6165_s25, %s6165_s25, %s6166_s26  }
  0x34   :  { %6158 = dma.done.wait [#allocation9], 512  }
  0x35   :  { %6159 = vsyncadd [#allocation9], 4294966784 }
  0x36   :  { %6160 = dma.done.wait [#allocation12], 8192  }
  0x37   :  { %6161 = vsyncadd [#allocation12], 4294959104  ;;  %v5698_v0 = vld [vmem:[#allocation11] ss:$16 sps:$4 sm:$0xff]   ;;  %v5699_v1 = vld [vmem:[#allocation11 + $0x4] ss:$16 sps:$4 sm:$0xff]  }
  0x38   :  { %4951 = vmatprep.subr.bf16.mxu0 %v5698_v0  ;;  %v5700_v2 = vld [vmem:[#allocation11 + $0x20] ss:$16 sps:$4 sm:$0xff]   ;;  %4975 = vmatprep.subr.bf16.mxu1 %v5699_v1  ;;  %v5701_v3 = vld [vmem:[#allocation11 + $0x24] ss:$16 sps:$4 sm:$0xff]   ;;  %v5716_v17 = vld [vmem:[#allocation11 + $0x8] ss:$16 sps:$4 sm:$0xff]  }
  0x39   :  { %4952 = vmatpush3.bf16.msra.mxu0 %v5698_v0  ;;  %4976 = vmatpush3.bf16.msra.mxu1 %v5699_v1  ;;  %v5702_v4 = vld [vmem:[#allocation11 + $0x40] ss:$16 sps:$4 sm:$0xff]   ;;  %v5703_v5 = vld [vmem:[#allocation11 + $0x44] ss:$16 sps:$4 sm:$0xff]   ;;  %v5717_v18 = vld [vmem:[#allocation11 + $0xc] ss:$16 sps:$4 sm:$0xff]  }
  0x3a   :  { %4953 = vmatprep.subr.bf16.mxu0 %v5700_v2  ;;  %4977 = vmatprep.subr.bf16.mxu1 %v5701_v3  ;;  %v5704_v6 = vld [vmem:[#allocation11 + $0x60] ss:$16 sps:$4 sm:$0xff]   ;;  %v5705_v7 = vld [vmem:[#allocation11 + $0x64] ss:$16 sps:$4 sm:$0xff]   ;;  %v6245_v19 = vld [vmem:[#allocation8 + $0x8] sm:$0xff]   ;;  %v6171_v37 = vmov 0.0  }
  0x3b   :  { %v5706_v8 = vld [vmem:[#allocation11 + $0x80] ss:$16 sps:$4 sm:$0xff]   ;;  %v5707_v9 = vld [vmem:[#allocation11 + $0x84] ss:$16 sps:$4 sm:$0xff]   ;;  %v5718_v20 = vld [vmem:[#allocation11 + $0x28] ss:$16 sps:$4 sm:$0xff]  }
  0x3c   :  { %v5708_v10 = vld [vmem:[#allocation11 + $0xa0] ss:$16 sps:$4 sm:$0xff]   ;;  %v5709_v12 = vld [vmem:[#allocation11 + $0xa4] ss:$16 sps:$4 sm:$0xff]   ;;  %v5719_v21 = vld [vmem:[#allocation11 + $0x2c] ss:$16 sps:$4 sm:$0xff]  }
  0x3d   :  { %4954 = vmatpush3.bf16.msra.mxu0 %v5700_v2  ;;  %4978 = vmatpush3.bf16.msra.mxu1 %v5701_v3  ;;  %v5714_v11 = vld [vmem:[#allocation8] sm:$0xff]   ;;  %v6247_v22 = vld [vmem:[#allocation8 + $0x10] sm:$0xff]   ;;  %v5720_v23 = vld [vmem:[#allocation11 + $0x48] ss:$16 sps:$4 sm:$0xff]   ;;  %vm6172_vm0 = vmmov 0   ;;  %v6173_v56 = vmov 0.0|0.0  }
  0x3e   :  { %4955 = vmatprep.subr.bf16.mxu0 %v5702_v4  ;;  %4979 = vmatprep.subr.bf16.mxu1 %v5703_v5  ;;  %v5710_v13 = vld [vmem:[#allocation11 + $0xc0] ss:$16 sps:$4 sm:$0xff]   ;;  %v5711_v14 = vld [vmem:[#allocation11 + $0xc4] ss:$16 sps:$4 sm:$0xff]   ;;  %v5721_v24 = vld [vmem:[#allocation11 + $0x4c] ss:$16 sps:$4 sm:$0xff]  }
  0x3f   :  { %4967 = vmatprep.mubr.bf16.mxu0 %v5714_v11  ;;  %4991 = vmatprep.mubr.bf16.mxu1 %v5714_v11  ;;  %v5712_v15 = vld [vmem:[#allocation11 + $0xe0] ss:$16 sps:$4 sm:$0xff]   ;;  %v5713_v16 = vld [vmem:[#allocation11 + $0xe4] ss:$16 sps:$4 sm:$0xff]   ;;  %v6252_v25 = vld [vmem:[#allocation8 + $0x18] sm:$0xff]  }
  0x40   :  { %v5722_v26 = vld [vmem:[#allocation11 + $0x68] ss:$16 sps:$4 sm:$0xff]   ;;  %v5723_v27 = vld [vmem:[#allocation11 + $0x6c] ss:$16 sps:$4 sm:$0xff]   ;;  %v5734_v36 = vld [vmem:[#allocation13] ss:$16 sps:$4 sm:$0xff]  }
  0x41   :  { %4956 = vmatpush3.bf16.msra.mxu0 %v5702_v4  ;;  %4980 = vmatpush3.bf16.msra.mxu1 %v5703_v5  ;;  %v5724_v28 = vld [vmem:[#allocation11 + $0x88] ss:$16 sps:$4 sm:$0xff]   ;;  %v5725_v29 = vld [vmem:[#allocation11 + $0x8c] ss:$16 sps:$4 sm:$0xff]   ;;  %v5735_v38 = vld [vmem:[#allocation13 + $0x4] ss:$16 sps:$4 sm:$0xff]  }
  0x42   :  { %4957 = vmatprep.subr.bf16.mxu0 %v5704_v6  ;;  %4981 = vmatprep.subr.bf16.mxu1 %v5705_v7  ;;  %v5726_v30 = vld [vmem:[#allocation11 + $0xa8] ss:$16 sps:$4 sm:$0xff]   ;;  %v5727_v31 = vld [vmem:[#allocation11 + $0xac] ss:$16 sps:$4 sm:$0xff]   ;;  %v5736_v39 = vld [vmem:[#allocation13 + $0x20] ss:$16 sps:$4 sm:$0xff]  }
  0x43   :  { %v5730_v32 = vld [vmem:[#allocation11 + $0xc8] ss:$16 sps:$4 sm:$0xff]   ;;  %v5731_v33 = vld [vmem:[#allocation11 + $0xcc] ss:$16 sps:$4 sm:$0xff]   ;;  %v5737_v40 = vld [vmem:[#allocation13 + $0x24] ss:$16 sps:$4 sm:$0xff]  }
  0x44   :  { %v5732_v34 = vld [vmem:[#allocation11 + $0xe8] ss:$16 sps:$4 sm:$0xff]   ;;  %v5733_v35 = vld [vmem:[#allocation11 + $0xec] ss:$16 sps:$4 sm:$0xff]   ;;  %v5738_v41 = vld [vmem:[#allocation13 + $0x40] ss:$16 sps:$4 sm:$0xff]  }
  0x45   :  { %4958 = vmatpush3.bf16.msra.mxu0 %v5704_v6  ;;  %4982 = vmatpush3.bf16.msra.mxu1 %v5705_v7  ;;  %v5739_v42 = vld [vmem:[#allocation13 + $0x44] ss:$16 sps:$4 sm:$0xff]   ;;  %v5740_v43 = vld [vmem:[#allocation13 + $0x60] ss:$16 sps:$4 sm:$0xff]   ;;  %v5750_v53 = vld [vmem:[#allocation13 + $0x8] ss:$16 sps:$4 sm:$0xff]  }
  0x46   :  { %4959 = vmatprep.subr.bf16.mxu0 %v5706_v8  ;;  %4983 = vmatprep.subr.bf16.mxu1 %v5707_v9  ;;  %v5741_v44 = vld [vmem:[#allocation13 + $0x64] ss:$16 sps:$4 sm:$0xff]   ;;  %v5742_v45 = vld [vmem:[#allocation13 + $0x80] ss:$16 sps:$4 sm:$0xff]   ;;  %v5751_v54 = vld [vmem:[#allocation13 + $0xc] ss:$16 sps:$4 sm:$0xff]  }
  0x47   :  { %v5743_v46 = vld [vmem:[#allocation13 + $0x84] ss:$16 sps:$4 sm:$0xff]   ;;  %v5744_v47 = vld [vmem:[#allocation13 + $0xa0] ss:$16 sps:$4 sm:$0xff]   ;;  %v5752_v55 = vld [vmem:[#allocation13 + $0x28] ss:$16 sps:$4 sm:$0xff]  }
  0x48   :  { %v5745_v48 = vld [vmem:[#allocation13 + $0xa4] ss:$16 sps:$4 sm:$0xff]   ;;  %v5746_v49 = vld [vmem:[#allocation13 + $0xc0] ss:$16 sps:$4 sm:$0xff]   ;;  %v5753_v57 = vld [vmem:[#allocation13 + $0x2c] ss:$16 sps:$4 sm:$0xff]  }
  0x49   :  { %4960 = vmatpush3.bf16.msra.mxu0 %v5706_v8  ;;  %4984 = vmatpush3.bf16.msra.mxu1 %v5707_v9  ;;  %v5747_v50 = vld [vmem:[#allocation13 + $0xc4] ss:$16 sps:$4 sm:$0xff]   ;;  %v5748_v51 = vld [vmem:[#allocation13 + $0xe0] ss:$16 sps:$4 sm:$0xff]   ;;  %v5754_v58 = vld [vmem:[#allocation13 + $0x48] ss:$16 sps:$4 sm:$0xff]  }
  0x4a   :  { %4961 = vmatprep.subr.bf16.mxu0 %v5708_v10  ;;  %4985 = vmatprep.subr.bf16.mxu1 %v5709_v12  ;;  %v5749_v52 = vld [vmem:[#allocation13 + $0xe4] ss:$16 sps:$4 sm:$0xff]   ;;  %v5755_v59 = vld [vmem:[#allocation13 + $0x4c] ss:$16 sps:$4 sm:$0xff]   ;;  %v5756_v60 = vld [vmem:[#allocation13 + $0x68] ss:$16 sps:$4 sm:$0xff]  }
  0x4b   :  { %v5757_v61 = vld [vmem:[#allocation13 + $0x6c] ss:$16 sps:$4 sm:$0xff]   ;;  %v5758_v62 = vld [vmem:[#allocation13 + $0x88] ss:$16 sps:$4 sm:$0xff]   ;;  %v5766_v6 = vld [vmem:[#allocation13] ss:$16 sps:$4 sm:$0xff]  }
  0x4c   :  { %v5759_v63 = vld [vmem:[#allocation13 + $0x8c] ss:$16 sps:$4 sm:$0xff]   ;;  %v5760_v0 = vld [vmem:[#allocation13 + $0xa8] ss:$16 sps:$4 sm:$0xff]   ;;  %v5767_v7 = vld [vmem:[#allocation13 + $0x4] ss:$16 sps:$4 sm:$0xff]  }
  0x4d   :  { %4962 = vmatpush3.bf16.msra.mxu0 %v5708_v10  ;;  %4986 = vmatpush3.bf16.msra.mxu1 %v5709_v12  ;;  %v5761_v1 = vld [vmem:[#allocation13 + $0xac] ss:$16 sps:$4 sm:$0xff]   ;;  %v5762_v2 = vld [vmem:[#allocation13 + $0xc8] ss:$16 sps:$4 sm:$0xff]   ;;  %v5768_v8 = vld [vmem:[#allocation13 + $0x20] ss:$16 sps:$4 sm:$0xff]  }
  0x4e   :  { %4963 = vmatprep.subr.bf16.mxu0 %v5710_v13  ;;  %4987 = vmatprep.subr.bf16.mxu1 %v5711_v14  ;;  %v5763_v3 = vld [vmem:[#allocation13 + $0xcc] ss:$16 sps:$4 sm:$0xff]   ;;  %v5764_v4 = vld [vmem:[#allocation13 + $0xe8] ss:$16 sps:$4 sm:$0xff]   ;;  %v5769_v9 = vld [vmem:[#allocation13 + $0x24] ss:$16 sps:$4 sm:$0xff]  }
  0x4f   :  { %v5765_v5 = vld [vmem:[#allocation13 + $0xec] ss:$16 sps:$4 sm:$0xff]   ;;  %v5770_v10 = vld [vmem:[#allocation13 + $0x40] ss:$16 sps:$4 sm:$0xff]  }
  0x50   :  { %v5772_v12 = vld [vmem:[#allocation13 + $0x60] ss:$16 sps:$4 sm:$0xff]  }
  0x51   :  { %4964 = vmatpush3.bf16.msra.mxu0 %v5710_v13  ;;  %4988 = vmatpush3.bf16.msra.mxu1 %v5711_v14  ;;  %v5773_v13 = vld [vmem:[#allocation13 + $0x64] ss:$16 sps:$4 sm:$0xff]   ;;  %v5774_v14 = vld [vmem:[#allocation13 + $0x80] ss:$16 sps:$4 sm:$0xff]  }
  0x52   :  { %4965 = vmatprep.subr.bf16.mxu0 %v5712_v15  ;;  %4989 = vmatprep.subr.bf16.mxu1 %v5713_v16 }
  0x55   :  { %4966 = vmatpush3.bf16.msra.mxu0 %v5712_v15  ;;  %4990 = vmatpush3.bf16.msra.mxu1 %v5713_v16  ;;  %v5775_v15 = vld [vmem:[#allocation13 + $0x84] ss:$16 sps:$4 sm:$0xff]   ;;  %v5776_v16 = vld [vmem:[#allocation13 + $0xa0] ss:$16 sps:$4 sm:$0xff]  }
  0x56   :  { %4999 = vmatprep.subr.bf16.mxu0 %v5716_v17  ;;  %5023 = vmatprep.subr.bf16.mxu1 %v5717_v18 }
  0x58   :  { %4968 = vmatmul.mubr.bf16.vlgmr.msra.gmra.mrb[0].mxu0 %v6245_v19  ;;  %4992 = vmatmul.mubr.bf16.vlgmr.msra.gmra.mrb[0].mxu1 %v6245_v19 }
  0x59   :  { %5000 = vmatpush3.bf16.msra.mxu0 %v5716_v17  ;;  %5024 = vmatpush3.bf16.msra.mxu1 %v5717_v18  ;;  %v5777_v17 = vld [vmem:[#allocation13 + $0xa4] ss:$16 sps:$4 sm:$0xff]   ;;  %v5778_v18 = vld [vmem:[#allocation13 + $0xc0] ss:$16 sps:$4 sm:$0xff]  }
  0x5a   :  { %5001 = vmatprep.subr.bf16.mxu0 %v5718_v20  ;;  %5025 = vmatprep.subr.bf16.mxu1 %v5719_v21 }
  0x5b   :  { %4971 = vmatprep.mubr.bf16.mxu0 %v6247_v22  ;;  %4995 = vmatprep.mubr.bf16.mxu1 %v6247_v22 }
  0x5d   :  { %5002 = vmatpush3.bf16.msra.mxu0 %v5718_v20  ;;  %5026 = vmatpush3.bf16.msra.mxu1 %v5719_v21  ;;  %v5780_v20 = vld [vmem:[#allocation13 + $0xe0] ss:$16 sps:$4 sm:$0xff]   ;;  %v5781_v21 = vld [vmem:[#allocation13 + $0xe4] ss:$16 sps:$4 sm:$0xff]  }
  0x5e   :  { %5003 = vmatprep.subr.bf16.mxu0 %v5720_v23  ;;  %5027 = vmatprep.subr.bf16.mxu1 %v5721_v24 }
  0x60   :  { %4972 = vmatmul.mubr.bf16.gmra.mrb[4].mxu0 %v6252_v25  ;;  %4996 = vmatmul.mubr.bf16.gmra.mrb[4].mxu1 %v6252_v25 }
  0x61   :  { %5004 = vmatpush3.bf16.msra.mxu0 %v5720_v23  ;;  %5028 = vmatpush3.bf16.msra.mxu1 %v5721_v24  ;;  %v6331_v23 = vld [vmem:[%s6744_s2 + $0x1] ss:$0 sm:$0xff] }
  0x62   :  { %5005 = vmatprep.subr.bf16.mxu0 %v5722_v26  ;;  %5029 = vmatprep.subr.bf16.mxu1 %v5723_v27 }
  0x63   :  { %5015 = vmatprep.mubr.bf16.mxu0 %v5714_v11  ;;  %5039 = vmatprep.mubr.bf16.mxu1 %v5714_v11  ;;  %v5771_v11 = vld [vmem:[#allocation13 + $0x44] ss:$16 sps:$4 sm:$0xff]  }
  0x65   :  { %5006 = vmatpush3.bf16.msra.mxu0 %v5722_v26  ;;  %5030 = vmatpush3.bf16.msra.mxu1 %v5723_v27 }
  0x66   :  { %5007 = vmatprep.subr.bf16.mxu0 %v5724_v28  ;;  %5031 = vmatprep.subr.bf16.mxu1 %v5725_v29 }
  0x69   :  { %5008 = vmatpush3.bf16.msra.mxu0 %v5724_v28  ;;  %5032 = vmatpush3.bf16.msra.mxu1 %v5725_v29 }
  0x6a   :  { %5009 = vmatprep.subr.bf16.mxu0 %v5726_v30  ;;  %5033 = vmatprep.subr.bf16.mxu1 %v5727_v31 }
  0x6d   :  { %5010 = vmatpush3.bf16.msra.mxu0 %v5726_v30  ;;  %5034 = vmatpush3.bf16.msra.mxu1 %v5727_v31 }
  0x6e   :  { %5011 = vmatprep.subr.bf16.mxu0 %v5730_v32  ;;  %5035 = vmatprep.subr.bf16.mxu1 %v5731_v33 }
  0x71   :  { %5012 = vmatpush3.bf16.msra.mxu0 %v5730_v32  ;;  %5036 = vmatpush3.bf16.msra.mxu1 %v5731_v33 }
  0x72   :  { %5013 = vmatprep.subr.bf16.mxu0 %v5732_v34  ;;  %5037 = vmatprep.subr.bf16.mxu1 %v5733_v35 }
  0x75   :  { %5014 = vmatpush3.bf16.msra.mxu0 %v5732_v34  ;;  %5038 = vmatpush3.bf16.msra.mxu1 %v5733_v35 }
  0x76   :  { %5047 = vmatprep.subr.bf16.mxu0 %v6171_v37  ;;  %5067 = vmatprep.subr.bf16.mxu1 %v6171_v37 }
  0x78   :  { %5016 = vmatmul.mubr.bf16.vlgmr.msra.gmra.mrb[8].mxu0 %v6245_v19  ;;  %5040 = vmatmul.mubr.bf16.vlgmr.msra.gmra.mrb[8].mxu1 %v6245_v19  ;;  %v5779_v19 = vld [vmem:[#allocation13 + $0xc4] ss:$16 sps:$4 sm:$0xff]  }
  0x79   :  { %5048 = vmatpush3.bf16.msra.mxu0 %v5734_v36  ;;  %5068 = vmatpush3.bf16.msra.mxu1 %v5735_v38 }
  0x7a   :  { %5049 = vmatprep.subr.bf16.mxu0 %v6171_v37  ;;  %5069 = vmatprep.subr.bf16.mxu1 %v6171_v37 }
  0x7b   :  { %5019 = vmatprep.mubr.bf16.mxu0 %v6247_v22  ;;  %5043 = vmatprep.mubr.bf16.mxu1 %v6247_v22  ;;  %v6326_v22 = vld [vmem:[%s6744_s2] ss:$0 sm:$0xff] }
  0x7d   :  { %5050 = vmatpush3.bf16.msra.mxu0 %v5736_v39  ;;  %5070 = vmatpush3.bf16.msra.mxu1 %v5737_v40 }
  0x7e   :  { %5051 = vmatprep.subr.bf16.mxu0 %v6171_v37  ;;  %5071 = vmatprep.subr.bf16.mxu1 %v6171_v37 }
  0x80   :  { %5020 = vmatmul.mubr.bf16.gmra.mrb[12].mxu0 %v6252_v25  ;;  %5044 = vmatmul.mubr.bf16.gmra.mrb[12].mxu1 %v6252_v25 }
  0x81   :  { %5052 = vmatpush3.bf16.msra.mxu0 %v5738_v41  ;;  %5072 = vmatpush3.bf16.msra.mxu1 %v5739_v42 }
  0x82   :  { %5053 = vmatprep.subr.bf16.mxu0 %v6171_v37  ;;  %5073 = vmatprep.subr.bf16.mxu1 %v6171_v37 }
  0x83   :  { %5063 = vmatprep.mubr.msk.bf16.mxu0 %vm6172_vm0, %v6171_v37  ;;  %5083 = vmatprep.mubr.msk.bf16.mxu1 %vm6172_vm0, %v6171_v37 }
  0x85   :  { %5054 = vmatpush3.bf16.msra.mxu0 %v5740_v43  ;;  %5074 = vmatpush3.bf16.msra.mxu1 %v5741_v44 }
  0x86   :  { %5055 = vmatprep.subr.bf16.mxu0 %v6171_v37  ;;  %5075 = vmatprep.subr.bf16.mxu1 %v6171_v37 }
  0x89   :  { %5056 = vmatpush3.bf16.msra.mxu0 %v5742_v45  ;;  %5076 = vmatpush3.bf16.msra.mxu1 %v5743_v46 }
  0x8a   :  { %5057 = vmatprep.subr.bf16.mxu0 %v6171_v37  ;;  %5077 = vmatprep.subr.bf16.mxu1 %v6171_v37 }
  0x8d   :  { %5058 = vmatpush3.bf16.msra.mxu0 %v5744_v47  ;;  %5078 = vmatpush3.bf16.msra.mxu1 %v5745_v48 }
  0x8e   :  { %5059 = vmatprep.subr.bf16.mxu0 %v6171_v37  ;;  %5079 = vmatprep.subr.bf16.mxu1 %v6171_v37 }
  0x91   :  { %5060 = vmatpush3.bf16.msra.mxu0 %v5746_v49  ;;  %5080 = vmatpush3.bf16.msra.mxu1 %v5747_v50 }
  0x92   :  { %5061 = vmatprep.subr.bf16.mxu0 %v6171_v37  ;;  %5081 = vmatprep.subr.bf16.mxu1 %v6171_v37 }
  0x95   :  { %5062 = vmatpush3.bf16.msra.mxu0 %v5748_v51  ;;  %5082 = vmatpush3.bf16.msra.mxu1 %v5749_v52 }
  0x96   :  { %5087 = vmatprep.subr.bf16.mxu0 %v6171_v37  ;;  %5107 = vmatprep.subr.bf16.mxu1 %v6171_v37 }
  0x98   :  { %5064 = vmatmul.mubr.bf16.vlgmr.msra.gmra.mrb[16].mxu0 %v6173_v56  ;;  %5084 = vmatmul.mubr.bf16.vlgmr.msra.gmra.mrb[16].mxu1 %v6173_v56 }
  0x99   :  { %5088 = vmatpush3.bf16.msra.mxu0 %v5750_v53  ;;  %5108 = vmatpush3.bf16.msra.mxu1 %v5751_v54 }
  0x9a   :  { %5089 = vmatprep.subr.bf16.mxu0 %v6171_v37  ;;  %5109 = vmatprep.subr.bf16.mxu1 %v6171_v37 }
  0x9b   :  { %5103 = vmatprep.mubr.msk.bf16.mxu0 %vm6172_vm0, %v6171_v37  ;;  %5123 = vmatprep.mubr.msk.bf16.mxu1 %vm6172_vm0, %v6171_v37 }
  0x9d   :  { %5090 = vmatpush3.bf16.msra.mxu0 %v5752_v55  ;;  %5110 = vmatpush3.bf16.msra.mxu1 %v5753_v57  ;;  %v4341_v55 = vld [vmem:[%s6744_s2 + $0x2] ss:$0 sm:$0xff] }
  0x9e   :  { %5091 = vmatprep.subr.bf16.mxu0 %v6171_v37  ;;  %5111 = vmatprep.subr.bf16.mxu1 %v6171_v37 }
  0xa1   :  { %5092 = vmatpush3.bf16.msra.mxu0 %v5754_v58  ;;  %5112 = vmatpush3.bf16.msra.mxu1 %v5755_v59 }
  0xa2   :  { %5093 = vmatprep.subr.bf16.mxu0 %v6171_v37  ;;  %5113 = vmatprep.subr.bf16.mxu1 %v6171_v37 }
  0xa5   :  { %5094 = vmatpush3.bf16.msra.mxu0 %v5756_v60  ;;  %5114 = vmatpush3.bf16.msra.mxu1 %v5757_v61 }
  0xa6   :  { %5095 = vmatprep.subr.bf16.mxu0 %v6171_v37  ;;  %5115 = vmatprep.subr.bf16.mxu1 %v6171_v37 }
  0xa9   :  { %5096 = vmatpush3.bf16.msra.mxu0 %v5758_v62  ;;  %5116 = vmatpush3.bf16.msra.mxu1 %v5759_v63 }
  0xaa   :  { %5097 = vmatprep.subr.bf16.mxu0 %v6171_v37  ;;  %5117 = vmatprep.subr.bf16.mxu1 %v6171_v37 }
  0xad   :  { %5098 = vmatpush3.bf16.msra.mxu0 %v5760_v0  ;;  %5118 = vmatpush3.bf16.msra.mxu1 %v5761_v1 }
  0xae   :  { %5099 = vmatprep.subr.bf16.mxu0 %v6171_v37  ;;  %5119 = vmatprep.subr.bf16.mxu1 %v6171_v37 }
  0xb1   :  { %5100 = vmatpush3.bf16.msra.mxu0 %v5762_v2  ;;  %5120 = vmatpush3.bf16.msra.mxu1 %v5763_v3 }
  0xb2   :  { %5101 = vmatprep.subr.bf16.mxu0 %v6171_v37  ;;  %5121 = vmatprep.subr.bf16.mxu1 %v6171_v37 }
  0xb5   :  { %5102 = vmatpush3.bf16.msra.mxu0 %v5764_v4  ;;  %5122 = vmatpush3.bf16.msra.mxu1 %v5765_v5 }
  0xb6   :  { %5127 = vmatprep.subr.bf16.mxu0 %v6171_v37  ;;  %5147 = vmatprep.subr.bf16.mxu1 %v6171_v37 }
  0xb8   :  { %5104 = vmatmul.mubr.bf16.vlgmr.msra.gmra.mrb[20].mxu0 %v6173_v56  ;;  %5124 = vmatmul.mubr.bf16.vlgmr.msra.gmra.mrb[20].mxu1 %v6173_v56  ;;  %v4350_v56 = vld [vmem:[%s6744_s2 + $0x3] ss:$0 sm:$0xff]  ;;  %s6174_s2 = smov [#allocation14]  }
  0xb9   :  { %5143 = vmatprep.mubr.msk.bf16.mxu0 %vm6172_vm0, %v6171_v37  ;;  %5163 = vmatprep.mubr.msk.bf16.mxu1 %vm6172_vm0, %v6171_v37  ;;  %s4306_s8 = sshll.u32 %s6174_s2, 4  ;;  %s4307_s8 = int_to_ptr.vmem [resolvable:$true] %s4306_s8 }
  0xba   :  { %5128 = vmatpush3.bf16.msra.mxu0 %v5766_v6  ;;  %5148 = vmatpush3.bf16.msra.mxu1 %v5767_v7  ;;  %s6136_s9 = scalar_lea.vmem %s4307_s8, 512  ;;  %p6141_p11 = scmp.lt.s32.totalorder %s4307_s8, %s4307_s8 }
  0xbb   :  { %5129 = vmatprep.subr.bf16.mxu0 %v6171_v37  ;;  %5149 = vmatprep.subr.bf16.mxu1 %v6171_v37  ;;  %p6137_p10 = scmp.ne.s32.totalorder %s4307_s8, %s6136_s9  ;;  %p6142_p12 = scmp.lt.s32.totalorder %s6136_s9, %s6136_s9 }
  0xbd   :  { %p6143_p13 = por %p6142_p12, %p6141_p11 }
  0xbe   :  { %5130 = vmatpush3.bf16.msra.mxu0 %v5768_v8  ;;  %5150 = vmatpush3.bf16.msra.mxu1 %v5769_v9 }
  0xbf   :  { %5131 = vmatprep.subr.bf16.mxu0 %v6171_v37  ;;  %5151 = vmatprep.subr.bf16.mxu1 %v6171_v37  ;;  %p6144_p0 = pnand %p6143_p13, %p6137_p10 }
  0xc2   :  { %5132 = vmatpush3.bf16.msra.mxu0 %v5770_v10  ;;  %5152 = vmatpush3.bf16.msra.mxu1 %v5771_v11 }
  0xc3   :  { %5133 = vmatprep.subr.bf16.mxu0 %v6171_v37  ;;  %5153 = vmatprep.subr.bf16.mxu1 %v6171_v37 }
  0xc6   :  { %5134 = vmatpush3.bf16.msra.mxu0 %v5772_v12  ;;  %5154 = vmatpush3.bf16.msra.mxu1 %v5773_v13 }
  0xc7   :  { %5135 = vmatprep.subr.bf16.mxu0 %v6171_v37  ;;  %5155 = vmatprep.subr.bf16.mxu1 %v6171_v37 }
  0xca   :  { %5136 = vmatpush3.bf16.msra.mxu0 %v5774_v14  ;;  %5156 = vmatpush3.bf16.msra.mxu1 %v5775_v15 }
  0xcb   :  { %5137 = vmatprep.subr.bf16.mxu0 %v6171_v37  ;;  %5157 = vmatprep.subr.bf16.mxu1 %v6171_v37 }
  0xce   :  { %5138 = vmatpush3.bf16.msra.mxu0 %v5776_v16  ;;  %5158 = vmatpush3.bf16.msra.mxu1 %v5777_v17 }
  0xcf   :  { %5139 = vmatprep.subr.bf16.mxu0 %v6171_v37  ;;  %5159 = vmatprep.subr.bf16.mxu1 %v6171_v37 }
  0xd2   :  { %5140 = vmatpush3.bf16.msra.mxu0 %v5778_v18  ;;  %5160 = vmatpush3.bf16.msra.mxu1 %v5779_v19 }
  0xd3   :  { %5141 = vmatprep.subr.bf16.mxu0 %v6171_v37  ;;  %5161 = vmatprep.subr.bf16.mxu1 %v6171_v37 }
  0xd6   :  { %5142 = vmatpush3.bf16.msra.mxu0 %v5780_v20  ;;  %5162 = vmatpush3.bf16.msra.mxu1 %v5781_v21 }
  0xd7   :  { %5167 = vmatprep.subr.bf16.mxu0 %v6171_v37  ;;  %5187 = vmatprep.subr.bf16.mxu1 %v6171_v37 }
 0x12b   :  { %v4969_v24 = vpop.f32.mrb[0].mxu0  ;;  %v4993_v27 = vpop.f32.mrb[0].mxu1 }
 0x12c   :  { %v6336_v25 = vadd.f32 %v4969_v24, %v6326_v22  ;;  %v203_v26 = vpop.f32.mrb[1].mxu0  ;;  %v6339_v29 = vadd.f32 %v4993_v27, %v6331_v23  ;;  %v347_v30 = vpop.f32.mrb[1].mxu1 }
 0x12d   :  { %v4970_v28 = vpop.f32.mrb[2].mxu0  ;;  %v4994_v33 = vpop.f32.mrb[2].mxu1  ;;  %v204_v27 = vadd.f32 %v6326_v22, %v203_v26 }
 0x12e   :  { %v6342_v31 = vadd.f32 %v4970_v28, %v6326_v22  ;;  %v206_v32 = vpop.f32.mrb[3].mxu0  ;;  %v6348_v35 = vadd.f32 %v4994_v33, %v6331_v23  ;;  %v350_v36 = vpop.f32.mrb[3].mxu1  ;;  %v348_v28 = vadd.f32 %v6331_v23, %v347_v30 }
 0x12f   :  { %v6345_v34 = vadd.f32 %v6326_v22, %v206_v32  ;;  %v6351_v38 = vadd.f32 %v6331_v23, %v350_v36 }
 0x133   :  { %v4973_v39 = vpop.f32.mrb[4].mxu0  ;;  %v4997_v42 = vpop.f32.mrb[4].mxu1 }
 0x134   :  { %v6354_v40 = vadd.f32 %v4973_v39, %v6326_v22  ;;  %v219_v41 = vpop.f32.mrb[5].mxu0  ;;  %v6360_v45 = vadd.f32 %v4997_v42, %v6331_v23  ;;  %v363_v46 = vpop.f32.mrb[5].mxu1 }
 0x135   :  { %v6357_v43 = vadd.f32 %v6326_v22, %v219_v41  ;;  %v4974_v44 = vpop.f32.mrb[6].mxu0  ;;  %v6366_v49 = vadd.f32 %v6331_v23, %v363_v46  ;;  %v4998_v50 = vpop.f32.mrb[6].mxu1 }
 0x136   :  { %v6363_v47 = vadd.f32 %v4974_v44, %v6326_v22  ;;  %v222_v48 = vpop.f32.mrb[7].mxu0  ;;  %v6372_v52 = vadd.f32 %v4998_v50, %v6331_v23  ;;  %v366_v53 = vpop.f32.mrb[7].mxu1 }
 0x137   :  { %v6369_v51 = vadd.f32 %v6326_v22, %v222_v48  ;;  %v6375_v54 = vadd.f32 %v6331_v23, %v366_v53 }
 0x14b   :  { %v5017_v57 = vpop.f32.mrb[8].mxu0  ;;  %v5041_v60 = vpop.f32.mrb[8].mxu1 }
 0x14c   :  { %v6383_v58 = vadd.f32 %v5017_v57, %v4341_v55  ;;  %v491_v59 = vpop.f32.mrb[9].mxu0  ;;  %v6385_v62 = vadd.f32 %v5041_v60, %v4350_v56  ;;  %v635_v63 = vpop.f32.mrb[9].mxu1 }
 0x14d   :  { %v5018_v61 = vpop.f32.mrb[10].mxu0  ;;  %v5042_v2 = vpop.f32.mrb[10].mxu1  ;;  %v492_v60 = vadd.f32 %v4341_v55, %v491_v59 }
 0x14e   :  { %v6387_v0 = vadd.f32 %v5018_v61, %v4341_v55  ;;  %v494_v1 = vpop.f32.mrb[11].mxu0  ;;  %v6391_v4 = vadd.f32 %v5042_v2, %v4350_v56  ;;  %v638_v5 = vpop.f32.mrb[11].mxu1  ;;  %v636_v61 = vadd.f32 %v4350_v56, %v635_v63 }
 0x14f   :  { %v6389_v3 = vadd.f32 %v4341_v55, %v494_v1  ;;  %v6393_v6 = vadd.f32 %v4350_v56, %v638_v5 }
 0x153   :  { %v5021_v7 = vpop.f32.mrb[12].mxu0  ;;  %v5045_v10 = vpop.f32.mrb[12].mxu1 }
 0x154   :  { %v6395_v8 = vadd.f32 %v5021_v7, %v4341_v55  ;;  %v507_v9 = vpop.f32.mrb[13].mxu0  ;;  %v6399_v13 = vadd.f32 %v5045_v10, %v4350_v56  ;;  %v651_v14 = vpop.f32.mrb[13].mxu1 }
 0x155   :  { %v6397_v11 = vadd.f32 %v4341_v55, %v507_v9  ;;  %v5022_v12 = vpop.f32.mrb[14].mxu0  ;;  %v6403_v17 = vadd.f32 %v4350_v56, %v651_v14  ;;  %v5046_v18 = vpop.f32.mrb[14].mxu1 }
 0x156   :  { %v6401_v15 = vadd.f32 %v5022_v12, %v4341_v55  ;;  %v510_v16 = vpop.f32.mrb[15].mxu0  ;;  %v6407_v20 = vadd.f32 %v5046_v18, %v4350_v56  ;;  %v654_v21 = vpop.f32.mrb[15].mxu1 }
 0x157   :  { %v6405_v19 = vadd.f32 %v4341_v55, %v510_v16  ;;  %v6409_v24 = vadd.f32 %v4350_v56, %v654_v21 }
 0x16b   :  { %v776_v32 = vpop.f32.mrb[16].mxu0  ;;  %v886_v36 = vpop.f32.mrb[16].mxu1 }
 0x16c   :  { %v782_v33 = vadd.f32 %v776_v32, %v204_v27  ;;  %v5065_v39 = vpop.f32.mrb[17].mxu0  ;;  %v892_v41 = vadd.f32 %v886_v36, %v348_v28  ;;  %v5085_v44 = vpop.f32.mrb[17].mxu1 }
 0x16d   :  { %v779_v42 = vpop.f32.mrb[18].mxu0  ;;  %v889_v48 = vpop.f32.mrb[18].mxu1  ;;  %v5783_v44 = vld [vmem:[#allocation13 + $0xc] ss:$16 sps:$4 sm:$0xff]  }
 0x16e   :  { %v5066_v46 = vpop.f32.mrb[19].mxu0  ;;  %v5086_v50 = vpop.f32.mrb[19].mxu1  ;;  %v893_v53 = vmul.f32 0.5, %v892_v41  ;;  %v783_v57 = vmul.f32 0.5, %v782_v33  ;;  %v5782_v42 = vld [vmem:[#allocation13 + $0x8] ss:$16 sps:$4 sm:$0xff]  }
 0x16f   :  { %v5784_v48 = vld [vmem:[#allocation13 + $0x28] ss:$16 sps:$4 sm:$0xff]   ;;  %v5785_v50 = vld [vmem:[#allocation13 + $0x2c] ss:$16 sps:$4 sm:$0xff]  }
 0x170   :  { %5990 = vtanh.f32 %v893_v53  ;;  %v5786_v53 = vld [vmem:[#allocation13 + $0x48] ss:$16 sps:$4 sm:$0xff]  }
 0x171   :  { %5992 = vtanh.f32 %v783_v57  ;;  %v5787_v57 = vld [vmem:[#allocation13 + $0x4c] ss:$16 sps:$4 sm:$0xff]  }
 0x17a   :  { %v5991_v7 = vpop.eup %5990 }
 0x17b   :  { %v5993_v14 = vpop.eup %5992  ;;  %v895_v16 = vmul.f32 0.5, %v5991_v7  ;;  %v5797_v7 = vld [vmem:[#allocation13 + $0xec] ss:$16 sps:$4 sm:$0xff]  }
 0x17c   :  { %v785_v21 = vmul.f32 0.5, %v5993_v14  ;;  %v5801_v14 = vld [vmem:[#allocation13 + $0x24] ss:$16 sps:$4 sm:$0xff]  }
 0x17d   :  { %v896_v27 = vadd.f32 0.5, %v895_v16  ;;  %v5802_v16 = vld [vmem:[#allocation13 + $0x40] ss:$16 sps:$4 sm:$0xff]  }
 0x17e   :  { %v786_v55 = vadd.f32 0.5, %v785_v21  ;;  %v5804_v21 = vld [vmem:[#allocation13 + $0x60] ss:$16 sps:$4 sm:$0xff]  }
 0x17f   :  { %v1114_v59 = vmul.f32 0.0, %v896_v27  ;;  %v5805_v27 = vld [vmem:[#allocation13 + $0x64] ss:$16 sps:$4 sm:$0xff]  }
 0x18b   :  { %v996_v1 = vpop.f32.mrb[20].mxu0  ;;  %v1103_v26 = vpop.f32.mrb[20].mxu1 }
 0x18c   :  { %v1002_v22 = vadd.f32 %v996_v1, %v492_v60  ;;  %v5105_v23 = vpop.f32.mrb[21].mxu0  ;;  %v1109_v30 = vadd.f32 %v1103_v26, %v636_v61  ;;  %v5125_v5 = vpop.f32.mrb[21].mxu1  ;;  %v5788_v60 = vld [vmem:[#allocation13 + $0x68] ss:$16 sps:$4 sm:$0xff]   ;;  %v5789_v61 = vld [vmem:[#allocation13 + $0x6c] ss:$16 sps:$4 sm:$0xff]  }
 0x18d   :  { %v999_v2 = vpop.f32.mrb[22].mxu0  ;;  %v1106_v10 = vpop.f32.mrb[22].mxu1  ;;  %v5790_v1 = vld [vmem:[#allocation13 + $0x88] ss:$16 sps:$4 sm:$0xff]   ;;  %v5793_v23 = vld [vmem:[#allocation13 + $0xac] ss:$16 sps:$4 sm:$0xff]  }
 0x18e   :  { %5994 = vtanh.f32 %v1002_v22  ;;  %v5106_v9 = vpop.f32.mrb[23].mxu0  ;;  %v5126_v12 = vpop.f32.mrb[23].mxu1  ;;  %v1110_v18 = vmul.f32 0.5, %v1109_v30  ;;  %v5791_v22 = vld [vmem:[#allocation13 + $0x8c] ss:$16 sps:$4 sm:$0xff]  }
 0x18f   :  { %v5792_v26 = vld [vmem:[#allocation13 + $0xa8] ss:$16 sps:$4 sm:$0xff]   ;;  %v5795_v2 = vld [vmem:[#allocation13 + $0xcc] ss:$16 sps:$4 sm:$0xff]   ;;  %v5798_v9 = vld [vmem:[#allocation13] ss:$16 sps:$4 sm:$0xff]  }
 0x190   :  { %5996 = vtanh.f32 %v1110_v18  ;;  %v5794_v30 = vld [vmem:[#allocation13 + $0xc8] ss:$16 sps:$4 sm:$0xff]   ;;  %v5799_v10 = vld [vmem:[#allocation13 + $0x4] ss:$16 sps:$4 sm:$0xff]   ;;  %v5800_v12 = vld [vmem:[#allocation13 + $0x20] ss:$16 sps:$4 sm:$0xff]  }
 0x191   :  { %v5796_v5 = vld [vmem:[#allocation13 + $0xe8] ss:$16 sps:$4 sm:$0xff]   ;;  %v5803_v18 = vld [vmem:[#allocation13 + $0x44] ss:$16 sps:$4 sm:$0xff]  }
 0x198   :  { %v5995_v56 = vpop.eup %5994 }
 0x199   :  { %v1115_v63 = vmul.f32 %v5995_v56, %v786_v55  ;;  %v5806_v55 = vld [vmem:[#allocation13 + $0x80] ss:$16 sps:$4 sm:$0xff]   ;;  %v5807_v56 = vld [vmem:[#allocation13 + $0x84] ss:$16 sps:$4 sm:$0xff]  }
 0x19a   :  { %v5997_v32 = vpop.eup %5996 }
 0x19b   :  { %v6413_v28 = vadd.f32 %v1115_v63, %v1114_v59  ;;  %v1112_v33 = vmul.f32 0.5, %v5997_v32  ;;  %v5808_v59 = vld [vmem:[#allocation13 + $0xa0] ss:$16 sps:$4 sm:$0xff]   ;;  %v5809_v63 = vld [vmem:[#allocation13 + $0xa4] ss:$16 sps:$4 sm:$0xff]  }
 0x19c   :  { %v5810_v32 = vld [vmem:[#allocation13 + $0xc0] ss:$16 sps:$4 sm:$0xff]  }
 0x19d   :  { %5998 = vtanh.f32 %v6413_v28  ;;  %v1113_v36 = vadd.f32 0.5, %v1112_v33  ;;  %v5811_v33 = vld [vmem:[#allocation13 + $0xc4] ss:$16 sps:$4 sm:$0xff]  }
 0x1a7   :  { %v5999_v39 = vpop.eup %5998 }
 0x1a8   :  { %v1118_v41 = vmul.f32 %v5999_v39, %v1113_v36  ;;  %v5812_v36 = vld [vmem:[#allocation13 + $0xe0] ss:$16 sps:$4 sm:$0xff]   ;;  %v5813_v39 = vld [vmem:[#allocation13 + $0xe4] ss:$16 sps:$4 sm:$0xff]  }
 0x1aa   :  { %v1121_v46 = vpack.c.bf16 %v1118_v41, %v1118_v41 }
 0x1ac   :  { %1122 = vst [vmem:[#allocation14] sm:$0xf] %v1121_v46  ;;  %5144 = vmatmul.mubr.bf16.vlgmr.msra.gmra.mrb[24].mxu0 %v1121_v46  ;;  %5164 = vmatmul.mubr.bf16.vlgmr.msra.gmra.mrb[24].mxu1 %v1121_v46 }
 0x1ad   :  { %5168 = vmatpush3.bf16.msra.mxu0 %v5782_v42  ;;  %5188 = vmatpush3.bf16.msra.mxu1 %v5783_v44 }
 0x1ae   :  { %5169 = vmatprep.subr.bf16.mxu0 %v6171_v37  ;;  %5189 = vmatprep.subr.bf16.mxu1 %v6171_v37 }
 0x1af   :  { %5183 = vmatprep.mubr.msk.bf16.mxu0 %vm6172_vm0, %v6171_v37  ;;  %5203 = vmatprep.mubr.msk.bf16.mxu1 %vm6172_vm0, %v6171_v37 }
 0x1b1   :  { %5170 = vmatpush3.bf16.msra.mxu0 %v5784_v48  ;;  %5190 = vmatpush3.bf16.msra.mxu1 %v5785_v50 }
 0x1b2   :  { %5171 = vmatprep.subr.bf16.mxu0 %v6171_v37  ;;  %5191 = vmatprep.subr.bf16.mxu1 %v6171_v37 }
 0x1b5   :  { %5172 = vmatpush3.bf16.msra.mxu0 %v5786_v53  ;;  %5192 = vmatpush3.bf16.msra.mxu1 %v5787_v57 }
 0x1b6   :  { %5173 = vmatprep.subr.bf16.mxu0 %v6171_v37  ;;  %5193 = vmatprep.subr.bf16.mxu1 %v6171_v37 }
 0x1b9   :  { %5174 = vmatpush3.bf16.msra.mxu0 %v5788_v60  ;;  %5194 = vmatpush3.bf16.msra.mxu1 %v5789_v61 }
 0x1ba   :  { %5175 = vmatprep.subr.bf16.mxu0 %v6171_v37  ;;  %5195 = vmatprep.subr.bf16.mxu1 %v6171_v37 }
 0x1bd   :  { %5176 = vmatpush3.bf16.msra.mxu0 %v5790_v1  ;;  %5196 = vmatpush3.bf16.msra.mxu1 %v5791_v22 }
 0x1be   :  { %5177 = vmatprep.subr.bf16.mxu0 %v6171_v37  ;;  %5197 = vmatprep.subr.bf16.mxu1 %v6171_v37 }
 0x1c1   :  { %5178 = vmatpush3.bf16.msra.mxu0 %v5792_v26  ;;  %5198 = vmatpush3.bf16.msra.mxu1 %v5793_v23 }
 0x1c2   :  { %5179 = vmatprep.subr.bf16.mxu0 %v6171_v37  ;;  %5199 = vmatprep.subr.bf16.mxu1 %v6171_v37 }
 0x1c5   :  { %5180 = vmatpush3.bf16.msra.mxu0 %v5794_v30  ;;  %5200 = vmatpush3.bf16.msra.mxu1 %v5795_v2 }
 0x1c6   :  { %5181 = vmatprep.subr.bf16.mxu0 %v6171_v37  ;;  %5201 = vmatprep.subr.bf16.mxu1 %v6171_v37 }
 0x1c9   :  { %5182 = vmatpush3.bf16.msra.mxu0 %v5796_v5  ;;  %5202 = vmatpush3.bf16.msra.mxu1 %v5797_v7 }
 0x1ca   :  { %5207 = vmatprep.subr.bf16.mxu0 %v6171_v37  ;;  %5227 = vmatprep.subr.bf16.mxu1 %v6171_v37 }
 0x1cc   :  { %5184 = vmatmul.mubr.bf16.vlgmr.msra.gmra.mrb[28].mxu0 %v1121_v46  ;;  %5204 = vmatmul.mubr.bf16.vlgmr.msra.gmra.mrb[28].mxu1 %v1121_v46 }
 0x1cd   :  { %5223 = vmatprep.mubr.msk.bf16.mxu0 %vm6172_vm0, %v6171_v37  ;;  %5243 = vmatprep.mubr.msk.bf16.mxu1 %vm6172_vm0, %v6171_v37 }
 0x1ce   :  { %5208 = vmatpush3.bf16.msra.mxu0 %v5798_v9  ;;  %5228 = vmatpush3.bf16.msra.mxu1 %v5799_v10 }
 0x1cf   :  { %5209 = vmatprep.subr.bf16.mxu0 %v6171_v37  ;;  %5229 = vmatprep.subr.bf16.mxu1 %v6171_v37 }
 0x1d2   :  { %5210 = vmatpush3.bf16.msra.mxu0 %v5800_v12  ;;  %5230 = vmatpush3.bf16.msra.mxu1 %v5801_v14 }
 0x1d3   :  { %5211 = vmatprep.subr.bf16.mxu0 %v6171_v37  ;;  %5231 = vmatprep.subr.bf16.mxu1 %v6171_v37 }
 0x1d6   :  { %5212 = vmatpush3.bf16.msra.mxu0 %v5802_v16  ;;  %5232 = vmatpush3.bf16.msra.mxu1 %v5803_v18 }
 0x1d7   :  { %5213 = vmatprep.subr.bf16.mxu0 %v6171_v37  ;;  %5233 = vmatprep.subr.bf16.mxu1 %v6171_v37 }
 0x1da   :  { %5214 = vmatpush3.bf16.msra.mxu0 %v5804_v21  ;;  %5234 = vmatpush3.bf16.msra.mxu1 %v5805_v27 }
 0x1db   :  { %5215 = vmatprep.subr.bf16.mxu0 %v6171_v37  ;;  %5235 = vmatprep.subr.bf16.mxu1 %v6171_v37 }
 0x1de   :  { %5216 = vmatpush3.bf16.msra.mxu0 %v5806_v55  ;;  %5236 = vmatpush3.bf16.msra.mxu1 %v5807_v56 }
 0x1df   :  { %5217 = vmatprep.subr.bf16.mxu0 %v6171_v37  ;;  %5237 = vmatprep.subr.bf16.mxu1 %v6171_v37 }
 0x1e2   :  { %5218 = vmatpush3.bf16.msra.mxu0 %v5808_v59  ;;  %5238 = vmatpush3.bf16.msra.mxu1 %v5809_v63 }
 0x1e3   :  { %5219 = vmatprep.subr.bf16.mxu0 %v6171_v37  ;;  %5239 = vmatprep.subr.bf16.mxu1 %v6171_v37 }
 0x1e6   :  { %5220 = vmatpush3.bf16.msra.mxu0 %v5810_v32  ;;  %5240 = vmatpush3.bf16.msra.mxu1 %v5811_v33 }
 0x1e7   :  { %5221 = vmatprep.subr.bf16.mxu0 %v6171_v37  ;;  %5241 = vmatprep.subr.bf16.mxu1 %v6171_v37 }
 0x1ea   :  { %5222 = vmatpush3.bf16.msra.mxu0 %v5812_v36  ;;  %5242 = vmatpush3.bf16.msra.mxu1 %v5813_v39 }
 0x1eb   :  { %5247 = vmatprep.subr.bf16.mxu0 %v6171_v37  ;;  %5267 = vmatprep.subr.bf16.mxu1 %v6171_v37 }
 0x27f   :  { %v1226_v41 = vpop.f32.mrb[24].mxu0  ;;  %v1337_v42 = vpop.f32.mrb[24].mxu1 }
 0x280   :  { %v1232_v44 = vadd.f32 %v1226_v41, %v6345_v34  ;;  %v1343_v46 = vadd.f32 %v1337_v42, %v6351_v38  ;;  %v5145_v48 = vpop.f32.mrb[25].mxu0  ;;  %v5165_v50 = vpop.f32.mrb[25].mxu1  ;;  %v5814_v41 = vld [vmem:[#allocation13 + $0x8] ss:$16 sps:$4 sm:$0xff]   ;;  %v5815_v42 = vld [vmem:[#allocation13 + $0xc] ss:$16 sps:$4 sm:$0xff]  }
 0x281   :  { %v1229_v53 = vpop.f32.mrb[26].mxu0  ;;  %v1340_v57 = vpop.f32.mrb[26].mxu1  ;;  %v5818_v48 = vld [vmem:[#allocation13 + $0x48] ss:$16 sps:$4 sm:$0xff]   ;;  %v5819_v50 = vld [vmem:[#allocation13 + $0x4c] ss:$16 sps:$4 sm:$0xff]  }
 0x282   :  { %v5146_v60 = vpop.f32.mrb[27].mxu0  ;;  %v5166_v61 = vpop.f32.mrb[27].mxu1  ;;  %v1344_v1 = vmul.f32 0.5, %v1343_v46  ;;  %v1233_v22 = vmul.f32 0.5, %v1232_v44  ;;  %v5816_v46 = vld [vmem:[#allocation13 + $0x28] ss:$16 sps:$4 sm:$0xff]  }
 0x283   :  { %v5820_v53 = vld [vmem:[#allocation13 + $0x68] ss:$16 sps:$4 sm:$0xff]   ;;  %v5821_v57 = vld [vmem:[#allocation13 + $0x6c] ss:$16 sps:$4 sm:$0xff]  }
 0x284   :  { %6000 = vtanh.f32 %v1344_v1  ;;  %v5822_v60 = vld [vmem:[#allocation13 + $0x88] ss:$16 sps:$4 sm:$0xff]   ;;  %v5823_v61 = vld [vmem:[#allocation13 + $0x8c] ss:$16 sps:$4 sm:$0xff]  }
 0x285   :  { %6002 = vtanh.f32 %v1233_v22  ;;  %v5824_v1 = vld [vmem:[#allocation13 + $0xa8] ss:$16 sps:$4 sm:$0xff]   ;;  %v5825_v22 = vld [vmem:[#allocation13 + $0xac] ss:$16 sps:$4 sm:$0xff]  }
 0x28e   :  { %v6001_v9 = vpop.eup %6000 }
 0x28f   :  { %v6003_v14 = vpop.eup %6002  ;;  %v1346_v16 = vmul.f32 0.5, %v6001_v9  ;;  %v5834_v9 = vld [vmem:[#allocation13 + $0x40] ss:$16 sps:$4 sm:$0xff]  }
 0x290   :  { %v1235_v21 = vmul.f32 0.5, %v6003_v14  ;;  %v5837_v14 = vld [vmem:[#allocation13 + $0x64] ss:$16 sps:$4 sm:$0xff]  }
 0x291   :  { %v1347_v27 = vadd.f32 0.5, %v1346_v16  ;;  %v5838_v16 = vld [vmem:[#allocation13 + $0x80] ss:$16 sps:$4 sm:$0xff]  }
 0x292   :  { %v1236_v55 = vadd.f32 0.5, %v1235_v21  ;;  %v5840_v21 = vld [vmem:[#allocation13 + $0xa0] ss:$16 sps:$4 sm:$0xff]  }
 0x29f   :  { %v1448_v26 = vpop.f32.mrb[28].mxu0  ;;  %v1556_v23 = vpop.f32.mrb[28].mxu1 }
 0x2a0   :  { %v1454_v30 = vadd.f32 %v1448_v26, %v6389_v3  ;;  %v1562_v2 = vadd.f32 %v1556_v23, %v6393_v6  ;;  %v5185_v5 = vpop.f32.mrb[29].mxu0  ;;  %v5205_v34 = vpop.f32.mrb[29].mxu1  ;;  %v1567_v3 = vmul.f32 %v1347_v27, %v6413_v28  ;;  %v5817_v28 = vld [vmem:[#allocation13 + $0x2c] ss:$16 sps:$4 sm:$0xff]   ;;  %v5826_v26 = vld [vmem:[#allocation13 + $0xc8] ss:$16 sps:$4 sm:$0xff]  }
 0x2a1   :  { %v1451_v7 = vpop.f32.mrb[30].mxu0  ;;  %v1559_v38 = vpop.f32.mrb[30].mxu1  ;;  %v5827_v23 = vld [vmem:[#allocation13 + $0xcc] ss:$16 sps:$4 sm:$0xff]   ;;  %v5830_v5 = vld [vmem:[#allocation13] ss:$16 sps:$4 sm:$0xff]  }
 0x2a2   :  { %6004 = vtanh.f32 %v1454_v30  ;;  %v5186_v10 = vpop.f32.mrb[31].mxu0  ;;  %v5206_v12 = vpop.f32.mrb[31].mxu1  ;;  %v1563_v18 = vmul.f32 0.5, %v1562_v2  ;;  %v5828_v30 = vld [vmem:[#allocation13 + $0xe8] ss:$16 sps:$4 sm:$0xff]  }
 0x2a3   :  { %v5829_v2 = vld [vmem:[#allocation13 + $0xec] ss:$16 sps:$4 sm:$0xff]   ;;  %v5831_v34 = vld [vmem:[#allocation13 + $0x4] ss:$16 sps:$4 sm:$0xff]   ;;  %v5832_v7 = vld [vmem:[#allocation13 + $0x20] ss:$16 sps:$4 sm:$0xff]  }
 0x2a4   :  { %6006 = vtanh.f32 %v1563_v18  ;;  %v5833_v38 = vld [vmem:[#allocation13 + $0x24] ss:$16 sps:$4 sm:$0xff]   ;;  %v5836_v12 = vld [vmem:[#allocation13 + $0x60] ss:$16 sps:$4 sm:$0xff]  }
 0x2a5   :  { %v5835_v10 = vld [vmem:[#allocation13 + $0x44] ss:$16 sps:$4 sm:$0xff]  }
 0x2a6   :  { %v5839_v18 = vld [vmem:[#allocation13 + $0x84] ss:$16 sps:$4 sm:$0xff]  }
 0x2a7   :  { %v5841_v27 = vld [vmem:[#allocation13 + $0xa4] ss:$16 sps:$4 sm:$0xff]  }
 0x2ac   :  { %v6005_v56 = vpop.eup %6004 }
 0x2ad   :  { %v1568_v59 = vmul.f32 %v6005_v56, %v1236_v55  ;;  %v5842_v55 = vld [vmem:[#allocation13 + $0xc0] ss:$16 sps:$4 sm:$0xff]   ;;  %v5843_v56 = vld [vmem:[#allocation13 + $0xc4] ss:$16 sps:$4 sm:$0xff]  }
 0x2ae   :  { %v6007_v63 = vpop.eup %6006 }
 0x2af   :  { %v6461_v6 = vadd.f32 %v1568_v59, %v1567_v3  ;;  %v1565_v32 = vmul.f32 0.5, %v6007_v63  ;;  %v5844_v3 = vld [vmem:[#allocation13 + $0xe0] ss:$16 sps:$4 sm:$0xff]   ;;  %v5845_v59 = vld [vmem:[#allocation13 + $0xe4] ss:$16 sps:$4 sm:$0xff]  }
 0x2b1   :  { %6008 = vtanh.f32 %v6461_v6  ;;  %v1566_v33 = vadd.f32 0.5, %v1565_v32 }
 0x2bb   :  { %v6009_v36 = vpop.eup %6008 }
 0x2bc   :  { %v1571_v39 = vmul.f32 %v6009_v36, %v1566_v33 }
 0x2be   :  { %v1574_v44 = vpack.c.bf16 %v1571_v39, %v1571_v39 }
 0x2c0   :  { %1576 = vst [vmem:[#allocation14 + $0x4] sm:$0xf] %v1574_v44  ;;  %5224 = vmatmul.mubr.bf16.vlgmr.msra.gmra.mrb[32].mxu0 %v1574_v44  ;;  %5244 = vmatmul.mubr.bf16.vlgmr.msra.gmra.mrb[32].mxu1 %v1574_v44 }
 0x2c1   :  { %5248 = vmatpush3.bf16.msra.mxu0 %v5814_v41  ;;  %5268 = vmatpush3.bf16.msra.mxu1 %v5815_v42 }
 0x2c2   :  { %5249 = vmatprep.subr.bf16.mxu0 %v6171_v37  ;;  %5269 = vmatprep.subr.bf16.mxu1 %v6171_v37 }
 0x2c3   :  { %5263 = vmatprep.mubr.msk.bf16.mxu0 %vm6172_vm0, %v6171_v37  ;;  %5283 = vmatprep.mubr.msk.bf16.mxu1 %vm6172_vm0, %v6171_v37 }
 0x2c5   :  { %5250 = vmatpush3.bf16.msra.mxu0 %v5816_v46  ;;  %5270 = vmatpush3.bf16.msra.mxu1 %v5817_v28 }
 0x2c6   :  { %5251 = vmatprep.subr.bf16.mxu0 %v6171_v37  ;;  %5271 = vmatprep.subr.bf16.mxu1 %v6171_v37 }
 0x2c9   :  { %5252 = vmatpush3.bf16.msra.mxu0 %v5818_v48  ;;  %5272 = vmatpush3.bf16.msra.mxu1 %v5819_v50 }
 0x2ca   :  { %5253 = vmatprep.subr.bf16.mxu0 %v6171_v37  ;;  %5273 = vmatprep.subr.bf16.mxu1 %v6171_v37 }
 0x2cd   :  { %5254 = vmatpush3.bf16.msra.mxu0 %v5820_v53  ;;  %5274 = vmatpush3.bf16.msra.mxu1 %v5821_v57 }
 0x2ce   :  { %5255 = vmatprep.subr.bf16.mxu0 %v6171_v37  ;;  %5275 = vmatprep.subr.bf16.mxu1 %v6171_v37 }
 0x2d1   :  { %5256 = vmatpush3.bf16.msra.mxu0 %v5822_v60  ;;  %5276 = vmatpush3.bf16.msra.mxu1 %v5823_v61 }
 0x2d2   :  { %5257 = vmatprep.subr.bf16.mxu0 %v6171_v37  ;;  %5277 = vmatprep.subr.bf16.mxu1 %v6171_v37 }
 0x2d5   :  { %5258 = vmatpush3.bf16.msra.mxu0 %v5824_v1  ;;  %5278 = vmatpush3.bf16.msra.mxu1 %v5825_v22 }
 0x2d6   :  { %5259 = vmatprep.subr.bf16.mxu0 %v6171_v37  ;;  %5279 = vmatprep.subr.bf16.mxu1 %v6171_v37 }
 0x2d9   :  { %5260 = vmatpush3.bf16.msra.mxu0 %v5826_v26  ;;  %5280 = vmatpush3.bf16.msra.mxu1 %v5827_v23 }
 0x2da   :  { %5261 = vmatprep.subr.bf16.mxu0 %v6171_v37  ;;  %5281 = vmatprep.subr.bf16.mxu1 %v6171_v37 }
 0x2dd   :  { %5262 = vmatpush3.bf16.msra.mxu0 %v5828_v30  ;;  %5282 = vmatpush3.bf16.msra.mxu1 %v5829_v2 }
 0x2de   :  { %5287 = vmatprep.subr.bf16.mxu0 %v6171_v37  ;;  %5307 = vmatprep.subr.bf16.mxu1 %v6171_v37 }
 0x2e0   :  { %5264 = vmatmul.mubr.bf16.vlgmr.msra.gmra.mrb[36].mxu0 %v1574_v44  ;;  %5284 = vmatmul.mubr.bf16.vlgmr.msra.gmra.mrb[36].mxu1 %v1574_v44 }
 0x2e1   :  { %5303 = vmatprep.mubr.msk.bf16.mxu0 %vm6172_vm0, %v6171_v37  ;;  %5323 = vmatprep.mubr.msk.bf16.mxu1 %vm6172_vm0, %v6171_v37 }
 0x2e2   :  { %5288 = vmatpush3.bf16.msra.mxu0 %v5830_v5  ;;  %5308 = vmatpush3.bf16.msra.mxu1 %v5831_v34 }
 0x2e3   :  { %5289 = vmatprep.subr.bf16.mxu0 %v6171_v37  ;;  %5309 = vmatprep.subr.bf16.mxu1 %v6171_v37 }
 0x2e6   :  { %5290 = vmatpush3.bf16.msra.mxu0 %v5832_v7  ;;  %5310 = vmatpush3.bf16.msra.mxu1 %v5833_v38 }
 0x2e7   :  { %5291 = vmatprep.subr.bf16.mxu0 %v6171_v37  ;;  %5311 = vmatprep.subr.bf16.mxu1 %v6171_v37 }
 0x2ea   :  { %5292 = vmatpush3.bf16.msra.mxu0 %v5834_v9  ;;  %5312 = vmatpush3.bf16.msra.mxu1 %v5835_v10 }
 0x2eb   :  { %5293 = vmatprep.subr.bf16.mxu0 %v6171_v37  ;;  %5313 = vmatprep.subr.bf16.mxu1 %v6171_v37 }
 0x2ee   :  { %5294 = vmatpush3.bf16.msra.mxu0 %v5836_v12  ;;  %5314 = vmatpush3.bf16.msra.mxu1 %v5837_v14 }
 0x2ef   :  { %5295 = vmatprep.subr.bf16.mxu0 %v6171_v37  ;;  %5315 = vmatprep.subr.bf16.mxu1 %v6171_v37 }
 0x2f2   :  { %5296 = vmatpush3.bf16.msra.mxu0 %v5838_v16  ;;  %5316 = vmatpush3.bf16.msra.mxu1 %v5839_v18 }
 0x2f3   :  { %5297 = vmatprep.subr.bf16.mxu0 %v6171_v37  ;;  %5317 = vmatprep.subr.bf16.mxu1 %v6171_v37 }
 0x2f6   :  { %5298 = vmatpush3.bf16.msra.mxu0 %v5840_v21  ;;  %5318 = vmatpush3.bf16.msra.mxu1 %v5841_v27 }
 0x2f7   :  { %5299 = vmatprep.subr.bf16.mxu0 %v6171_v37  ;;  %5319 = vmatprep.subr.bf16.mxu1 %v6171_v37 }
 0x2fa   :  { %5300 = vmatpush3.bf16.msra.mxu0 %v5842_v55  ;;  %5320 = vmatpush3.bf16.msra.mxu1 %v5843_v56  ;;  %v5846_v55 = vld [vmem:[#allocation13 + $0x8] ss:$16 sps:$4 sm:$0xff]   ;;  %v5847_v56 = vld [vmem:[#allocation13 + $0xc] ss:$16 sps:$4 sm:$0xff]  }
 0x2fb   :  { %5301 = vmatprep.subr.bf16.mxu0 %v6171_v37  ;;  %5321 = vmatprep.subr.bf16.mxu1 %v6171_v37 }
 0x2fe   :  { %5302 = vmatpush3.bf16.msra.mxu0 %v5844_v3  ;;  %5322 = vmatpush3.bf16.msra.mxu1 %v5845_v59  ;;  %v5848_v59 = vld [vmem:[#allocation13 + $0x28] ss:$16 sps:$4 sm:$0xff]  }
 0x2ff   :  { %5327 = vmatprep.subr.bf16.mxu0 %v6171_v37  ;;  %5347 = vmatprep.subr.bf16.mxu1 %v6171_v37 }
 0x393   :  { %v1680_v63 = vpop.f32.mrb[32].mxu0  ;;  %v1791_v32 = vpop.f32.mrb[32].mxu1 }
 0x394   :  { %v1686_v33 = vadd.f32 %v1680_v63, %v6336_v25  ;;  %v1797_v36 = vadd.f32 %v1791_v32, %v6339_v29  ;;  %v5225_v39 = vpop.f32.mrb[33].mxu0  ;;  %v5245_v41 = vpop.f32.mrb[33].mxu1  ;;  %v5850_v63 = vld [vmem:[#allocation13 + $0x48] ss:$16 sps:$4 sm:$0xff]   ;;  %v5851_v32 = vld [vmem:[#allocation13 + $0x4c] ss:$16 sps:$4 sm:$0xff]  }
 0x395   :  { %v1683_v42 = vpop.f32.mrb[34].mxu0  ;;  %v1794_v44 = vpop.f32.mrb[34].mxu1  ;;  %v5854_v39 = vld [vmem:[#allocation13 + $0x88] ss:$16 sps:$4 sm:$0xff]   ;;  %v5855_v41 = vld [vmem:[#allocation13 + $0x8c] ss:$16 sps:$4 sm:$0xff]  }
 0x396   :  { %v5226_v46 = vpop.f32.mrb[35].mxu0  ;;  %v5246_v28 = vpop.f32.mrb[35].mxu1  ;;  %v1798_v48 = vmul.f32 0.5, %v1797_v36  ;;  %v1687_v50 = vmul.f32 0.5, %v1686_v33  ;;  %v5852_v33 = vld [vmem:[#allocation13 + $0x68] ss:$16 sps:$4 sm:$0xff]  }
 0x397   :  { %v5853_v36 = vld [vmem:[#allocation13 + $0x6c] ss:$16 sps:$4 sm:$0xff]   ;;  %v5856_v42 = vld [vmem:[#allocation13 + $0xa8] ss:$16 sps:$4 sm:$0xff]  }
 0x398   :  { %6010 = vtanh.f32 %v1798_v48  ;;  %v5857_v44 = vld [vmem:[#allocation13 + $0xac] ss:$16 sps:$4 sm:$0xff]   ;;  %v5858_v46 = vld [vmem:[#allocation13 + $0xc8] ss:$16 sps:$4 sm:$0xff]  }
 0x399   :  { %6012 = vtanh.f32 %v1687_v50  ;;  %v5859_v28 = vld [vmem:[#allocation13 + $0xcc] ss:$16 sps:$4 sm:$0xff]   ;;  %v5860_v48 = vld [vmem:[#allocation13 + $0xe8] ss:$16 sps:$4 sm:$0xff]  }
 0x39a   :  { %v5861_v50 = vld [vmem:[#allocation13 + $0xec] ss:$16 sps:$4 sm:$0xff]  }
 0x3a2   :  { %v6011_v26 = vpop.eup %6010 }
 0x3a3   :  { %v6013_v2 = vpop.eup %6012  ;;  %v1800_v5 = vmul.f32 0.5, %v6011_v26  ;;  %v5870_v26 = vld [vmem:[#allocation13 + $0x80] ss:$16 sps:$4 sm:$0xff]  }
 0x3a4   :  { %v1689_v7 = vmul.f32 0.5, %v6013_v2  ;;  %v5873_v2 = vld [vmem:[#allocation13 + $0xa4] ss:$16 sps:$4 sm:$0xff]  }
 0x3a5   :  { %v1801_v38 = vadd.f32 0.5, %v1800_v5  ;;  %v5874_v5 = vld [vmem:[#allocation13 + $0xc0] ss:$16 sps:$4 sm:$0xff]  }
 0x3a6   :  { %v1690_v9 = vadd.f32 0.5, %v1689_v7  ;;  %v5876_v7 = vld [vmem:[#allocation13 + $0xe0] ss:$16 sps:$4 sm:$0xff]  }
 0x3b3   :  { %v1902_v53 = vpop.f32.mrb[36].mxu0  ;;  %v2010_v57 = vpop.f32.mrb[36].mxu1 }
 0x3b4   :  { %v1908_v60 = vadd.f32 %v1902_v53, %v6383_v58  ;;  %v2016_v61 = vadd.f32 %v2010_v57, %v6385_v62  ;;  %v5265_v1 = vpop.f32.mrb[37].mxu0  ;;  %v5285_v25 = vpop.f32.mrb[37].mxu1  ;;  %v2021_v58 = vmul.f32 %v1801_v38, %v6461_v6  ;;  %v5849_v6 = vld [vmem:[#allocation13 + $0x2c] ss:$16 sps:$4 sm:$0xff]   ;;  %v5862_v53 = vld [vmem:[#allocation13] ss:$16 sps:$4 sm:$0xff]  }
 0x3b5   :  { %v1905_v22 = vpop.f32.mrb[38].mxu0  ;;  %v2013_v29 = vpop.f32.mrb[38].mxu1  ;;  %v5863_v57 = vld [vmem:[#allocation13 + $0x4] ss:$16 sps:$4 sm:$0xff]   ;;  %v5866_v1 = vld [vmem:[#allocation13 + $0x40] ss:$16 sps:$4 sm:$0xff]  }
 0x3b6   :  { %6014 = vtanh.f32 %v1908_v60  ;;  %v5266_v23 = vpop.f32.mrb[39].mxu0  ;;  %v5286_v30 = vpop.f32.mrb[39].mxu1  ;;  %v2017_v34 = vmul.f32 0.5, %v2016_v61  ;;  %v5864_v60 = vld [vmem:[#allocation13 + $0x20] ss:$16 sps:$4 sm:$0xff]  }
 0x3b7   :  { %v5865_v61 = vld [vmem:[#allocation13 + $0x24] ss:$16 sps:$4 sm:$0xff]   ;;  %v5868_v22 = vld [vmem:[#allocation13 + $0x60] ss:$16 sps:$4 sm:$0xff]  }
 0x3b8   :  { %6016 = vtanh.f32 %v2017_v34  ;;  %v5867_v25 = vld [vmem:[#allocation13 + $0x44] ss:$16 sps:$4 sm:$0xff]   ;;  %v5872_v30 = vld [vmem:[#allocation13 + $0xa0] ss:$16 sps:$4 sm:$0xff]  }
 0x3b9   :  { %v5869_v29 = vld [vmem:[#allocation13 + $0x64] ss:$16 sps:$4 sm:$0xff]  }
 0x3ba   :  { %v5871_v23 = vld [vmem:[#allocation13 + $0x84] ss:$16 sps:$4 sm:$0xff]  }
 0x3bb   :  { %v5875_v34 = vld [vmem:[#allocation13 + $0xc4] ss:$16 sps:$4 sm:$0xff]  }
 0x3bc   :  { %v5877_v38 = vld [vmem:[#allocation13 + $0xe4] ss:$16 sps:$4 sm:$0xff]  }
 0x3c0   :  { %v6015_v10 = vpop.eup %6014 }
 0x3c1   :  { %v2022_v12 = vmul.f32 %v6015_v10, %v1690_v9 }
 0x3c2   :  { %v6017_v14 = vpop.eup %6016 }
 0x3c3   :  { %v6509_v62 = vadd.f32 %v2022_v12, %v2021_v58  ;;  %v2019_v16 = vmul.f32 0.5, %v6017_v14 }
 0x3c5   :  { %6018 = vtanh.f32 %v6509_v62  ;;  %v2020_v18 = vadd.f32 0.5, %v2019_v16 }
 0x3cf   :  { %v6019_v21 = vpop.eup %6018 }
 0x3d0   :  { %v2025_v27 = vmul.f32 %v6019_v21, %v2020_v18 }
 0x3d2   :  { %v2028_v3 = vpack.c.bf16 %v2025_v27, %v2025_v27 }
 0x3d4   :  { %2030 = vst [vmem:[#allocation14 + $0x8] sm:$0xf] %v2028_v3  ;;  %5304 = vmatmul.mubr.bf16.vlgmr.msra.gmra.mrb[40].mxu0 %v2028_v3  ;;  %5324 = vmatmul.mubr.bf16.vlgmr.msra.gmra.mrb[40].mxu1 %v2028_v3 }
 0x3d5   :  { %5328 = vmatpush3.bf16.msra.mxu0 %v5846_v55  ;;  %5348 = vmatpush3.bf16.msra.mxu1 %v5847_v56 }
 0x3d6   :  { %5329 = vmatprep.subr.bf16.mxu0 %v6171_v37  ;;  %5349 = vmatprep.subr.bf16.mxu1 %v6171_v37 }
 0x3d7   :  { %5343 = vmatprep.mubr.msk.bf16.mxu0 %vm6172_vm0, %v6171_v37  ;;  %5363 = vmatprep.mubr.msk.bf16.mxu1 %vm6172_vm0, %v6171_v37 }
 0x3d9   :  { %5330 = vmatpush3.bf16.msra.mxu0 %v5848_v59  ;;  %5350 = vmatpush3.bf16.msra.mxu1 %v5849_v6 }
 0x3da   :  { %5331 = vmatprep.subr.bf16.mxu0 %v6171_v37  ;;  %5351 = vmatprep.subr.bf16.mxu1 %v6171_v37 }
 0x3dd   :  { %5332 = vmatpush3.bf16.msra.mxu0 %v5850_v63  ;;  %5352 = vmatpush3.bf16.msra.mxu1 %v5851_v32 }
 0x3de   :  { %5333 = vmatprep.subr.bf16.mxu0 %v6171_v37  ;;  %5353 = vmatprep.subr.bf16.mxu1 %v6171_v37 }
 0x3e1   :  { %5334 = vmatpush3.bf16.msra.mxu0 %v5852_v33  ;;  %5354 = vmatpush3.bf16.msra.mxu1 %v5853_v36 }
 0x3e2   :  { %5335 = vmatprep.subr.bf16.mxu0 %v6171_v37  ;;  %5355 = vmatprep.subr.bf16.mxu1 %v6171_v37 }
 0x3e5   :  { %5336 = vmatpush3.bf16.msra.mxu0 %v5854_v39  ;;  %5356 = vmatpush3.bf16.msra.mxu1 %v5855_v41 }
 0x3e6   :  { %5337 = vmatprep.subr.bf16.mxu0 %v6171_v37  ;;  %5357 = vmatprep.subr.bf16.mxu1 %v6171_v37 }
 0x3e9   :  { %5338 = vmatpush3.bf16.msra.mxu0 %v5856_v42  ;;  %5358 = vmatpush3.bf16.msra.mxu1 %v5857_v44 }
 0x3ea   :  { %5339 = vmatprep.subr.bf16.mxu0 %v6171_v37  ;;  %5359 = vmatprep.subr.bf16.mxu1 %v6171_v37 }
 0x3ed   :  { %5340 = vmatpush3.bf16.msra.mxu0 %v5858_v46  ;;  %5360 = vmatpush3.bf16.msra.mxu1 %v5859_v28 }
 0x3ee   :  { %5341 = vmatprep.subr.bf16.mxu0 %v6171_v37  ;;  %5361 = vmatprep.subr.bf16.mxu1 %v6171_v37 }
 0x3f1   :  { %5342 = vmatpush3.bf16.msra.mxu0 %v5860_v48  ;;  %5362 = vmatpush3.bf16.msra.mxu1 %v5861_v50 }
 0x3f2   :  { %5367 = vmatprep.subr.bf16.mxu0 %v6171_v37  ;;  %5387 = vmatprep.subr.bf16.mxu1 %v6171_v37 }
 0x3f4   :  { %5344 = vmatmul.mubr.bf16.vlgmr.msra.gmra.mrb[44].mxu0 %v2028_v3  ;;  %5364 = vmatmul.mubr.bf16.vlgmr.msra.gmra.mrb[44].mxu1 %v2028_v3 }
 0x3f5   :  { %5383 = vmatprep.mubr.msk.bf16.mxu0 %vm6172_vm0, %v6171_v37  ;;  %5403 = vmatprep.mubr.msk.bf16.mxu1 %vm6172_vm0, %v6171_v37 }
 0x3f6   :  { %5368 = vmatpush3.bf16.msra.mxu0 %v5862_v53  ;;  %5388 = vmatpush3.bf16.msra.mxu1 %v5863_v57 }
 0x3f7   :  { %5369 = vmatprep.subr.bf16.mxu0 %v6171_v37  ;;  %5389 = vmatprep.subr.bf16.mxu1 %v6171_v37 }
 0x3fa   :  { %5370 = vmatpush3.bf16.msra.mxu0 %v5864_v60  ;;  %5390 = vmatpush3.bf16.msra.mxu1 %v5865_v61 }
 0x3fb   :  { %5371 = vmatprep.subr.bf16.mxu0 %v6171_v37  ;;  %5391 = vmatprep.subr.bf16.mxu1 %v6171_v37 }
 0x3fe   :  { %5372 = vmatpush3.bf16.msra.mxu0 %v5866_v1  ;;  %5392 = vmatpush3.bf16.msra.mxu1 %v5867_v25 }
 0x3ff   :  { %5373 = vmatprep.subr.bf16.mxu0 %v6171_v37  ;;  %5393 = vmatprep.subr.bf16.mxu1 %v6171_v37 }
 0x402   :  { %5374 = vmatpush3.bf16.msra.mxu0 %v5868_v22  ;;  %5394 = vmatpush3.bf16.msra.mxu1 %v5869_v29 }
 0x403   :  { %5375 = vmatprep.subr.bf16.mxu0 %v6171_v37  ;;  %5395 = vmatprep.subr.bf16.mxu1 %v6171_v37 }
 0x406   :  { %5376 = vmatpush3.bf16.msra.mxu0 %v5870_v26  ;;  %5396 = vmatpush3.bf16.msra.mxu1 %v5871_v23  ;;  %v5878_v26 = vld [vmem:[#allocation13 + $0x8] ss:$16 sps:$4 sm:$0xff]   ;;  %v5879_v23 = vld [vmem:[#allocation13 + $0xc] ss:$16 sps:$4 sm:$0xff]  }
 0x407   :  { %5377 = vmatprep.subr.bf16.mxu0 %v6171_v37  ;;  %5397 = vmatprep.subr.bf16.mxu1 %v6171_v37 }
 0x40a   :  { %5378 = vmatpush3.bf16.msra.mxu0 %v5872_v30  ;;  %5398 = vmatpush3.bf16.msra.mxu1 %v5873_v2  ;;  %v5880_v2 = vld [vmem:[#allocation13 + $0x28] ss:$16 sps:$4 sm:$0xff]  }
 0x40b   :  { %5379 = vmatprep.subr.bf16.mxu0 %v6171_v37  ;;  %5399 = vmatprep.subr.bf16.mxu1 %v6171_v37 }
 0x40e   :  { %5380 = vmatpush3.bf16.msra.mxu0 %v5874_v5  ;;  %5400 = vmatpush3.bf16.msra.mxu1 %v5875_v34  ;;  %v5882_v5 = vld [vmem:[#allocation13 + $0x48] ss:$16 sps:$4 sm:$0xff]   ;;  %v5883_v34 = vld [vmem:[#allocation13 + $0x4c] ss:$16 sps:$4 sm:$0xff]  }
 0x40f   :  { %5381 = vmatprep.subr.bf16.mxu0 %v6171_v37  ;;  %5401 = vmatprep.subr.bf16.mxu1 %v6171_v37 }
 0x412   :  { %5382 = vmatpush3.bf16.msra.mxu0 %v5876_v7  ;;  %5402 = vmatpush3.bf16.msra.mxu1 %v5877_v38  ;;  %v5884_v7 = vld [vmem:[#allocation13 + $0x68] ss:$16 sps:$4 sm:$0xff]   ;;  %v5885_v38 = vld [vmem:[#allocation13 + $0x6c] ss:$16 sps:$4 sm:$0xff]  }
 0x413   :  { %5407 = vmatprep.subr.bf16.mxu0 %v6171_v37  ;;  %5427 = vmatprep.subr.bf16.mxu1 %v6171_v37 }
 0x4a7   :  { %v2134_v9 = vpop.f32.mrb[40].mxu0  ;;  %v2245_v10 = vpop.f32.mrb[40].mxu1 }
 0x4a8   :  { %v2140_v58 = vadd.f32 %v2134_v9, %v6342_v31  ;;  %v2251_v12 = vadd.f32 %v2245_v10, %v6348_v35  ;;  %v5305_v14 = vpop.f32.mrb[41].mxu0  ;;  %v5325_v16 = vpop.f32.mrb[41].mxu1  ;;  %v5886_v9 = vld [vmem:[#allocation13 + $0x88] ss:$16 sps:$4 sm:$0xff]   ;;  %v5887_v10 = vld [vmem:[#allocation13 + $0x8c] ss:$16 sps:$4 sm:$0xff]  }
 0x4a9   :  { %v2137_v18 = vpop.f32.mrb[42].mxu0  ;;  %v2248_v21 = vpop.f32.mrb[42].mxu1  ;;  %v5890_v14 = vld [vmem:[#allocation13 + $0xc8] ss:$16 sps:$4 sm:$0xff]   ;;  %v5891_v16 = vld [vmem:[#allocation13 + $0xcc] ss:$16 sps:$4 sm:$0xff]  }
 0x4aa   :  { %v5306_v27 = vpop.f32.mrb[43].mxu0  ;;  %v5326_v55 = vpop.f32.mrb[43].mxu1  ;;  %v2252_v56 = vmul.f32 0.5, %v2251_v12  ;;  %v2141_v3 = vmul.f32 0.5, %v2140_v58  ;;  %v5888_v58 = vld [vmem:[#allocation13 + $0xa8] ss:$16 sps:$4 sm:$0xff]  }
 0x4ab   :  { %v5889_v12 = vld [vmem:[#allocation13 + $0xac] ss:$16 sps:$4 sm:$0xff]   ;;  %v5892_v18 = vld [vmem:[#allocation13 + $0xe8] ss:$16 sps:$4 sm:$0xff]   ;;  %v5894_v27 = vld [vmem:[#allocation13] ss:$16 sps:$4 sm:$0xff]  }
 0x4ac   :  { %6020 = vtanh.f32 %v2252_v56  ;;  %v5893_v21 = vld [vmem:[#allocation13 + $0xec] ss:$16 sps:$4 sm:$0xff]   ;;  %v5895_v55 = vld [vmem:[#allocation13 + $0x4] ss:$16 sps:$4 sm:$0xff]   ;;  %v5896_v56 = vld [vmem:[#allocation13 + $0x20] ss:$16 sps:$4 sm:$0xff]  }
 0x4ad   :  { %6022 = vtanh.f32 %v2141_v3  ;;  %v5897_v3 = vld [vmem:[#allocation13 + $0x24] ss:$16 sps:$4 sm:$0xff]  }
 0x4b6   :  { %v6021_v39 = vpop.eup %6020 }
 0x4b7   :  { %v6023_v44 = vpop.eup %6022  ;;  %v2254_v46 = vmul.f32 0.5, %v6021_v39  ;;  %v5906_v39 = vld [vmem:[#allocation13 + $0xc0] ss:$16 sps:$4 sm:$0xff]  }
 0x4b8   :  { %v2143_v48 = vmul.f32 0.5, %v6023_v44  ;;  %v5909_v44 = vld [vmem:[#allocation13 + $0xe4] ss:$16 sps:$4 sm:$0xff]  }
 0x4b9   :  { %v2255_v50 = vadd.f32 0.5, %v2254_v46 }
 0x4ba   :  { %v2144_v53 = vadd.f32 0.5, %v2143_v48 }
 0x4c7   :  { %v2356_v59 = vpop.f32.mrb[44].mxu0  ;;  %v2464_v6 = vpop.f32.mrb[44].mxu1 }
 0x4c8   :  { %v2362_v63 = vadd.f32 %v2356_v59, %v6387_v0  ;;  %v2470_v32 = vadd.f32 %v2464_v6, %v6391_v4  ;;  %v5345_v33 = vpop.f32.mrb[45].mxu0  ;;  %v5365_v31 = vpop.f32.mrb[45].mxu1  ;;  %v2475_v0 = vmul.f32 %v2255_v50, %v6509_v62  ;;  %v5881_v62 = vld [vmem:[#allocation13 + $0x2c] ss:$16 sps:$4 sm:$0xff]   ;;  %v5898_v59 = vld [vmem:[#allocation13 + $0x40] ss:$16 sps:$4 sm:$0xff]  }
 0x4c9   :  { %v2359_v36 = vpop.f32.mrb[46].mxu0  ;;  %v2467_v35 = vpop.f32.mrb[46].mxu1  ;;  %v5899_v6 = vld [vmem:[#allocation13 + $0x44] ss:$16 sps:$4 sm:$0xff]   ;;  %v5902_v33 = vld [vmem:[#allocation13 + $0x80] ss:$16 sps:$4 sm:$0xff]  }
 0x4ca   :  { %6024 = vtanh.f32 %v2362_v63  ;;  %v5346_v41 = vpop.f32.mrb[47].mxu0  ;;  %v5366_v42 = vpop.f32.mrb[47].mxu1  ;;  %v2471_v28 = vmul.f32 0.5, %v2470_v32  ;;  %v5900_v63 = vld [vmem:[#allocation13 + $0x60] ss:$16 sps:$4 sm:$0xff]  }
 0x4cb   :  { %v5901_v32 = vld [vmem:[#allocation13 + $0x64] ss:$16 sps:$4 sm:$0xff]   ;;  %v5904_v36 = vld [vmem:[#allocation13 + $0xa0] ss:$16 sps:$4 sm:$0xff]  }
 0x4cc   :  { %6026 = vtanh.f32 %v2471_v28  ;;  %v5903_v31 = vld [vmem:[#allocation13 + $0x84] ss:$16 sps:$4 sm:$0xff]   ;;  %v5908_v42 = vld [vmem:[#allocation13 + $0xe0] ss:$16 sps:$4 sm:$0xff]  }
 0x4cd   :  { %v5905_v35 = vld [vmem:[#allocation13 + $0xa4] ss:$16 sps:$4 sm:$0xff]  }
 0x4ce   :  { %v5907_v41 = vld [vmem:[#allocation13 + $0xc4] ss:$16 sps:$4 sm:$0xff]  }
 0x4d4   :  { %v6025_v57 = vpop.eup %6024 }
 0x4d5   :  { %v2476_v60 = vmul.f32 %v6025_v57, %v2144_v53 }
 0x4d6   :  { %v6027_v61 = vpop.eup %6026 }
 0x4d7   :  { %v6557_v4 = vadd.f32 %v2476_v60, %v2475_v0  ;;  %v2473_v1 = vmul.f32 0.5, %v6027_v61 }
 0x4d9   :  { %6028 = vtanh.f32 %v6557_v4  ;;  %v2474_v25 = vadd.f32 0.5, %v2473_v1 }
 0x4e3   :  { %v6029_v22 = vpop.eup %6028 }
 0x4e4   :  { %v2479_v29 = vmul.f32 %v6029_v22, %v2474_v25 }
 0x4e6   :  { %v2482_v30 = vpack.c.bf16 %v2479_v29, %v2479_v29 }
 0x4e8   :  { %2484 = vst [vmem:[#allocation14 + $0xc] sm:$0xf] %v2482_v30  ;;  %5384 = vmatmul.mubr.bf16.vlgmr.msra.gmra.mrb[48].mxu0 %v2482_v30  ;;  %5404 = vmatmul.mubr.bf16.vlgmr.msra.gmra.mrb[48].mxu1 %v2482_v30 }
 0x4e9   :  { %5408 = vmatpush3.bf16.msra.mxu0 %v5878_v26  ;;  %5428 = vmatpush3.bf16.msra.mxu1 %v5879_v23 }
 0x4ea   :  { %5409 = vmatprep.subr.bf16.mxu0 %v6171_v37  ;;  %5429 = vmatprep.subr.bf16.mxu1 %v6171_v37 }
 0x4eb   :  { %5423 = vmatprep.mubr.msk.bf16.mxu0 %vm6172_vm0, %v6171_v37  ;;  %5443 = vmatprep.mubr.msk.bf16.mxu1 %vm6172_vm0, %v6171_v37 }
 0x4ed   :  { %5410 = vmatpush3.bf16.msra.mxu0 %v5880_v2  ;;  %5430 = vmatpush3.bf16.msra.mxu1 %v5881_v62 }
 0x4ee   :  { %5411 = vmatprep.subr.bf16.mxu0 %v6171_v37  ;;  %5431 = vmatprep.subr.bf16.mxu1 %v6171_v37 }
 0x4f1   :  { %5412 = vmatpush3.bf16.msra.mxu0 %v5882_v5  ;;  %5432 = vmatpush3.bf16.msra.mxu1 %v5883_v34 }
 0x4f2   :  { %5413 = vmatprep.subr.bf16.mxu0 %v6171_v37  ;;  %5433 = vmatprep.subr.bf16.mxu1 %v6171_v37 }
 0x4f5   :  { %5414 = vmatpush3.bf16.msra.mxu0 %v5884_v7  ;;  %5434 = vmatpush3.bf16.msra.mxu1 %v5885_v38 }
 0x4f6   :  { %5415 = vmatprep.subr.bf16.mxu0 %v6171_v37  ;;  %5435 = vmatprep.subr.bf16.mxu1 %v6171_v37 }
 0x4f9   :  { %5416 = vmatpush3.bf16.msra.mxu0 %v5886_v9  ;;  %5436 = vmatpush3.bf16.msra.mxu1 %v5887_v10 }
 0x4fa   :  { %5417 = vmatprep.subr.bf16.mxu0 %v6171_v37  ;;  %5437 = vmatprep.subr.bf16.mxu1 %v6171_v37 }
 0x4fd   :  { %5418 = vmatpush3.bf16.msra.mxu0 %v5888_v58  ;;  %5438 = vmatpush3.bf16.msra.mxu1 %v5889_v12 }
 0x4fe   :  { %5419 = vmatprep.subr.bf16.mxu0 %v6171_v37  ;;  %5439 = vmatprep.subr.bf16.mxu1 %v6171_v37 }
 0x501   :  { %5420 = vmatpush3.bf16.msra.mxu0 %v5890_v14  ;;  %5440 = vmatpush3.bf16.msra.mxu1 %v5891_v16 }
 0x502   :  { %5421 = vmatprep.subr.bf16.mxu0 %v6171_v37  ;;  %5441 = vmatprep.subr.bf16.mxu1 %v6171_v37 }
 0x505   :  { %5422 = vmatpush3.bf16.msra.mxu0 %v5892_v18  ;;  %5442 = vmatpush3.bf16.msra.mxu1 %v5893_v21 }
 0x506   :  { %5447 = vmatprep.subr.bf16.mxu0 %v6171_v37  ;;  %5467 = vmatprep.subr.bf16.mxu1 %v6171_v37 }
 0x508   :  { %5424 = vmatmul.mubr.bf16.vlgmr.msra.gmra.mrb[52].mxu0 %v2482_v30  ;;  %5444 = vmatmul.mubr.bf16.vlgmr.msra.gmra.mrb[52].mxu1 %v2482_v30 }
 0x509   :  { %5463 = vmatprep.mubr.msk.bf16.mxu0 %vm6172_vm0, %v6171_v37  ;;  %5483 = vmatprep.mubr.msk.bf16.mxu1 %vm6172_vm0, %v6171_v37 }
 0x50a   :  { %5448 = vmatpush3.bf16.msra.mxu0 %v5894_v27  ;;  %5468 = vmatpush3.bf16.msra.mxu1 %v5895_v55 }
 0x50b   :  { %5449 = vmatprep.subr.bf16.mxu0 %v6171_v37  ;;  %5469 = vmatprep.subr.bf16.mxu1 %v6171_v37 }
 0x50e   :  { %5450 = vmatpush3.bf16.msra.mxu0 %v5896_v56  ;;  %5470 = vmatpush3.bf16.msra.mxu1 %v5897_v3 }
 0x50f   :  { %5451 = vmatprep.subr.bf16.mxu0 %v6171_v37  ;;  %5471 = vmatprep.subr.bf16.mxu1 %v6171_v37 }
 0x512   :  { %5452 = vmatpush3.bf16.msra.mxu0 %v5898_v59  ;;  %5472 = vmatpush3.bf16.msra.mxu1 %v5899_v6  ;;  %v5910_v59 = vld [vmem:[#allocation13 + $0x8] ss:$16 sps:$4 sm:$0xff]   ;;  %v5911_v6 = vld [vmem:[#allocation13 + $0xc] ss:$16 sps:$4 sm:$0xff]  }
 0x513   :  { %5453 = vmatprep.subr.bf16.mxu0 %v6171_v37  ;;  %5473 = vmatprep.subr.bf16.mxu1 %v6171_v37 }
 0x516   :  { %5454 = vmatpush3.bf16.msra.mxu0 %v5900_v63  ;;  %5474 = vmatpush3.bf16.msra.mxu1 %v5901_v32  ;;  %v5912_v32 = vld [vmem:[#allocation13 + $0x28] ss:$16 sps:$4 sm:$0xff]  }
 0x517   :  { %5455 = vmatprep.subr.bf16.mxu0 %v6171_v37  ;;  %5475 = vmatprep.subr.bf16.mxu1 %v6171_v37 }
 0x51a   :  { %5456 = vmatpush3.bf16.msra.mxu0 %v5902_v33  ;;  %5476 = vmatpush3.bf16.msra.mxu1 %v5903_v31  ;;  %v5914_v33 = vld [vmem:[#allocation13 + $0x48] ss:$16 sps:$4 sm:$0xff]   ;;  %v5915_v31 = vld [vmem:[#allocation13 + $0x4c] ss:$16 sps:$4 sm:$0xff]  }
 0x51b   :  { %5457 = vmatprep.subr.bf16.mxu0 %v6171_v37  ;;  %5477 = vmatprep.subr.bf16.mxu1 %v6171_v37 }
 0x51e   :  { %5458 = vmatpush3.bf16.msra.mxu0 %v5904_v36  ;;  %5478 = vmatpush3.bf16.msra.mxu1 %v5905_v35  ;;  %v5916_v36 = vld [vmem:[#allocation13 + $0x68] ss:$16 sps:$4 sm:$0xff]   ;;  %v5917_v35 = vld [vmem:[#allocation13 + $0x6c] ss:$16 sps:$4 sm:$0xff]  }
 0x51f   :  { %5459 = vmatprep.subr.bf16.mxu0 %v6171_v37  ;;  %5479 = vmatprep.subr.bf16.mxu1 %v6171_v37 }
 0x522   :  { %5460 = vmatpush3.bf16.msra.mxu0 %v5906_v39  ;;  %5480 = vmatpush3.bf16.msra.mxu1 %v5907_v41  ;;  %v5918_v39 = vld [vmem:[#allocation13 + $0x88] ss:$16 sps:$4 sm:$0xff]   ;;  %v5919_v41 = vld [vmem:[#allocation13 + $0x8c] ss:$16 sps:$4 sm:$0xff]  }
 0x523   :  { %5461 = vmatprep.subr.bf16.mxu0 %v6171_v37  ;;  %5481 = vmatprep.subr.bf16.mxu1 %v6171_v37 }
 0x526   :  { %5462 = vmatpush3.bf16.msra.mxu0 %v5908_v42  ;;  %5482 = vmatpush3.bf16.msra.mxu1 %v5909_v44  ;;  %v5920_v42 = vld [vmem:[#allocation13 + $0xa8] ss:$16 sps:$4 sm:$0xff]   ;;  %v5921_v44 = vld [vmem:[#allocation13 + $0xac] ss:$16 sps:$4 sm:$0xff]  }
 0x527   :  { %5487 = vmatprep.subr.bf16.mxu0 %v6171_v37  ;;  %5507 = vmatprep.subr.bf16.mxu1 %v6171_v37 }
 0x5bb   :  { %v2588_v46 = vpop.f32.mrb[48].mxu0  ;;  %v2699_v28 = vpop.f32.mrb[48].mxu1 }
 0x5bc   :  { %v2594_v48 = vadd.f32 %v2588_v46, %v6357_v43  ;;  %v2705_v50 = vadd.f32 %v2699_v28, %v6366_v49  ;;  %v5385_v53 = vpop.f32.mrb[49].mxu0  ;;  %v5405_v57 = vpop.f32.mrb[49].mxu1  ;;  %v5922_v46 = vld [vmem:[#allocation13 + $0xc8] ss:$16 sps:$4 sm:$0xff]   ;;  %v5923_v28 = vld [vmem:[#allocation13 + $0xcc] ss:$16 sps:$4 sm:$0xff]  }
 0x5bd   :  { %v2591_v0 = vpop.f32.mrb[50].mxu0  ;;  %v2702_v60 = vpop.f32.mrb[50].mxu1  ;;  %v5926_v53 = vld [vmem:[#allocation13] ss:$16 sps:$4 sm:$0xff]   ;;  %v5927_v57 = vld [vmem:[#allocation13 + $0x4] ss:$16 sps:$4 sm:$0xff]  }
 0x5be   :  { %v5386_v61 = vpop.f32.mrb[51].mxu0  ;;  %v5406_v1 = vpop.f32.mrb[51].mxu1  ;;  %v2706_v25 = vmul.f32 0.5, %v2705_v50  ;;  %v2595_v22 = vmul.f32 0.5, %v2594_v48  ;;  %v5924_v48 = vld [vmem:[#allocation13 + $0xe8] ss:$16 sps:$4 sm:$0xff]  }
 0x5bf   :  { %v5925_v50 = vld [vmem:[#allocation13 + $0xec] ss:$16 sps:$4 sm:$0xff]   ;;  %v5928_v0 = vld [vmem:[#allocation13 + $0x20] ss:$16 sps:$4 sm:$0xff]   ;;  %v5929_v60 = vld [vmem:[#allocation13 + $0x24] ss:$16 sps:$4 sm:$0xff]  }
 0x5c0   :  { %6030 = vtanh.f32 %v2706_v25  ;;  %v5930_v61 = vld [vmem:[#allocation13 + $0x40] ss:$16 sps:$4 sm:$0xff]   ;;  %v5931_v1 = vld [vmem:[#allocation13 + $0x44] ss:$16 sps:$4 sm:$0xff]  }
 0x5c1   :  { %6032 = vtanh.f32 %v2595_v22  ;;  %v5932_v25 = vld [vmem:[#allocation13 + $0x60] ss:$16 sps:$4 sm:$0xff]   ;;  %v5933_v22 = vld [vmem:[#allocation13 + $0x64] ss:$16 sps:$4 sm:$0xff]  }
 0x5ca   :  { %v6031_v5 = vpop.eup %6030 }
 0x5cb   :  { %v6033_v38 = vpop.eup %6032  ;;  %v2708_v9 = vmul.f32 0.5, %v6031_v5 }
 0x5cc   :  { %v2597_v58 = vmul.f32 0.5, %v6033_v38 }
 0x5cd   :  { %v2709_v12 = vadd.f32 0.5, %v2708_v9 }
 0x5ce   :  { %v2598_v14 = vadd.f32 0.5, %v2597_v58 }
 0x5db   :  { %v2810_v29 = vpop.f32.mrb[52].mxu0  ;;  %v2918_v26 = vpop.f32.mrb[52].mxu1 }
 0x5dc   :  { %v2816_v23 = vadd.f32 %v2810_v29, %v6397_v11  ;;  %v2924_v30 = vadd.f32 %v2918_v26, %v6403_v17  ;;  %v5425_v2 = vpop.f32.mrb[53].mxu0  ;;  %v5445_v43 = vpop.f32.mrb[53].mxu1  ;;  %v2929_v11 = vmul.f32 %v2709_v12, %v6557_v4  ;;  %v5913_v4 = vld [vmem:[#allocation13 + $0x2c] ss:$16 sps:$4 sm:$0xff]   ;;  %v5934_v29 = vld [vmem:[#allocation13 + $0x80] ss:$16 sps:$4 sm:$0xff]  }
 0x5dd   :  { %v2813_v62 = vpop.f32.mrb[54].mxu0  ;;  %v2921_v49 = vpop.f32.mrb[54].mxu1  ;;  %v5935_v26 = vld [vmem:[#allocation13 + $0x84] ss:$16 sps:$4 sm:$0xff]   ;;  %v5938_v2 = vld [vmem:[#allocation13 + $0xc0] ss:$16 sps:$4 sm:$0xff]  }
 0x5de   :  { %6034 = vtanh.f32 %v2816_v23  ;;  %v5426_v34 = vpop.f32.mrb[55].mxu0  ;;  %v5446_v7 = vpop.f32.mrb[55].mxu1  ;;  %v2925_v10 = vmul.f32 0.5, %v2924_v30  ;;  %v5936_v23 = vld [vmem:[#allocation13 + $0xa0] ss:$16 sps:$4 sm:$0xff]  }
 0x5df   :  { %v5937_v30 = vld [vmem:[#allocation13 + $0xa4] ss:$16 sps:$4 sm:$0xff]   ;;  %v5940_v62 = vld [vmem:[#allocation13 + $0xe0] ss:$16 sps:$4 sm:$0xff]  }
 0x5e0   :  { %6036 = vtanh.f32 %v2925_v10  ;;  %v5939_v43 = vld [vmem:[#allocation13 + $0xc4] ss:$16 sps:$4 sm:$0xff]  }
 0x5e1   :  { %v5941_v49 = vld [vmem:[#allocation13 + $0xe4] ss:$16 sps:$4 sm:$0xff]  }
 0x5e8   :  { %v6035_v16 = vpop.eup %6034 }
 0x5e9   :  { %v2930_v18 = vmul.f32 %v6035_v16, %v2598_v14 }
 0x5ea   :  { %v6037_v21 = vpop.eup %6036 }
 0x5eb   :  { %v6605_v17 = vadd.f32 %v2930_v18, %v2929_v11  ;;  %v2927_v27 = vmul.f32 0.5, %v6037_v21 }
 0x5ed   :  { %6038 = vtanh.f32 %v6605_v17  ;;  %v2928_v55 = vadd.f32 0.5, %v2927_v27 }
 0x5f7   :  { %v6039_v56 = vpop.eup %6038 }
 0x5f8   :  { %v2933_v3 = vmul.f32 %v6039_v56, %v2928_v55 }
 0x5fa   :  { %v2936_v63 = vpack.c.bf16 %v2933_v3, %v2933_v3 }
 0x5fc   :  { %2938 = vst [vmem:[#allocation14 + $0x10] sm:$0xf] %v2936_v63  ;;  %5464 = vmatmul.mubr.bf16.vlgmr.msra.gmra.mrb[56].mxu0 %v2936_v63  ;;  %5484 = vmatmul.mubr.bf16.vlgmr.msra.gmra.mrb[56].mxu1 %v2936_v63 }
 0x5fd   :  { %5488 = vmatpush3.bf16.msra.mxu0 %v5910_v59  ;;  %5508 = vmatpush3.bf16.msra.mxu1 %v5911_v6 }
 0x5fe   :  { %5489 = vmatprep.subr.bf16.mxu0 %v6171_v37  ;;  %5509 = vmatprep.subr.bf16.mxu1 %v6171_v37 }
 0x5ff   :  { %5503 = vmatprep.mubr.msk.bf16.mxu0 %vm6172_vm0, %v6171_v37  ;;  %5523 = vmatprep.mubr.msk.bf16.mxu1 %vm6172_vm0, %v6171_v37 }
 0x601   :  { %5490 = vmatpush3.bf16.msra.mxu0 %v5912_v32  ;;  %5510 = vmatpush3.bf16.msra.mxu1 %v5913_v4 }
 0x602   :  { %5491 = vmatprep.subr.bf16.mxu0 %v6171_v37  ;;  %5511 = vmatprep.subr.bf16.mxu1 %v6171_v37 }
 0x605   :  { %5492 = vmatpush3.bf16.msra.mxu0 %v5914_v33  ;;  %5512 = vmatpush3.bf16.msra.mxu1 %v5915_v31 }
 0x606   :  { %5493 = vmatprep.subr.bf16.mxu0 %v6171_v37  ;;  %5513 = vmatprep.subr.bf16.mxu1 %v6171_v37 }
 0x609   :  { %5494 = vmatpush3.bf16.msra.mxu0 %v5916_v36  ;;  %5514 = vmatpush3.bf16.msra.mxu1 %v5917_v35 }
 0x60a   :  { %5495 = vmatprep.subr.bf16.mxu0 %v6171_v37  ;;  %5515 = vmatprep.subr.bf16.mxu1 %v6171_v37 }
 0x60d   :  { %5496 = vmatpush3.bf16.msra.mxu0 %v5918_v39  ;;  %5516 = vmatpush3.bf16.msra.mxu1 %v5919_v41 }
 0x60e   :  { %5497 = vmatprep.subr.bf16.mxu0 %v6171_v37  ;;  %5517 = vmatprep.subr.bf16.mxu1 %v6171_v37 }
 0x611   :  { %5498 = vmatpush3.bf16.msra.mxu0 %v5920_v42  ;;  %5518 = vmatpush3.bf16.msra.mxu1 %v5921_v44 }
 0x612   :  { %5499 = vmatprep.subr.bf16.mxu0 %v6171_v37  ;;  %5519 = vmatprep.subr.bf16.mxu1 %v6171_v37 }
 0x615   :  { %5500 = vmatpush3.bf16.msra.mxu0 %v5922_v46  ;;  %5520 = vmatpush3.bf16.msra.mxu1 %v5923_v28 }
 0x616   :  { %5501 = vmatprep.subr.bf16.mxu0 %v6171_v37  ;;  %5521 = vmatprep.subr.bf16.mxu1 %v6171_v37 }
 0x619   :  { %5502 = vmatpush3.bf16.msra.mxu0 %v5924_v48  ;;  %5522 = vmatpush3.bf16.msra.mxu1 %v5925_v50 }
 0x61a   :  { %5527 = vmatprep.subr.bf16.mxu0 %v6171_v37  ;;  %5547 = vmatprep.subr.bf16.mxu1 %v6171_v37 }
 0x61c   :  { %5504 = vmatmul.mubr.bf16.vlgmr.msra.gmra.mrb[60].mxu0 %v2936_v63  ;;  %5524 = vmatmul.mubr.bf16.vlgmr.msra.gmra.mrb[60].mxu1 %v2936_v63 }
 0x61d   :  { %5543 = vmatprep.mubr.msk.bf16.mxu0 %vm6172_vm0, %v6171_v37  ;;  %5563 = vmatprep.mubr.msk.bf16.mxu1 %vm6172_vm0, %v6171_v37 }
 0x61e   :  { %5528 = vmatpush3.bf16.msra.mxu0 %v5926_v53  ;;  %5548 = vmatpush3.bf16.msra.mxu1 %v5927_v57  ;;  %v5942_v53 = vld [vmem:[#allocation13 + $0x8] ss:$16 sps:$4 sm:$0xff]   ;;  %v5943_v57 = vld [vmem:[#allocation13 + $0xc] ss:$16 sps:$4 sm:$0xff]  }
 0x61f   :  { %5529 = vmatprep.subr.bf16.mxu0 %v6171_v37  ;;  %5549 = vmatprep.subr.bf16.mxu1 %v6171_v37 }
 0x622   :  { %5530 = vmatpush3.bf16.msra.mxu0 %v5928_v0  ;;  %5550 = vmatpush3.bf16.msra.mxu1 %v5929_v60  ;;  %v5944_v60 = vld [vmem:[#allocation13 + $0x28] ss:$16 sps:$4 sm:$0xff]  }
 0x623   :  { %5531 = vmatprep.subr.bf16.mxu0 %v6171_v37  ;;  %5551 = vmatprep.subr.bf16.mxu1 %v6171_v37 }
 0x626   :  { %5532 = vmatpush3.bf16.msra.mxu0 %v5930_v61  ;;  %5552 = vmatpush3.bf16.msra.mxu1 %v5931_v1  ;;  %v5946_v61 = vld [vmem:[#allocation13 + $0x48] ss:$16 sps:$4 sm:$0xff]   ;;  %v5947_v1 = vld [vmem:[#allocation13 + $0x4c] ss:$16 sps:$4 sm:$0xff]  }
 0x627   :  { %5533 = vmatprep.subr.bf16.mxu0 %v6171_v37  ;;  %5553 = vmatprep.subr.bf16.mxu1 %v6171_v37 }
 0x62a   :  { %5534 = vmatpush3.bf16.msra.mxu0 %v5932_v25  ;;  %5554 = vmatpush3.bf16.msra.mxu1 %v5933_v22  ;;  %v5948_v25 = vld [vmem:[#allocation13 + $0x68] ss:$16 sps:$4 sm:$0xff]   ;;  %v5949_v22 = vld [vmem:[#allocation13 + $0x6c] ss:$16 sps:$4 sm:$0xff]  }
 0x62b   :  { %5535 = vmatprep.subr.bf16.mxu0 %v6171_v37  ;;  %5555 = vmatprep.subr.bf16.mxu1 %v6171_v37 }
 0x62e   :  { %5536 = vmatpush3.bf16.msra.mxu0 %v5934_v29  ;;  %5556 = vmatpush3.bf16.msra.mxu1 %v5935_v26  ;;  %v5950_v29 = vld [vmem:[#allocation13 + $0x88] ss:$16 sps:$4 sm:$0xff]   ;;  %v5951_v26 = vld [vmem:[#allocation13 + $0x8c] ss:$16 sps:$4 sm:$0xff]  }
 0x62f   :  { %5537 = vmatprep.subr.bf16.mxu0 %v6171_v37  ;;  %5557 = vmatprep.subr.bf16.mxu1 %v6171_v37 }
 0x632   :  { %5538 = vmatpush3.bf16.msra.mxu0 %v5936_v23  ;;  %5558 = vmatpush3.bf16.msra.mxu1 %v5937_v30  ;;  %v5952_v23 = vld [vmem:[#allocation13 + $0xa8] ss:$16 sps:$4 sm:$0xff]   ;;  %v5953_v30 = vld [vmem:[#allocation13 + $0xac] ss:$16 sps:$4 sm:$0xff]  }
 0x633   :  { %5539 = vmatprep.subr.bf16.mxu0 %v6171_v37  ;;  %5559 = vmatprep.subr.bf16.mxu1 %v6171_v37 }
 0x636   :  { %5540 = vmatpush3.bf16.msra.mxu0 %v5938_v2  ;;  %5560 = vmatpush3.bf16.msra.mxu1 %v5939_v43  ;;  %v5954_v2 = vld [vmem:[#allocation13 + $0xc8] ss:$16 sps:$4 sm:$0xff]   ;;  %v5955_v43 = vld [vmem:[#allocation13 + $0xcc] ss:$16 sps:$4 sm:$0xff]  }
 0x637   :  { %5541 = vmatprep.subr.bf16.mxu0 %v6171_v37  ;;  %5561 = vmatprep.subr.bf16.mxu1 %v6171_v37 }
 0x63a   :  { %5542 = vmatpush3.bf16.msra.mxu0 %v5940_v62  ;;  %5562 = vmatpush3.bf16.msra.mxu1 %v5941_v49  ;;  %v5956_v62 = vld [vmem:[#allocation13 + $0xe8] ss:$16 sps:$4 sm:$0xff]   ;;  %v5957_v49 = vld [vmem:[#allocation13 + $0xec] ss:$16 sps:$4 sm:$0xff]  }
 0x63b   :  { %5567 = vmatprep.subr.bf16.mxu0 %v6171_v37  ;;  %5587 = vmatprep.subr.bf16.mxu1 %v6171_v37 }
 0x6cf   :  { %v3042_v5 = vpop.f32.mrb[56].mxu0  ;;  %v3153_v34 = vpop.f32.mrb[56].mxu1 }
 0x6d0   :  { %v3048_v7 = vadd.f32 %v3042_v5, %v6369_v51  ;;  %v3159_v38 = vadd.f32 %v3153_v34, %v6375_v54  ;;  %v5465_v9 = vpop.f32.mrb[57].mxu0  ;;  %v5485_v10 = vpop.f32.mrb[57].mxu1  ;;  %v5958_v5 = vld [vmem:[#allocation13] ss:$16 sps:$4 sm:$0xff]   ;;  %v5959_v34 = vld [vmem:[#allocation13 + $0x4] ss:$16 sps:$4 sm:$0xff]  }
 0x6d1   :  { %v3045_v58 = vpop.f32.mrb[58].mxu0  ;;  %v3156_v12 = vpop.f32.mrb[58].mxu1  ;;  %v5962_v9 = vld [vmem:[#allocation13 + $0x40] ss:$16 sps:$4 sm:$0xff]   ;;  %v5963_v10 = vld [vmem:[#allocation13 + $0x44] ss:$16 sps:$4 sm:$0xff]  }
 0x6d2   :  { %v5466_v14 = vpop.f32.mrb[59].mxu0  ;;  %v5486_v16 = vpop.f32.mrb[59].mxu1  ;;  %v3160_v11 = vmul.f32 0.5, %v3159_v38  ;;  %v3049_v18 = vmul.f32 0.5, %v3048_v7  ;;  %v5960_v7 = vld [vmem:[#allocation13 + $0x20] ss:$16 sps:$4 sm:$0xff]  }
 0x6d3   :  { %v5961_v38 = vld [vmem:[#allocation13 + $0x24] ss:$16 sps:$4 sm:$0xff]   ;;  %v5964_v58 = vld [vmem:[#allocation13 + $0x60] ss:$16 sps:$4 sm:$0xff]  }
 0x6d4   :  { %6040 = vtanh.f32 %v3160_v11  ;;  %v5965_v12 = vld [vmem:[#allocation13 + $0x64] ss:$16 sps:$4 sm:$0xff]   ;;  %v5966_v14 = vld [vmem:[#allocation13 + $0x80] ss:$16 sps:$4 sm:$0xff]  }
 0x6d5   :  { %6042 = vtanh.f32 %v3049_v18  ;;  %v5967_v16 = vld [vmem:[#allocation13 + $0x84] ss:$16 sps:$4 sm:$0xff]   ;;  %v5968_v11 = vld [vmem:[#allocation13 + $0xa0] ss:$16 sps:$4 sm:$0xff]  }
 0x6d6   :  { %v5969_v18 = vld [vmem:[#allocation13 + $0xa4] ss:$16 sps:$4 sm:$0xff]  }
 0x6de   :  { %v6041_v6 = vpop.eup %6040 }
 0x6df   :  { %v6043_v4 = vpop.eup %6042  ;;  %v3162_v33 = vmul.f32 0.5, %v6041_v6 }
 0x6e0   :  { %v3051_v36 = vmul.f32 0.5, %v6043_v4 }
 0x6e1   :  { %v3163_v35 = vadd.f32 0.5, %v3162_v33 }
 0x6e2   :  { %v3052_v39 = vadd.f32 0.5, %v3051_v36 }
 0x6ef   :  { %v3264_v21 = vpop.f32.mrb[60].mxu0  ;;  %v3372_v27 = vpop.f32.mrb[60].mxu1 }
 0x6f0   :  { %v3270_v55 = vadd.f32 %v3264_v21, %v6405_v19  ;;  %v3378_v56 = vadd.f32 %v3372_v27, %v6409_v24  ;;  %v5505_v3 = vpop.f32.mrb[61].mxu0  ;;  %v5525_v51 = vpop.f32.mrb[61].mxu1  ;;  %v3383_v19 = vmul.f32 %v3163_v35, %v6605_v17  ;;  %v5945_v17 = vld [vmem:[#allocation13 + $0x2c] ss:$16 sps:$4 sm:$0xff]   ;;  %v5970_v21 = vld [vmem:[#allocation13 + $0xc0] ss:$16 sps:$4 sm:$0xff]  }
 0x6f1   :  { %v3267_v59 = vpop.f32.mrb[62].mxu0  ;;  %v3375_v54 = vpop.f32.mrb[62].mxu1  ;;  %v5971_v27 = vld [vmem:[#allocation13 + $0xc4] ss:$16 sps:$4 sm:$0xff]  }
 0x6f2   :  { %6044 = vtanh.f32 %v3270_v55  ;;  %v5506_v63 = vpop.f32.mrb[63].mxu0  ;;  %v5526_v32 = vpop.f32.mrb[63].mxu1  ;;  %v3379_v31 = vmul.f32 0.5, %v3378_v56  ;;  %v5972_v55 = vld [vmem:[#allocation13 + $0xe0] ss:$16 sps:$4 sm:$0xff]  }
 0x6f3   :  { %v5973_v56 = vld [vmem:[#allocation13 + $0xe4] ss:$16 sps:$4 sm:$0xff]  }
 0x6f4   :  { %6046 = vtanh.f32 %v3379_v31 }
 0x6fc   :  { %v6045_v41 = vpop.eup %6044 }
 0x6fd   :  { %v3384_v42 = vmul.f32 %v6045_v41, %v3052_v39 }
 0x6fe   :  { %v6047_v44 = vpop.eup %6046 }
 0x6ff   :  { %v6653_v24 = vadd.f32 %v3384_v42, %v3383_v19  ;;  %v3381_v46 = vmul.f32 0.5, %v6047_v44 }
 0x701   :  { %6048 = vtanh.f32 %v6653_v24  ;;  %v3382_v28 = vadd.f32 0.5, %v3381_v46 }
 0x70b   :  { %v6049_v48 = vpop.eup %6048 }
 0x70c   :  { %v3387_v50 = vmul.f32 %v6049_v48, %v3382_v28 }
 0x70e   :  { %v3390_v0 = vpack.c.bf16 %v3387_v50, %v3387_v50 }
 0x710   :  { %3392 = vst [vmem:[#allocation14 + $0x14] sm:$0xf] %v3390_v0  ;;  %5544 = vmatmul.mubr.bf16.vlgmr.msra.gmra.mrb[64].mxu0 %v3390_v0  ;;  %5564 = vmatmul.mubr.bf16.vlgmr.msra.gmra.mrb[64].mxu1 %v3390_v0 }
 0x711   :  { %5568 = vmatpush3.bf16.msra.mxu0 %v5942_v53  ;;  %5588 = vmatpush3.bf16.msra.mxu1 %v5943_v57 }
 0x712   :  { %5569 = vmatprep.subr.bf16.mxu0 %v6171_v37  ;;  %5589 = vmatprep.subr.bf16.mxu1 %v6171_v37 }
 0x713   :  { %5583 = vmatprep.mubr.msk.bf16.mxu0 %vm6172_vm0, %v6171_v37  ;;  %5603 = vmatprep.mubr.msk.bf16.mxu1 %vm6172_vm0, %v6171_v37 }
 0x715   :  { %5570 = vmatpush3.bf16.msra.mxu0 %v5944_v60  ;;  %5590 = vmatpush3.bf16.msra.mxu1 %v5945_v17 }
 0x716   :  { %5571 = vmatprep.subr.bf16.mxu0 %v6171_v37  ;;  %5591 = vmatprep.subr.bf16.mxu1 %v6171_v37 }
 0x719   :  { %5572 = vmatpush3.bf16.msra.mxu0 %v5946_v61  ;;  %5592 = vmatpush3.bf16.msra.mxu1 %v5947_v1 }
 0x71a   :  { %5573 = vmatprep.subr.bf16.mxu0 %v6171_v37  ;;  %5593 = vmatprep.subr.bf16.mxu1 %v6171_v37 }
 0x71d   :  { %5574 = vmatpush3.bf16.msra.mxu0 %v5948_v25  ;;  %5594 = vmatpush3.bf16.msra.mxu1 %v5949_v22 }
 0x71e   :  { %5575 = vmatprep.subr.bf16.mxu0 %v6171_v37  ;;  %5595 = vmatprep.subr.bf16.mxu1 %v6171_v37 }
 0x721   :  { %5576 = vmatpush3.bf16.msra.mxu0 %v5950_v29  ;;  %5596 = vmatpush3.bf16.msra.mxu1 %v5951_v26 }
 0x722   :  { %5577 = vmatprep.subr.bf16.mxu0 %v6171_v37  ;;  %5597 = vmatprep.subr.bf16.mxu1 %v6171_v37 }
 0x725   :  { %5578 = vmatpush3.bf16.msra.mxu0 %v5952_v23  ;;  %5598 = vmatpush3.bf16.msra.mxu1 %v5953_v30 }
 0x726   :  { %5579 = vmatprep.subr.bf16.mxu0 %v6171_v37  ;;  %5599 = vmatprep.subr.bf16.mxu1 %v6171_v37 }
 0x729   :  { %5580 = vmatpush3.bf16.msra.mxu0 %v5954_v2  ;;  %5600 = vmatpush3.bf16.msra.mxu1 %v5955_v43  ;;  %v5974_v2 = vld [vmem:[#allocation13 + $0x8] ss:$16 sps:$4 sm:$0xff]   ;;  %v5975_v43 = vld [vmem:[#allocation13 + $0xc] ss:$16 sps:$4 sm:$0xff]  }
 0x72a   :  { %5581 = vmatprep.subr.bf16.mxu0 %v6171_v37  ;;  %5601 = vmatprep.subr.bf16.mxu1 %v6171_v37 }
 0x72d   :  { %5582 = vmatpush3.bf16.msra.mxu0 %v5956_v62  ;;  %5602 = vmatpush3.bf16.msra.mxu1 %v5957_v49  ;;  %v5976_v49 = vld [vmem:[#allocation13 + $0x28] ss:$16 sps:$4 sm:$0xff]  }
 0x72e   :  { %5607 = vmatprep.subr.bf16.mxu0 %v6171_v37  ;;  %5627 = vmatprep.subr.bf16.mxu1 %v6171_v37 }
 0x730   :  { %5584 = vmatmul.mubr.bf16.vlgmr.msra.gmra.mrb[68].mxu0 %v3390_v0  ;;  %5604 = vmatmul.mubr.bf16.vlgmr.msra.gmra.mrb[68].mxu1 %v3390_v0 }
 0x731   :  { %5623 = vmatprep.mubr.msk.bf16.mxu0 %vm6172_vm0, %v6171_v37  ;;  %5643 = vmatprep.mubr.msk.bf16.mxu1 %vm6172_vm0, %v6171_v37 }
 0x732   :  { %5608 = vmatpush3.bf16.msra.mxu0 %v5958_v5  ;;  %5628 = vmatpush3.bf16.msra.mxu1 %v5959_v34  ;;  %v5978_v5 = vld [vmem:[#allocation13 + $0x48] ss:$16 sps:$4 sm:$0xff]   ;;  %v5979_v34 = vld [vmem:[#allocation13 + $0x4c] ss:$16 sps:$4 sm:$0xff]  }
 0x733   :  { %5609 = vmatprep.subr.bf16.mxu0 %v6171_v37  ;;  %5629 = vmatprep.subr.bf16.mxu1 %v6171_v37 }
 0x736   :  { %5610 = vmatpush3.bf16.msra.mxu0 %v5960_v7  ;;  %5630 = vmatpush3.bf16.msra.mxu1 %v5961_v38  ;;  %v5980_v7 = vld [vmem:[#allocation13 + $0x68] ss:$16 sps:$4 sm:$0xff]   ;;  %v5981_v38 = vld [vmem:[#allocation13 + $0x6c] ss:$16 sps:$4 sm:$0xff]  }
 0x737   :  { %5611 = vmatprep.subr.bf16.mxu0 %v6171_v37  ;;  %5631 = vmatprep.subr.bf16.mxu1 %v6171_v37 }
 0x73a   :  { %5612 = vmatpush3.bf16.msra.mxu0 %v5962_v9  ;;  %5632 = vmatpush3.bf16.msra.mxu1 %v5963_v10  ;;  %v5982_v9 = vld [vmem:[#allocation13 + $0x88] ss:$16 sps:$4 sm:$0xff]   ;;  %v5983_v10 = vld [vmem:[#allocation13 + $0x8c] ss:$16 sps:$4 sm:$0xff]  }
 0x73b   :  { %5613 = vmatprep.subr.bf16.mxu0 %v6171_v37  ;;  %5633 = vmatprep.subr.bf16.mxu1 %v6171_v37 }
 0x73e   :  { %5614 = vmatpush3.bf16.msra.mxu0 %v5964_v58  ;;  %5634 = vmatpush3.bf16.msra.mxu1 %v5965_v12  ;;  %v5984_v58 = vld [vmem:[#allocation13 + $0xa8] ss:$16 sps:$4 sm:$0xff]   ;;  %v5985_v12 = vld [vmem:[#allocation13 + $0xac] ss:$16 sps:$4 sm:$0xff]  }
 0x73f   :  { %5615 = vmatprep.subr.bf16.mxu0 %v6171_v37  ;;  %5635 = vmatprep.subr.bf16.mxu1 %v6171_v37 }
 0x742   :  { %5616 = vmatpush3.bf16.msra.mxu0 %v5966_v14  ;;  %5636 = vmatpush3.bf16.msra.mxu1 %v5967_v16  ;;  %v5986_v14 = vld [vmem:[#allocation13 + $0xc8] ss:$16 sps:$4 sm:$0xff]   ;;  %v5987_v16 = vld [vmem:[#allocation13 + $0xcc] ss:$16 sps:$4 sm:$0xff]  }
 0x743   :  { %5617 = vmatprep.subr.bf16.mxu0 %v6171_v37  ;;  %5637 = vmatprep.subr.bf16.mxu1 %v6171_v37 }
 0x746   :  { %5618 = vmatpush3.bf16.msra.mxu0 %v5968_v11  ;;  %5638 = vmatpush3.bf16.msra.mxu1 %v5969_v18  ;;  %v5988_v11 = vld [vmem:[#allocation13 + $0xe8] ss:$16 sps:$4 sm:$0xff]   ;;  %v5989_v18 = vld [vmem:[#allocation13 + $0xec] ss:$16 sps:$4 sm:$0xff]  }
 0x747   :  { %5619 = vmatprep.subr.bf16.mxu0 %v6171_v37  ;;  %5639 = vmatprep.subr.bf16.mxu1 %v6171_v37 }
 0x74a   :  { %5620 = vmatpush3.bf16.msra.mxu0 %v5970_v21  ;;  %5640 = vmatpush3.bf16.msra.mxu1 %v5971_v27 }
 0x74b   :  { %5621 = vmatprep.subr.bf16.mxu0 %v6171_v37  ;;  %5641 = vmatprep.subr.bf16.mxu1 %v6171_v37 }
 0x74e   :  { %5622 = vmatpush3.bf16.msra.mxu0 %v5972_v55  ;;  %5642 = vmatpush3.bf16.msra.mxu1 %v5973_v56 }
 0x74f   :  { %5647 = vmatprep.subr.bf16.mxu0 %v6171_v37  ;;  %5667 = vmatprep.subr.bf16.mxu1 %v6171_v37 }
 0x7e3   :  { %v3496_v3 = vpop.f32.mrb[64].mxu0  ;;  %v3607_v51 = vpop.f32.mrb[64].mxu1 }
 0x7e4   :  { %v3502_v59 = vadd.f32 %v3496_v3, %v6354_v40  ;;  %v3613_v54 = vadd.f32 %v3607_v51, %v6360_v45  ;;  %v5545_v6 = vpop.f32.mrb[65].mxu0  ;;  %v5565_v63 = vpop.f32.mrb[65].mxu1 }
 0x7e5   :  { %v3499_v32 = vpop.f32.mrb[66].mxu0  ;;  %v3610_v4 = vpop.f32.mrb[66].mxu1 }
 0x7e6   :  { %v5546_v33 = vpop.f32.mrb[67].mxu0  ;;  %v5566_v31 = vpop.f32.mrb[67].mxu1  ;;  %v3614_v36 = vmul.f32 0.5, %v3613_v54  ;;  %v3503_v35 = vmul.f32 0.5, %v3502_v59 }
 0x7e8   :  { %6050 = vtanh.f32 %v3614_v36 }
 0x7e9   :  { %6052 = vtanh.f32 %v3503_v35 }
 0x7f2   :  { %v6051_v28 = vpop.eup %6050 }
 0x7f3   :  { %v6053_v53 = vpop.eup %6052  ;;  %v3616_v57 = vmul.f32 0.5, %v6051_v28 }
 0x7f4   :  { %v3505_v60 = vmul.f32 0.5, %v6053_v53 }
 0x7f5   :  { %v3617_v17 = vadd.f32 0.5, %v3616_v57 }
 0x7f6   :  { %v3506_v61 = vadd.f32 0.5, %v3505_v60 }
 0x803   :  { %v3718_v39 = vpop.f32.mrb[68].mxu0  ;;  %v3826_v41 = vpop.f32.mrb[68].mxu1 }
 0x804   :  { %v3724_v19 = vadd.f32 %v3718_v39, %v6395_v8  ;;  %v3832_v42 = vadd.f32 %v3826_v41, %v6399_v13  ;;  %v5585_v44 = vpop.f32.mrb[69].mxu0  ;;  %v5605_v40 = vpop.f32.mrb[69].mxu1  ;;  %v3837_v8 = vmul.f32 %v3617_v17, %v6653_v24  ;;  %v5977_v24 = vld [vmem:[#allocation13 + $0x2c] ss:$16 sps:$4 sm:$0xff]  }
 0x805   :  { %v3721_v46 = vpop.f32.mrb[70].mxu0  ;;  %v3829_v45 = vpop.f32.mrb[70].mxu1 }
 0x806   :  { %6054 = vtanh.f32 %v3724_v19  ;;  %v5586_v48 = vpop.f32.mrb[71].mxu0  ;;  %v5606_v50 = vpop.f32.mrb[71].mxu1  ;;  %v3833_v0 = vmul.f32 0.5, %v3832_v42 }
 0x808   :  { %6056 = vtanh.f32 %v3833_v0 }
 0x810   :  { %v6055_v1 = vpop.eup %6054 }
 0x811   :  { %v3838_v25 = vmul.f32 %v6055_v1, %v3506_v61 }
 0x812   :  { %v6057_v22 = vpop.eup %6056 }
 0x813   :  { %v6701_v13 = vadd.f32 %v3838_v25, %v3837_v8  ;;  %v3835_v29 = vmul.f32 0.5, %v6057_v22 }
 0x815   :  { %6058 = vtanh.f32 %v6701_v13  ;;  %v3836_v26 = vadd.f32 0.5, %v3835_v29 }
 0x81f   :  { %v6059_v23 = vpop.eup %6058 }
 0x820   :  { %v3841_v30 = vmul.f32 %v6059_v23, %v3836_v26 }
 0x822   :  { %v3844_v62 = vpack.c.bf16 %v3841_v30, %v3841_v30 }
 0x824   :  { %3846 = vst [vmem:[#allocation14 + $0x18] sm:$0xf] %v3844_v62  ;;  %5624 = vmatmul.mubr.bf16.vlgmr.msra.gmra.mrb[72].mxu0 %v3844_v62  ;;  %5644 = vmatmul.mubr.bf16.vlgmr.msra.gmra.mrb[72].mxu1 %v3844_v62 }
 0x825   :  { %5648 = vmatpush3.bf16.msra.mxu0 %v5974_v2  ;;  %5668 = vmatpush3.bf16.msra.mxu1 %v5975_v43 }
 0x826   :  { %5649 = vmatprep.subr.bf16.mxu0 %v6171_v37  ;;  %5669 = vmatprep.subr.bf16.mxu1 %v6171_v37 }
 0x827   :  { %5663 = vmatprep.mubr.msk.bf16.mxu0 %vm6172_vm0, %v6171_v37  ;;  %5683 = vmatprep.mubr.msk.bf16.mxu1 %vm6172_vm0, %v6171_v37 }
 0x829   :  { %5650 = vmatpush3.bf16.msra.mxu0 %v5976_v49  ;;  %5670 = vmatpush3.bf16.msra.mxu1 %v5977_v24 }
 0x82a   :  { %5651 = vmatprep.subr.bf16.mxu0 %v6171_v37  ;;  %5671 = vmatprep.subr.bf16.mxu1 %v6171_v37 }
 0x82d   :  { %5652 = vmatpush3.bf16.msra.mxu0 %v5978_v5  ;;  %5672 = vmatpush3.bf16.msra.mxu1 %v5979_v34 }
 0x82e   :  { %5653 = vmatprep.subr.bf16.mxu0 %v6171_v37  ;;  %5673 = vmatprep.subr.bf16.mxu1 %v6171_v37 }
 0x831   :  { %5654 = vmatpush3.bf16.msra.mxu0 %v5980_v7  ;;  %5674 = vmatpush3.bf16.msra.mxu1 %v5981_v38 }
 0x832   :  { %5655 = vmatprep.subr.bf16.mxu0 %v6171_v37  ;;  %5675 = vmatprep.subr.bf16.mxu1 %v6171_v37 }
 0x835   :  { %5656 = vmatpush3.bf16.msra.mxu0 %v5982_v9  ;;  %5676 = vmatpush3.bf16.msra.mxu1 %v5983_v10 }
 0x836   :  { %5657 = vmatprep.subr.bf16.mxu0 %v6171_v37  ;;  %5677 = vmatprep.subr.bf16.mxu1 %v6171_v37 }
 0x839   :  { %5658 = vmatpush3.bf16.msra.mxu0 %v5984_v58  ;;  %5678 = vmatpush3.bf16.msra.mxu1 %v5985_v12 }
 0x83a   :  { %5659 = vmatprep.subr.bf16.mxu0 %v6171_v37  ;;  %5679 = vmatprep.subr.bf16.mxu1 %v6171_v37 }
 0x83d   :  { %5660 = vmatpush3.bf16.msra.mxu0 %v5986_v14  ;;  %5680 = vmatpush3.bf16.msra.mxu1 %v5987_v16 }
 0x83e   :  { %5661 = vmatprep.subr.bf16.mxu0 %v6171_v37  ;;  %5681 = vmatprep.subr.bf16.mxu1 %v6171_v37 }
 0x841   :  { %5662 = vmatpush3.bf16.msra.mxu0 %v5988_v11  ;;  %5682 = vmatpush3.bf16.msra.mxu1 %v5989_v18 }
 0x844   :  { %5664 = vmatmul.mubr.bf16.vlgmr.msra.gmra.mrb[76].mxu0 %v3844_v62  ;;  %5684 = vmatmul.mubr.bf16.vlgmr.msra.gmra.mrb[76].mxu1 %v3844_v62 }
 0x8f7   :  { %v3950_v21 = vpop.f32.mrb[72].mxu0  ;;  %v4061_v27 = vpop.f32.mrb[72].mxu1 }
 0x8f8   :  { %v3956_v55 = vadd.f32 %v3950_v21, %v6363_v47  ;;  %v4067_v56 = vadd.f32 %v4061_v27, %v6372_v52  ;;  %v5625_v3 = vpop.f32.mrb[73].mxu0  ;;  %v5645_v51 = vpop.f32.mrb[73].mxu1 }
 0x8f9   :  { %v3953_v59 = vpop.f32.mrb[74].mxu0  ;;  %v4064_v54 = vpop.f32.mrb[74].mxu1 }
 0x8fa   :  { %v5626_v6 = vpop.f32.mrb[75].mxu0  ;;  %v5646_v63 = vpop.f32.mrb[75].mxu1  ;;  %v4068_v32 = vmul.f32 0.5, %v4067_v56  ;;  %v3957_v4 = vmul.f32 0.5, %v3956_v55 }
 0x8fc   :  { %6060 = vtanh.f32 %v4068_v32 }
 0x8fd   :  { %6062 = vtanh.f32 %v3957_v4 }
 0x906   :  { %v6061_v41 = vpop.eup %6060 }
 0x907   :  { %v6063_v44 = vpop.eup %6062  ;;  %v4070_v40 = vmul.f32 0.5, %v6061_v41 }
 0x908   :  { %v3959_v45 = vmul.f32 0.5, %v6063_v44 }
 0x909   :  { %v4071_v28 = vadd.f32 0.5, %v4070_v40 }
 0x90a   :  { %v3960_v48 = vadd.f32 0.5, %v3959_v45 }
 0x917   :  { %v4172_v37 = vpop.f32.mrb[76].mxu0  ;;  %v4280_v33 = vpop.f32.mrb[76].mxu1 }
 0x918   :  { %v4178_v31 = vadd.f32 %v4172_v37, %v6401_v15  ;;  %v4286_v36 = vadd.f32 %v4280_v33, %v6407_v20  ;;  %v5665_v35 = vpop.f32.mrb[77].mxu0  ;;  %v5685_v47 = vpop.f32.mrb[77].mxu1  ;;  %v4291_v15 = vmul.f32 %v4071_v28, %v6701_v13 }
 0x919   :  { %v4175_v39 = vpop.f32.mrb[78].mxu0  ;;  %v4283_v52 = vpop.f32.mrb[78].mxu1 }
 0x91a   :  { %6064 = vtanh.f32 %v4178_v31  ;;  %v5666_v19 = vpop.f32.mrb[79].mxu0  ;;  %v5686_v42 = vpop.f32.mrb[79].mxu1  ;;  %v4287_v46 = vmul.f32 0.5, %v4286_v36 }
 0x91c   :  { %6066 = vtanh.f32 %v4287_v46 }
 0x924   :  { %v6065_v50 = vpop.eup %6064 }
 0x925   :  { %v4292_v53 = vmul.f32 %v6065_v50, %v3960_v48 }
 0x926   :  { %v6067_v57 = vpop.eup %6066 }
 0x927   :  { %v4293_v20 = vadd.f32 %v4292_v53, %v4291_v15  ;;  %v4289_v0 = vmul.f32 0.5, %v6067_v57 }
 0x929   :  { %6068 = vtanh.f32 %v4293_v20  ;;  %v4290_v60 = vadd.f32 0.5, %v4289_v0 }
 0x933   :  { %v6069_v17 = vpop.eup %6068 }
 0x934   :  { %v4295_v61 = vmul.f32 %v6069_v17, %v4290_v60 }
 0x936   :  { %v4298_v1 = vpack.c.bf16 %v4295_v61, %v4295_v61 }
 0x938   :  { %4300 = vst [vmem:[#allocation14 + $0x1c] sm:$0xf] %v4298_v1 }
 0x939   :  { %6147 = shalt.err (!%p6144_p0)
}
 0x93a   :  { %s6148_s12 = scalar_lea.hbm %s6746_s4, 512 }
 0x93b   :  { %p6149_p1 = scmp.ne.s32.totalorder %s6746_s4, %s6148_s12  ;;  %p6152_p2 = scmp.lt.u32.totalorder %s6148_s12, %s6746_s4 }
 0x93d   :  { %p6154_p3 = pnand %p6152_p2, %p6149_p1 }
 0x93f   :  { %6157 = shalt.err (!%p6154_p3)
}
 0x940   :  { %4312 = dma.vmem_to_hbm [thread:$0]  %s4307_s8, 512, %s6746_s4, [#allocation10], %s6168_s1, %s6168_s1, %s6169_s13  }
 0x941   :  { %6162 = dma.done.wait [#allocation10], 512  }
 0x942   :  { %6163 = vsyncadd [#allocation10], 4294966784 }
 0x943   :  { %4316 = vsyncpa [#allocation9], 1 }
 0x944   :  { %4317 = vsyncpa [#allocation12], 1 }
 0x945   :  { %4318 = vsyncpa [#allocation10], 1 }

</bundles_post_ra>
